<compile_context>
chip_gen: v5e
topology: v5e:2x2
jax: 0.10.0
libtpu: 0.0.40
codegen_flags: <defaults>
</compile_context>

<pallas_src>
import functools
import math

import jax
import jax.numpy as jnp
from jax.experimental import pallas as pl
from jax.experimental.pallas import tpu as pltpu

_SELU_ALPHA = 1.6732632423543772
_SELU_SCALE = 1.0507009873554805


def _selu(x):
    return _SELU_SCALE * jnp.where(x > 0, x, _SELU_ALPHA * (jnp.exp(x) - 1.0))


def _sigmoid_tanh(x):
    # sigmoid(x) = 0.5 * (1 + tanh(x / 2)): exact, and only one EUP op.
    return 0.5 * jnp.tanh(0.5 * x) + 0.5


def _round_up(n, m):
    return ((n + m - 1) // m) * m


def _lstm_layer_kernel(x_ref, wih0_ref, whh0_ref, bg0_ref,
                       wcat1_ref, bg1_ref,
                       who_ref, bho_ref, w1_ref, b1_ref, w2_ref, b2_ref,
                       out_ref, xg_ref, hs_ref, *, hidden, time_step):
    H = hidden
    T = time_step
    TB = x_ref.shape[1]
    D = x_ref.shape[2]
    NW1 = w1_ref.shape[-1]          # 128 (W1 out features)
    f32 = jnp.float32

    # ---- Hoisted layer-0 input projection: one (T*TB, D) @ (D, 4H) MXU matmul
    #      instead of T small K=D matmuls on the serial recurrence path.  The
    #      result lives in VMEM scratch (not vregs) across the unrolled loop.
    x_flat = x_ref[...].astype(f32).reshape(T * TB, D)     # leading-dim merge: layout-free
    xg_ref[...] = (jnp.dot(x_flat, wih0_ref[...], preferred_element_type=f32)
                   + bg0_ref[...]).reshape(T, TB, 4 * H)   # bias added once

    # Loop-invariant reads hoisted out of the unrolled time loop
    # (JAX does not CSE broadcast_in_dim / repeated ref loads).
    whh0 = whh0_ref[...]
    wcat1 = wcat1_ref[...]
    bg1 = bg1_ref[...]

    def gates(g):
        # Full 4H=128-lane sigmoid / tanh once, then slice.
        # PyTorch gate order along the 4H axis: i, f, g, o.
        s = _sigmoid_tanh(g)
        th = jnp.tanh(g)
        return (s[:, 0 * H:1 * H], s[:, 1 * H:2 * H],
                th[:, 2 * H:3 * H], s[:, 3 * H:4 * H])

    zero = jnp.zeros((TB, H), f32)
    h1, c1, h2, c2 = zero, zero, zero, zero

    # ---- Serial recurrence (static unroll over T).  Only two recurrent
    #      matmuls (K=H and K=2H) remain per timestep; the head is deferred.
    for t in range(T):
        # LSTM layer 0: input part precomputed, only the h-recurrence in-loop.
        g0 = xg_ref[t] + jnp.dot(h1, whh0, preferred_element_type=f32)
        i0, f0, gg0, o0 = gates(g0)
        c1 = f0 * c1 + i0 * gg0
        h1 = o0 * jnp.tanh(c1)

        # LSTM layer 1: fused gate matmul [h1 | h2] @ [wih1 ; whh1]  (K = 2H).
        # eval mode: inter-layer dropout is identity.
        g1 = jnp.dot(jnp.concatenate([h1, h2], axis=-1), wcat1,
                     preferred_element_type=f32) + bg1
        i1, f1, gg1, o1 = gates(g1)
        c2 = f1 * c2 + i1 * gg1
        h2 = o1 * jnp.tanh(c2)

        hs_ref[t] = h2              # stash for the post-loop head

    # ---- Post-recurrence head (off the serial chain):
    #      hidden_out + bias + SELU as one (T*TB, H) @ (H, 10) matmul, then
    #      flatten+W1 as T accumulated (TB,10)@(10,128) matmuls, then W2.
    hs = hs_ref[...].reshape(T * TB, H)                    # leading-dim merge: layout-free
    ho = jnp.dot(hs, who_ref[...], preferred_element_type=f32) + bho_ref[...]
    a = _selu(ho).reshape(T, TB, 10)
    z = jnp.zeros((TB, NW1), f32)
    for t in range(T):
        z = z + jnp.dot(a[t], w1_ref[t], preferred_element_type=f32)
    z = z + b1_ref[...]
    # eval mode: dropout(p=0.2) after W1 is identity.
    out_ref[...] = (jnp.dot(z, w2_ref[...], preferred_element_type=f32)
                    + b2_ref[...])                         # (TB, 128) lane-dense


def lstm_layer_forward(x, params, *, block_b=None):
    """x: (B, T, input_size) float32.  Returns (B, T) float32 (eval-mode forward)."""
    B, T, D = x.shape
    H = params["whh0"].shape[0]
    W1_OUT = params["w1"].shape[1]        # 128
    LANE = 128

    # Batch tile: multiple of 8, capped at 64 (f32 recurrent state stays well
    # under the 64-vreg register file).  Default splits into >=2 grid steps
    # when the batch allows, so the "parallel" batch axis can use both
    # TensorCores on v7x; single-TC chips only pay ~0.35us per extra step.
    if block_b is None:
        block_b = 64 if B > 128 else max(8, _round_up(pl.cdiv(B, 2), 8))
    TB = max(8, _round_up(min(block_b, max(B, 1)), 8))     # enforce multiple of 8
    B_pad = _round_up(B, TB)

    x = x.astype(jnp.float32)
    if B_pad != B:
        x = jnp.pad(x, ((0, B_pad - B), (0, 0), (0, 0)))
    # Time-major layout so the hoisted layer-0 projection can slice per-timestep
    # blocks with free, tile-aligned sublane slices.
    x_tm = jnp.transpose(x, (1, 0, 2))                     # (T, B_pad, D)

    # Weight layout prep (plain JAX, outside the kernel):
    # Layer-1 gate weights fused row-wise: [wih1 ; whh1] -> (2H, 4H).
    wcat1 = jnp.concatenate([params["wih1"], params["whh1"]], axis=0)
    # W1 stacked per timestep so the kernel never reshapes: (T*10,128) -> (T,10,128).
    w1s = params["w1"].reshape(T, 10, W1_OUT)
    # W2 / b2 zero-padded to a lane-dense 128-wide output slab.
    w2p = jnp.zeros((W1_OUT, LANE), jnp.float32).at[:, :T].set(params["w2"])
    b2p = jnp.zeros((1, LANE), jnp.float32).at[:, :T].set(params["b2"])

    def resident(shape):
        # Constant index_map -> block never changes -> weights stay VMEM-resident.
        if len(shape) == 2:
            return pl.BlockSpec(shape, lambda i: (0, 0))
        return pl.BlockSpec(shape, lambda i: (0, 0, 0))

    in_specs = [
        pl.BlockSpec((T, TB, D), lambda i: (0, i, 0)),   # x (time-major, streamed per batch tile)
        resident((D, 4 * H)),          # wih0
        resident((H, 4 * H)),          # whh0
        resident((1, 4 * H)),          # bg0
        resident((2 * H, 4 * H)),      # [wih1 ; whh1] fused
        resident((1, 4 * H)),          # bg1
        resident((H, 10)),             # hidden_out weight
        resident((1, 10)),             # hidden_out bias
        resident((T, 10, W1_OUT)),     # W1 (stacked per timestep)
        resident((1, W1_OUT)),         # b1
        resident((W1_OUT, LANE)),      # W2 (lane-padded)
        resident((1, LANE)),           # b2 (lane-padded)
    ]
    out_specs = pl.BlockSpec((TB, LANE), lambda i: (i, 0))

    kernel = functools.partial(_lstm_layer_kernel, hidden=H, time_step=T)
    out_pad = pl.pallas_call(
        kernel,
        grid_spec=pltpu.PrefetchScalarGridSpec(
            num_scalar_prefetch=0,
            grid=(B_pad // TB,),
            in_specs=in_specs,
            out_specs=out_specs,
            scratch_shapes=[
                pltpu.VMEM((T, TB, 4 * H), jnp.float32),   # hoisted layer-0 gate pre-activations
                pltpu.VMEM((T, TB, H), jnp.float32),       # h2 stack for the post-loop head
            ]),
        out_shape=jax.ShapeDtypeStruct((B_pad, LANE), jnp.float32),
        compiler_params=pltpu.CompilerParams(
            dimension_semantics=("parallel",)),
    )(x_tm, params["wih0"], params["whh0"], params["bg0"],
      wcat1, params["bg1"],
      params["who"], params["bho"], w1s, params["b1"], w2p, b2p)
    return out_pad[:B, :T]


def reference_forward(x, params):
    """Pure-JAX reference of the same eval-mode forward pass."""
    B, T, _ = x.shape
    H = params["whh0"].shape[0]

    def lstm_layer(inp, wih, whh, bg):
        h = jnp.zeros((B, H), jnp.float32)
        c = jnp.zeros((B, H), jnp.float32)
        hs = []
        for t in range(T):
            g = inp[:, t, :] @ wih + h @ whh + bg
            i = jax.nn.sigmoid(g[:, :H])
            f = jax.nn.sigmoid(g[:, H:2 * H])
            gg = jnp.tanh(g[:, 2 * H:3 * H])
            o = jax.nn.sigmoid(g[:, 3 * H:])
            c = f * c + i * gg
            h = o * jnp.tanh(c)
            hs.append(h)
        return jnp.stack(hs, axis=1)

    r = lstm_layer(x.astype(jnp.float32), params["wih0"], params["whh0"], params["bg0"])
    r = lstm_layer(r, params["wih1"], params["whh1"], params["bg1"])   # eval: no inter-layer dropout
    ho = r @ params["who"] + params["bho"]                             # (B, T, 10)
    out = _selu(ho.reshape(B, T * 10))
    out = out @ params["w1"] + params["b1"]
    out = out @ params["w2"] + params["b2"]                            # eval: dropout identity
    return out


def init_params(key, input_size, time_step, hidden_size):
    """All weights stored pre-transposed as (in_features, out_features); biases (1, out)."""
    H = hidden_size
    gain = 1.414                       # as hard-coded in the PyTorch module
    keys = iter(jax.random.split(key, 14))

    def unif(shape, bound):
        return jax.random.uniform(next(keys), shape, jnp.float32, -bound, bound)

    def xavier(fan_in, fan_out):
        a = gain * math.sqrt(6.0 / (fan_in + fan_out))
        return jax.random.uniform(next(keys), (fan_in, fan_out), jnp.float32, -a, a)

    kb = 1.0 / math.sqrt(H)            # PyTorch LSTM default init bound
    return {
        # LSTM layer 0: input_size -> H (gate order i, f, g, o along the 4H axis)
        "wih0": unif((input_size, 4 * H), kb),
        "whh0": unif((H, 4 * H), kb),
        "bg0": unif((1, 4 * H), kb) + unif((1, 4 * H), kb),   # bias_ih + bias_hh
        # LSTM layer 1: H -> H
        "wih1": unif((H, 4 * H), kb),
        "whh1": unif((H, 4 * H), kb),
        "bg1": unif((1, 4 * H), kb) + unif((1, 4 * H), kb),
        # hidden_out: Linear(H, 10)
        "who": unif((H, 10), 1.0 / math.sqrt(H)),
        "bho": unif((1, 10), 1.0 / math.sqrt(H)),
        # W1: Linear(time_step*10, 128), xavier_uniform(gain=1.414) on the weight
        "w1": xavier(time_step * 10, 128),
        "b1": unif((1, 128), 1.0 / math.sqrt(time_step * 10)),
        # W2: Linear(128, time_step), xavier_uniform(gain=1.414) on the weight
        "w2": xavier(128, time_step),
        "b2": unif((1, time_step), 1.0 / math.sqrt(128)),
    }


if __name__ == "__main__":
    input_size = 32
    time_step = 8
    hidden_size = 32
    batch = 64          # default tiling: TB=32 -> 2 "parallel" grid steps

    key = jax.random.PRNGKey(0)
    kx, kp = jax.random.split(key)
    x = jax.random.normal(kx, (batch, time_step, input_size), jnp.float32)
    params = init_params(kp, input_size, time_step, hidden_size)

    out = jax.block_until_ready(lstm_layer_forward(x, params))
    ref = jax.block_until_ready(reference_forward(x, params))

    assert out.shape == (batch, time_step), out.shape
    max_err = float(jnp.max(jnp.abs(out - ref)))
    assert jnp.allclose(out, ref, atol=2e-2, rtol=2e-2), max_err
    print("KERNEL_OK")
</pallas_src>

<mosaic_0001>
module attributes {stable_mosaic.version = 11 : i64} {
  func.func @_lstm_layer_kernel(%arg0: i32, %arg1: memref<8x32x32xf32, #tpu.memory_space<vmem>>, %arg2: memref<32x128xf32, #tpu.memory_space<vmem>>, %arg3: memref<32x128xf32, #tpu.memory_space<vmem>>, %arg4: memref<1x128xf32, #tpu.memory_space<vmem>>, %arg5: memref<64x128xf32, #tpu.memory_space<vmem>>, %arg6: memref<1x128xf32, #tpu.memory_space<vmem>>, %arg7: memref<32x10xf32, #tpu.memory_space<vmem>>, %arg8: memref<1x10xf32, #tpu.memory_space<vmem>>, %arg9: memref<8x10x128xf32, #tpu.memory_space<vmem>>, %arg10: memref<1x128xf32, #tpu.memory_space<vmem>>, %arg11: memref<128x128xf32, #tpu.memory_space<vmem>>, %arg12: memref<1x128xf32, #tpu.memory_space<vmem>>, %arg13: memref<32x128xf32, #tpu.memory_space<vmem>>, %arg14: memref<8x32x128xf32, #tpu.memory_space<vmem>>, %arg15: memref<8x32x32xf32, #tpu.memory_space<vmem>>) attributes {dimension_semantics = [#tpu.dimension_semantics<parallel>], iteration_bounds = array<i64: 2>, scalar_prefetch = 0 : i64, scratch_operands = 2 : i64, tpu.core_type = #tpu.core_type<tc>, window_params = [{transform_indices = @transform_0, window_bounds = array<i64: 8, 32, 32>}, {pipeline_mode = #tpu.pipeline_mode<synchronous>, transform_indices = @transform_1, window_bounds = array<i64: 32, 128>}, {pipeline_mode = #tpu.pipeline_mode<synchronous>, transform_indices = @transform_2, window_bounds = array<i64: 32, 128>}, {pipeline_mode = #tpu.pipeline_mode<synchronous>, transform_indices = @transform_3, window_bounds = array<i64: 1, 128>}, {pipeline_mode = #tpu.pipeline_mode<synchronous>, transform_indices = @transform_4, window_bounds = array<i64: 64, 128>}, {pipeline_mode = #tpu.pipeline_mode<synchronous>, transform_indices = @transform_5, window_bounds = array<i64: 1, 128>}, {pipeline_mode = #tpu.pipeline_mode<synchronous>, transform_indices = @transform_6, window_bounds = array<i64: 32, 10>}, {pipeline_mode = #tpu.pipeline_mode<synchronous>, transform_indices = @transform_7, window_bounds = array<i64: 1, 10>}, {pipeline_mode = #tpu.pipeline_mode<synchronous>, transform_indices = @transform_8, window_bounds = array<i64: 8, 10, 128>}, {pipeline_mode = #tpu.pipeline_mode<synchronous>, transform_indices = @transform_9, window_bounds = array<i64: 1, 128>}, {pipeline_mode = #tpu.pipeline_mode<synchronous>, transform_indices = @transform_10, window_bounds = array<i64: 128, 128>}, {pipeline_mode = #tpu.pipeline_mode<synchronous>, transform_indices = @transform_11, window_bounds = array<i64: 1, 128>}, {transform_indices = @transform_12, window_bounds = array<i64: 32, 128>}]} {
    %c0 = arith.constant 0 : index
    %c0_0 = arith.constant 0 : index
    %c0_1 = arith.constant 0 : index
    %0 = vector.load %arg1[%c0, %c0_0, %c0_1] : memref<8x32x32xf32, #tpu.memory_space<vmem>>, vector<8x32x32xf32>
    %1 = vector.shape_cast %0 : vector<8x32x32xf32> to vector<256x32xf32>
    %c0_2 = arith.constant 0 : index
    %c0_3 = arith.constant 0 : index
    %2 = vector.load %arg2[%c0_2, %c0_3] : memref<32x128xf32, #tpu.memory_space<vmem>>, vector<32x128xf32>
    %cst = arith.constant dense<0.000000e+00> : vector<256x128xf32>
    %3 = tpu.matmul %1, %2, %cst {dimension_numbers = #tpu.dot_dimension_numbers<[1], [0], [0], [1], [0, 0, 1, 1], [], []>} : vector<256x32xf32>, vector<32x128xf32>, vector<256x128xf32> -> vector<256x128xf32>
    %c0_4 = arith.constant 0 : index
    %c0_5 = arith.constant 0 : index
    %4 = vector.load %arg4[%c0_4, %c0_5] : memref<1x128xf32, #tpu.memory_space<vmem>>, vector<1x128xf32>
    %5 = vector.broadcast %4 : vector<1x128xf32> to vector<256x128xf32>
    %6 = arith.addf %3, %5 : vector<256x128xf32>
    %7 = vector.shape_cast %6 : vector<256x128xf32> to vector<8x32x128xf32>
    %c0_6 = arith.constant 0 : index
    %c0_7 = arith.constant 0 : index
    %c0_8 = arith.constant 0 : index
    %8 = vector.load %arg14[%c0_6, %c0_7, %c0_8] : memref<8x32x128xf32, #tpu.memory_space<vmem>>, vector<8x32x128xf32>
    tpu.vector_store %arg14[%c0_6, %c0_7, %c0_8], %7 {strides = array<i32>} : memref<8x32x128xf32, #tpu.memory_space<vmem>>, vector<8x32x128xf32>,
    %c0_9 = arith.constant 0 : index
    %c0_10 = arith.constant 0 : index
    %9 = vector.load %arg3[%c0_9, %c0_10] : memref<32x128xf32, #tpu.memory_space<vmem>>, vector<32x128xf32>
    %c0_11 = arith.constant 0 : index
    %c0_12 = arith.constant 0 : index
    %10 = vector.load %arg5[%c0_11, %c0_12] : memref<64x128xf32, #tpu.memory_space<vmem>>, vector<64x128xf32>
    %c0_13 = arith.constant 0 : index
    %c0_14 = arith.constant 0 : index
    %11 = vector.load %arg6[%c0_13, %c0_14] : memref<1x128xf32, #tpu.memory_space<vmem>>, vector<1x128xf32>
    %cst_15 = arith.constant 0.000000e+00 : f32
    %12 = vector.broadcast %cst_15 : f32 to vector<32x32xf32>
    %c0_16 = arith.constant 0 : index
    %c0_17 = arith.constant 0 : index
    %c0_18 = arith.constant 0 : index
    %13 = vector.load %arg14[%c0_16, %c0_17, %c0_18] : memref<8x32x128xf32, #tpu.memory_space<vmem>>, vector<1x32x128xf32>
    %14 = vector.shape_cast %13 : vector<1x32x128xf32> to vector<32x128xf32>
    %cst_19 = arith.constant dense<0.000000e+00> : vector<32x128xf32>
    %15 = tpu.matmul %12, %9, %cst_19 {dimension_numbers = #tpu.dot_dimension_numbers<[1], [0], [0], [1], [0, 0, 1, 1], [], []>} : vector<32x32xf32>, vector<32x128xf32>, vector<32x128xf32> -> vector<32x128xf32>
    %16 = arith.addf %14, %15 : vector<32x128xf32>
    %cst_20 = arith.constant 5.000000e-01 : f32
    %17 = vector.broadcast %cst_20 : f32 to vector<32x128xf32>
    %18 = arith.mulf %17, %16 : vector<32x128xf32>
    %19 = math.tanh %18 : vector<32x128xf32>
    %cst_21 = arith.constant 5.000000e-01 : f32
    %20 = vector.broadcast %cst_21 : f32 to vector<32x128xf32>
    %21 = arith.mulf %20, %19 : vector<32x128xf32>
    %cst_22 = arith.constant 5.000000e-01 : f32
    %22 = vector.broadcast %cst_22 : f32 to vector<32x128xf32>
    %23 = arith.addf %21, %22 : vector<32x128xf32>
    %24 = math.tanh %16 : vector<32x128xf32>
    %25 = vector.extract_strided_slice %23 {offsets = [0, 0], sizes = [32, 32], strides = [1, 1]} : vector<32x128xf32> to vector<32x32xf32>
    %26 = vector.extract_strided_slice %23 {offsets = [0, 32], sizes = [32, 32], strides = [1, 1]} : vector<32x128xf32> to vector<32x32xf32>
    %27 = vector.extract_strided_slice %24 {offsets = [0, 64], sizes = [32, 32], strides = [1, 1]} : vector<32x128xf32> to vector<32x32xf32>
    %28 = vector.extract_strided_slice %23 {offsets = [0, 96], sizes = [32, 32], strides = [1, 1]} : vector<32x128xf32> to vector<32x32xf32>
    %29 = arith.mulf %26, %12 : vector<32x32xf32>
    %30 = arith.mulf %25, %27 : vector<32x32xf32>
    %31 = arith.addf %29, %30 : vector<32x32xf32>
    %32 = math.tanh %31 : vector<32x32xf32>
    %33 = arith.mulf %28, %32 : vector<32x32xf32>
    %34 = tpu.concatenate %33, %12 in 1 : vector<32x32xf32>, vector<32x32xf32> -> vector<32x64xf32>
    %cst_23 = arith.constant dense<0.000000e+00> : vector<32x128xf32>
    %35 = tpu.matmul %34, %10, %cst_23 {dimension_numbers = #tpu.dot_dimension_numbers<[1], [0], [0], [1], [0, 0, 1, 1], [], []>} : vector<32x64xf32>, vector<64x128xf32>, vector<32x128xf32> -> vector<32x128xf32>
    %36 = vector.broadcast %11 : vector<1x128xf32> to vector<32x128xf32>
    %37 = arith.addf %35, %36 : vector<32x128xf32>
    %cst_24 = arith.constant 5.000000e-01 : f32
    %38 = vector.broadcast %cst_24 : f32 to vector<32x128xf32>
    %39 = arith.mulf %38, %37 : vector<32x128xf32>
    %40 = math.tanh %39 : vector<32x128xf32>
    %cst_25 = arith.constant 5.000000e-01 : f32
    %41 = vector.broadcast %cst_25 : f32 to vector<32x128xf32>
    %42 = arith.mulf %41, %40 : vector<32x128xf32>
    %cst_26 = arith.constant 5.000000e-01 : f32
    %43 = vector.broadcast %cst_26 : f32 to vector<32x128xf32>
    %44 = arith.addf %42, %43 : vector<32x128xf32>
    %45 = math.tanh %37 : vector<32x128xf32>
    %46 = vector.extract_strided_slice %44 {offsets = [0, 0], sizes = [32, 32], strides = [1, 1]} : vector<32x128xf32> to vector<32x32xf32>
    %47 = vector.extract_strided_slice %44 {offsets = [0, 32], sizes = [32, 32], strides = [1, 1]} : vector<32x128xf32> to vector<32x32xf32>
    %48 = vector.extract_strided_slice %45 {offsets = [0, 64], sizes = [32, 32], strides = [1, 1]} : vector<32x128xf32> to vector<32x32xf32>
    %49 = vector.extract_strided_slice %44 {offsets = [0, 96], sizes = [32, 32], strides = [1, 1]} : vector<32x128xf32> to vector<32x32xf32>
    %50 = arith.mulf %47, %12 : vector<32x32xf32>
    %51 = arith.mulf %46, %48 : vector<32x32xf32>
    %52 = arith.addf %50, %51 : vector<32x32xf32>
    %53 = math.tanh %52 : vector<32x32xf32>
    %54 = arith.mulf %49, %53 : vector<32x32xf32>
    %c0_27 = arith.constant 0 : index
    %c0_28 = arith.constant 0 : index
    %c0_29 = arith.constant 0 : index
    %55 = vector.load %arg15[%c0_27, %c0_28, %c0_29] : memref<8x32x32xf32, #tpu.memory_space<vmem>>, vector<1x32x32xf32>
    %56 = vector.shape_cast %55 : vector<1x32x32xf32> to vector<32x32xf32>
    %57 = vector.shape_cast %54 : vector<32x32xf32> to vector<1x32x32xf32>
    tpu.vector_store %arg15[%c0_27, %c0_28, %c0_29], %57 {strides = array<i32>} : memref<8x32x32xf32, #tpu.memory_space<vmem>>, vector<1x32x32xf32>,
    %c1 = arith.constant 1 : index
    %c0_30 = arith.constant 0 : index
    %c0_31 = arith.constant 0 : index
    %58 = vector.load %arg14[%c1, %c0_30, %c0_31] : memref<8x32x128xf32, #tpu.memory_space<vmem>>, vector<1x32x128xf32>
    %59 = vector.shape_cast %58 : vector<1x32x128xf32> to vector<32x128xf32>
    %cst_32 = arith.constant dense<0.000000e+00> : vector<32x128xf32>
    %60 = tpu.matmul %33, %9, %cst_32 {dimension_numbers = #tpu.dot_dimension_numbers<[1], [0], [0], [1], [0, 0, 1, 1], [], []>} : vector<32x32xf32>, vector<32x128xf32>, vector<32x128xf32> -> vector<32x128xf32>
    %61 = arith.addf %59, %60 : vector<32x128xf32>
    %cst_33 = arith.constant 5.000000e-01 : f32
    %62 = vector.broadcast %cst_33 : f32 to vector<32x128xf32>
    %63 = arith.mulf %62, %61 : vector<32x128xf32>
    %64 = math.tanh %63 : vector<32x128xf32>
    %cst_34 = arith.constant 5.000000e-01 : f32
    %65 = vector.broadcast %cst_34 : f32 to vector<32x128xf32>
    %66 = arith.mulf %65, %64 : vector<32x128xf32>
    %cst_35 = arith.constant 5.000000e-01 : f32
    %67 = vector.broadcast %cst_35 : f32 to vector<32x128xf32>
    %68 = arith.addf %66, %67 : vector<32x128xf32>
    %69 = math.tanh %61 : vector<32x128xf32>
    %70 = vector.extract_strided_slice %68 {offsets = [0, 0], sizes = [32, 32], strides = [1, 1]} : vector<32x128xf32> to vector<32x32xf32>
    %71 = vector.extract_strided_slice %68 {offsets = [0, 32], sizes = [32, 32], strides = [1, 1]} : vector<32x128xf32> to vector<32x32xf32>
    %72 = vector.extract_strided_slice %69 {offsets = [0, 64], sizes = [32, 32], strides = [1, 1]} : vector<32x128xf32> to vector<32x32xf32>
    %73 = vector.extract_strided_slice %68 {offsets = [0, 96], sizes = [32, 32], strides = [1, 1]} : vector<32x128xf32> to vector<32x32xf32>
    %74 = arith.mulf %71, %31 : vector<32x32xf32>
    %75 = arith.mulf %70, %72 : vector<32x32xf32>
    %76 = arith.addf %74, %75 : vector<32x32xf32>
    %77 = math.tanh %76 : vector<32x32xf32>
    %78 = arith.mulf %73, %77 : vector<32x32xf32>
    %79 = tpu.concatenate %78, %54 in 1 : vector<32x32xf32>, vector<32x32xf32> -> vector<32x64xf32>
    %cst_36 = arith.constant dense<0.000000e+00> : vector<32x128xf32>
    %80 = tpu.matmul %79, %10, %cst_36 {dimension_numbers = #tpu.dot_dimension_numbers<[1], [0], [0], [1], [0, 0, 1, 1], [], []>} : vector<32x64xf32>, vector<64x128xf32>, vector<32x128xf32> -> vector<32x128xf32>
    %81 = vector.broadcast %11 : vector<1x128xf32> to vector<32x128xf32>
    %82 = arith.addf %80, %81 : vector<32x128xf32>
    %cst_37 = arith.constant 5.000000e-01 : f32
    %83 = vector.broadcast %cst_37 : f32 to vector<32x128xf32>
    %84 = arith.mulf %83, %82 : vector<32x128xf32>
    %85 = math.tanh %84 : vector<32x128xf32>
    %cst_38 = arith.constant 5.000000e-01 : f32
    %86 = vector.broadcast %cst_38 : f32 to vector<32x128xf32>
    %87 = arith.mulf %86, %85 : vector<32x128xf32>
    %cst_39 = arith.constant 5.000000e-01 : f32
    %88 = vector.broadcast %cst_39 : f32 to vector<32x128xf32>
    %89 = arith.addf %87, %88 : vector<32x128xf32>
    %90 = math.tanh %82 : vector<32x128xf32>
    %91 = vector.extract_strided_slice %89 {offsets = [0, 0], sizes = [32, 32], strides = [1, 1]} : vector<32x128xf32> to vector<32x32xf32>
    %92 = vector.extract_strided_slice %89 {offsets = [0, 32], sizes = [32, 32], strides = [1, 1]} : vector<32x128xf32> to vector<32x32xf32>
    %93 = vector.extract_strided_slice %90 {offsets = [0, 64], sizes = [32, 32], strides = [1, 1]} : vector<32x128xf32> to vector<32x32xf32>
    %94 = vector.extract_strided_slice %89 {offsets = [0, 96], sizes = [32, 32], strides = [1, 1]} : vector<32x128xf32> to vector<32x32xf32>
    %95 = arith.mulf %92, %52 : vector<32x32xf32>
    %96 = arith.mulf %91, %93 : vector<32x32xf32>
    %97 = arith.addf %95, %96 : vector<32x32xf32>
    %98 = math.tanh %97 : vector<32x32xf32>
    %99 = arith.mulf %94, %98 : vector<32x32xf32>
    %c1_40 = arith.constant 1 : index
    %c0_41 = arith.constant 0 : index
    %c0_42 = arith.constant 0 : index
    %100 = vector.load %arg15[%c1_40, %c0_41, %c0_42] : memref<8x32x32xf32, #tpu.memory_space<vmem>>, vector<1x32x32xf32>
    %101 = vector.shape_cast %100 : vector<1x32x32xf32> to vector<32x32xf32>
    %102 = vector.shape_cast %99 : vector<32x32xf32> to vector<1x32x32xf32>
    tpu.vector_store %arg15[%c1_40, %c0_41, %c0_42], %102 {strides = array<i32>} : memref<8x32x32xf32, #tpu.memory_space<vmem>>, vector<1x32x32xf32>,
    %c2 = arith.constant 2 : index
    %c0_43 = arith.constant 0 : index
    %c0_44 = arith.constant 0 : index
    %103 = vector.load %arg14[%c2, %c0_43, %c0_44] : memref<8x32x128xf32, #tpu.memory_space<vmem>>, vector<1x32x128xf32>
    %104 = vector.shape_cast %103 : vector<1x32x128xf32> to vector<32x128xf32>
    %cst_45 = arith.constant dense<0.000000e+00> : vector<32x128xf32>
    %105 = tpu.matmul %78, %9, %cst_45 {dimension_numbers = #tpu.dot_dimension_numbers<[1], [0], [0], [1], [0, 0, 1, 1], [], []>} : vector<32x32xf32>, vector<32x128xf32>, vector<32x128xf32> -> vector<32x128xf32>
    %106 = arith.addf %104, %105 : vector<32x128xf32>
    %cst_46 = arith.constant 5.000000e-01 : f32
    %107 = vector.broadcast %cst_46 : f32 to vector<32x128xf32>
    %108 = arith.mulf %107, %106 : vector<32x128xf32>
    %109 = math.tanh %108 : vector<32x128xf32>
    %cst_47 = arith.constant 5.000000e-01 : f32
    %110 = vector.broadcast %cst_47 : f32 to vector<32x128xf32>
    %111 = arith.mulf %110, %109 : vector<32x128xf32>
    %cst_48 = arith.constant 5.000000e-01 : f32
    %112 = vector.broadcast %cst_48 : f32 to vector<32x128xf32>
    %113 = arith.addf %111, %112 : vector<32x128xf32>
    %114 = math.tanh %106 : vector<32x128xf32>
    %115 = vector.extract_strided_slice %113 {offsets = [0, 0], sizes = [32, 32], strides = [1, 1]} : vector<32x128xf32> to vector<32x32xf32>
    %116 = vector.extract_strided_slice %113 {offsets = [0, 32], sizes = [32, 32], strides = [1, 1]} : vector<32x128xf32> to vector<32x32xf32>
    %117 = vector.extract_strided_slice %114 {offsets = [0, 64], sizes = [32, 32], strides = [1, 1]} : vector<32x128xf32> to vector<32x32xf32>
    %118 = vector.extract_strided_slice %113 {offsets = [0, 96], sizes = [32, 32], strides = [1, 1]} : vector<32x128xf32> to vector<32x32xf32>
    %119 = arith.mulf %116, %76 : vector<32x32xf32>
    %120 = arith.mulf %115, %117 : vector<32x32xf32>
    %121 = arith.addf %119, %120 : vector<32x32xf32>
    %122 = math.tanh %121 : vector<32x32xf32>
    %123 = arith.mulf %118, %122 : vector<32x32xf32>
    %124 = tpu.concatenate %123, %99 in 1 : vector<32x32xf32>, vector<32x32xf32> -> vector<32x64xf32>
    %cst_49 = arith.constant dense<0.000000e+00> : vector<32x128xf32>
    %125 = tpu.matmul %124, %10, %cst_49 {dimension_numbers = #tpu.dot_dimension_numbers<[1], [0], [0], [1], [0, 0, 1, 1], [], []>} : vector<32x64xf32>, vector<64x128xf32>, vector<32x128xf32> -> vector<32x128xf32>
    %126 = vector.broadcast %11 : vector<1x128xf32> to vector<32x128xf32>
    %127 = arith.addf %125, %126 : vector<32x128xf32>
    %cst_50 = arith.constant 5.000000e-01 : f32
    %128 = vector.broadcast %cst_50 : f32 to vector<32x128xf32>
    %129 = arith.mulf %128, %127 : vector<32x128xf32>
    %130 = math.tanh %129 : vector<32x128xf32>
    %cst_51 = arith.constant 5.000000e-01 : f32
    %131 = vector.broadcast %cst_51 : f32 to vector<32x128xf32>
    %132 = arith.mulf %131, %130 : vector<32x128xf32>
    %cst_52 = arith.constant 5.000000e-01 : f32
    %133 = vector.broadcast %cst_52 : f32 to vector<32x128xf32>
    %134 = arith.addf %132, %133 : vector<32x128xf32>
    %135 = math.tanh %127 : vector<32x128xf32>
    %136 = vector.extract_strided_slice %134 {offsets = [0, 0], sizes = [32, 32], strides = [1, 1]} : vector<32x128xf32> to vector<32x32xf32>
    %137 = vector.extract_strided_slice %134 {offsets = [0, 32], sizes = [32, 32], strides = [1, 1]} : vector<32x128xf32> to vector<32x32xf32>
    %138 = vector.extract_strided_slice %135 {offsets = [0, 64], sizes = [32, 32], strides = [1, 1]} : vector<32x128xf32> to vector<32x32xf32>
    %139 = vector.extract_strided_slice %134 {offsets = [0, 96], sizes = [32, 32], strides = [1, 1]} : vector<32x128xf32> to vector<32x32xf32>
    %140 = arith.mulf %137, %97 : vector<32x32xf32>
    %141 = arith.mulf %136, %138 : vector<32x32xf32>
    %142 = arith.addf %140, %141 : vector<32x32xf32>
    %143 = math.tanh %142 : vector<32x32xf32>
    %144 = arith.mulf %139, %143 : vector<32x32xf32>
    %c2_53 = arith.constant 2 : index
    %c0_54 = arith.constant 0 : index
    %c0_55 = arith.constant 0 : index
    %145 = vector.load %arg15[%c2_53, %c0_54, %c0_55] : memref<8x32x32xf32, #tpu.memory_space<vmem>>, vector<1x32x32xf32>
    %146 = vector.shape_cast %145 : vector<1x32x32xf32> to vector<32x32xf32>
    %147 = vector.shape_cast %144 : vector<32x32xf32> to vector<1x32x32xf32>
    tpu.vector_store %arg15[%c2_53, %c0_54, %c0_55], %147 {strides = array<i32>} : memref<8x32x32xf32, #tpu.memory_space<vmem>>, vector<1x32x32xf32>,
    %c3 = arith.constant 3 : index
    %c0_56 = arith.constant 0 : index
    %c0_57 = arith.constant 0 : index
    %148 = vector.load %arg14[%c3, %c0_56, %c0_57] : memref<8x32x128xf32, #tpu.memory_space<vmem>>, vector<1x32x128xf32>
    %149 = vector.shape_cast %148 : vector<1x32x128xf32> to vector<32x128xf32>
    %cst_58 = arith.constant dense<0.000000e+00> : vector<32x128xf32>
    %150 = tpu.matmul %123, %9, %cst_58 {dimension_numbers = #tpu.dot_dimension_numbers<[1], [0], [0], [1], [0, 0, 1, 1], [], []>} : vector<32x32xf32>, vector<32x128xf32>, vector<32x128xf32> -> vector<32x128xf32>
    %151 = arith.addf %149, %150 : vector<32x128xf32>
    %cst_59 = arith.constant 5.000000e-01 : f32
    %152 = vector.broadcast %cst_59 : f32 to vector<32x128xf32>
    %153 = arith.mulf %152, %151 : vector<32x128xf32>
    %154 = math.tanh %153 : vector<32x128xf32>
    %cst_60 = arith.constant 5.000000e-01 : f32
    %155 = vector.broadcast %cst_60 : f32 to vector<32x128xf32>
    %156 = arith.mulf %155, %154 : vector<32x128xf32>
    %cst_61 = arith.constant 5.000000e-01 : f32
    %157 = vector.broadcast %cst_61 : f32 to vector<32x128xf32>
    %158 = arith.addf %156, %157 : vector<32x128xf32>
    %159 = math.tanh %151 : vector<32x128xf32>
    %160 = vector.extract_strided_slice %158 {offsets = [0, 0], sizes = [32, 32], strides = [1, 1]} : vector<32x128xf32> to vector<32x32xf32>
    %161 = vector.extract_strided_slice %158 {offsets = [0, 32], sizes = [32, 32], strides = [1, 1]} : vector<32x128xf32> to vector<32x32xf32>
    %162 = vector.extract_strided_slice %159 {offsets = [0, 64], sizes = [32, 32], strides = [1, 1]} : vector<32x128xf32> to vector<32x32xf32>
    %163 = vector.extract_strided_slice %158 {offsets = [0, 96], sizes = [32, 32], strides = [1, 1]} : vector<32x128xf32> to vector<32x32xf32>
    %164 = arith.mulf %161, %121 : vector<32x32xf32>
    %165 = arith.mulf %160, %162 : vector<32x32xf32>
    %166 = arith.addf %164, %165 : vector<32x32xf32>
    %167 = math.tanh %166 : vector<32x32xf32>
    %168 = arith.mulf %163, %167 : vector<32x32xf32>
    %169 = tpu.concatenate %168, %144 in 1 : vector<32x32xf32>, vector<32x32xf32> -> vector<32x64xf32>
    %cst_62 = arith.constant dense<0.000000e+00> : vector<32x128xf32>
    %170 = tpu.matmul %169, %10, %cst_62 {dimension_numbers = #tpu.dot_dimension_numbers<[1], [0], [0], [1], [0, 0, 1, 1], [], []>} : vector<32x64xf32>, vector<64x128xf32>, vector<32x128xf32> -> vector<32x128xf32>
    %171 = vector.broadcast %11 : vector<1x128xf32> to vector<32x128xf32>
    %172 = arith.addf %170, %171 : vector<32x128xf32>
    %cst_63 = arith.constant 5.000000e-01 : f32
    %173 = vector.broadcast %cst_63 : f32 to vector<32x128xf32>
    %174 = arith.mulf %173, %172 : vector<32x128xf32>
    %175 = math.tanh %174 : vector<32x128xf32>
    %cst_64 = arith.constant 5.000000e-01 : f32
    %176 = vector.broadcast %cst_64 : f32 to vector<32x128xf32>
    %177 = arith.mulf %176, %175 : vector<32x128xf32>
    %cst_65 = arith.constant 5.000000e-01 : f32
    %178 = vector.broadcast %cst_65 : f32 to vector<32x128xf32>
    %179 = arith.addf %177, %178 : vector<32x128xf32>
    %180 = math.tanh %172 : vector<32x128xf32>
    %181 = vector.extract_strided_slice %179 {offsets = [0, 0], sizes = [32, 32], strides = [1, 1]} : vector<32x128xf32> to vector<32x32xf32>
    %182 = vector.extract_strided_slice %179 {offsets = [0, 32], sizes = [32, 32], strides = [1, 1]} : vector<32x128xf32> to vector<32x32xf32>
    %183 = vector.extract_strided_slice %180 {offsets = [0, 64], sizes = [32, 32], strides = [1, 1]} : vector<32x128xf32> to vector<32x32xf32>
    %184 = vector.extract_strided_slice %179 {offsets = [0, 96], sizes = [32, 32], strides = [1, 1]} : vector<32x128xf32> to vector<32x32xf32>
    %185 = arith.mulf %182, %142 : vector<32x32xf32>
    %186 = arith.mulf %181, %183 : vector<32x32xf32>
    %187 = arith.addf %185, %186 : vector<32x32xf32>
    %188 = math.tanh %187 : vector<32x32xf32>
    %189 = arith.mulf %184, %188 : vector<32x32xf32>
    %c3_66 = arith.constant 3 : index
    %c0_67 = arith.constant 0 : index
    %c0_68 = arith.constant 0 : index
    %190 = vector.load %arg15[%c3_66, %c0_67, %c0_68] : memref<8x32x32xf32, #tpu.memory_space<vmem>>, vector<1x32x32xf32>
    %191 = vector.shape_cast %190 : vector<1x32x32xf32> to vector<32x32xf32>
    %192 = vector.shape_cast %189 : vector<32x32xf32> to vector<1x32x32xf32>
    tpu.vector_store %arg15[%c3_66, %c0_67, %c0_68], %192 {strides = array<i32>} : memref<8x32x32xf32, #tpu.memory_space<vmem>>, vector<1x32x32xf32>,
    %c4 = arith.constant 4 : index
    %c0_69 = arith.constant 0 : index
    %c0_70 = arith.constant 0 : index
    %193 = vector.load %arg14[%c4, %c0_69, %c0_70] : memref<8x32x128xf32, #tpu.memory_space<vmem>>, vector<1x32x128xf32>
    %194 = vector.shape_cast %193 : vector<1x32x128xf32> to vector<32x128xf32>
    %cst_71 = arith.constant dense<0.000000e+00> : vector<32x128xf32>
    %195 = tpu.matmul %168, %9, %cst_71 {dimension_numbers = #tpu.dot_dimension_numbers<[1], [0], [0], [1], [0, 0, 1, 1], [], []>} : vector<32x32xf32>, vector<32x128xf32>, vector<32x128xf32> -> vector<32x128xf32>
    %196 = arith.addf %194, %195 : vector<32x128xf32>
    %cst_72 = arith.constant 5.000000e-01 : f32
    %197 = vector.broadcast %cst_72 : f32 to vector<32x128xf32>
    %198 = arith.mulf %197, %196 : vector<32x128xf32>
    %199 = math.tanh %198 : vector<32x128xf32>
    %cst_73 = arith.constant 5.000000e-01 : f32
    %200 = vector.broadcast %cst_73 : f32 to vector<32x128xf32>
    %201 = arith.mulf %200, %199 : vector<32x128xf32>
    %cst_74 = arith.constant 5.000000e-01 : f32
    %202 = vector.broadcast %cst_74 : f32 to vector<32x128xf32>
    %203 = arith.addf %201, %202 : vector<32x128xf32>
    %204 = math.tanh %196 : vector<32x128xf32>
    %205 = vector.extract_strided_slice %203 {offsets = [0, 0], sizes = [32, 32], strides = [1, 1]} : vector<32x128xf32> to vector<32x32xf32>
    %206 = vector.extract_strided_slice %203 {offsets = [0, 32], sizes = [32, 32], strides = [1, 1]} : vector<32x128xf32> to vector<32x32xf32>
    %207 = vector.extract_strided_slice %204 {offsets = [0, 64], sizes = [32, 32], strides = [1, 1]} : vector<32x128xf32> to vector<32x32xf32>
    %208 = vector.extract_strided_slice %203 {offsets = [0, 96], sizes = [32, 32], strides = [1, 1]} : vector<32x128xf32> to vector<32x32xf32>
    %209 = arith.mulf %206, %166 : vector<32x32xf32>
    %210 = arith.mulf %205, %207 : vector<32x32xf32>
    %211 = arith.addf %209, %210 : vector<32x32xf32>
    %212 = math.tanh %211 : vector<32x32xf32>
    %213 = arith.mulf %208, %212 : vector<32x32xf32>
    %214 = tpu.concatenate %213, %189 in 1 : vector<32x32xf32>, vector<32x32xf32> -> vector<32x64xf32>
    %cst_75 = arith.constant dense<0.000000e+00> : vector<32x128xf32>
    %215 = tpu.matmul %214, %10, %cst_75 {dimension_numbers = #tpu.dot_dimension_numbers<[1], [0], [0], [1], [0, 0, 1, 1], [], []>} : vector<32x64xf32>, vector<64x128xf32>, vector<32x128xf32> -> vector<32x128xf32>
    %216 = vector.broadcast %11 : vector<1x128xf32> to vector<32x128xf32>
    %217 = arith.addf %215, %216 : vector<32x128xf32>
    %cst_76 = arith.constant 5.000000e-01 : f32
    %218 = vector.broadcast %cst_76 : f32 to vector<32x128xf32>
    %219 = arith.mulf %218, %217 : vector<32x128xf32>
    %220 = math.tanh %219 : vector<32x128xf32>
    %cst_77 = arith.constant 5.000000e-01 : f32
    %221 = vector.broadcast %cst_77 : f32 to vector<32x128xf32>
    %222 = arith.mulf %221, %220 : vector<32x128xf32>
    %cst_78 = arith.constant 5.000000e-01 : f32
    %223 = vector.broadcast %cst_78 : f32 to vector<32x128xf32>
    %224 = arith.addf %222, %223 : vector<32x128xf32>
    %225 = math.tanh %217 : vector<32x128xf32>
    %226 = vector.extract_strided_slice %224 {offsets = [0, 0], sizes = [32, 32], strides = [1, 1]} : vector<32x128xf32> to vector<32x32xf32>
    %227 = vector.extract_strided_slice %224 {offsets = [0, 32], sizes = [32, 32], strides = [1, 1]} : vector<32x128xf32> to vector<32x32xf32>
    %228 = vector.extract_strided_slice %225 {offsets = [0, 64], sizes = [32, 32], strides = [1, 1]} : vector<32x128xf32> to vector<32x32xf32>
    %229 = vector.extract_strided_slice %224 {offsets = [0, 96], sizes = [32, 32], strides = [1, 1]} : vector<32x128xf32> to vector<32x32xf32>
    %230 = arith.mulf %227, %187 : vector<32x32xf32>
    %231 = arith.mulf %226, %228 : vector<32x32xf32>
    %232 = arith.addf %230, %231 : vector<32x32xf32>
    %233 = math.tanh %232 : vector<32x32xf32>
    %234 = arith.mulf %229, %233 : vector<32x32xf32>
    %c4_79 = arith.constant 4 : index
    %c0_80 = arith.constant 0 : index
    %c0_81 = arith.constant 0 : index
    %235 = vector.load %arg15[%c4_79, %c0_80, %c0_81] : memref<8x32x32xf32, #tpu.memory_space<vmem>>, vector<1x32x32xf32>
    %236 = vector.shape_cast %235 : vector<1x32x32xf32> to vector<32x32xf32>
    %237 = vector.shape_cast %234 : vector<32x32xf32> to vector<1x32x32xf32>
    tpu.vector_store %arg15[%c4_79, %c0_80, %c0_81], %237 {strides = array<i32>} : memref<8x32x32xf32, #tpu.memory_space<vmem>>, vector<1x32x32xf32>,
    %c5 = arith.constant 5 : index
    %c0_82 = arith.constant 0 : index
    %c0_83 = arith.constant 0 : index
    %238 = vector.load %arg14[%c5, %c0_82, %c0_83] : memref<8x32x128xf32, #tpu.memory_space<vmem>>, vector<1x32x128xf32>
    %239 = vector.shape_cast %238 : vector<1x32x128xf32> to vector<32x128xf32>
    %cst_84 = arith.constant dense<0.000000e+00> : vector<32x128xf32>
    %240 = tpu.matmul %213, %9, %cst_84 {dimension_numbers = #tpu.dot_dimension_numbers<[1], [0], [0], [1], [0, 0, 1, 1], [], []>} : vector<32x32xf32>, vector<32x128xf32>, vector<32x128xf32> -> vector<32x128xf32>
    %241 = arith.addf %239, %240 : vector<32x128xf32>
    %cst_85 = arith.constant 5.000000e-01 : f32
    %242 = vector.broadcast %cst_85 : f32 to vector<32x128xf32>
    %243 = arith.mulf %242, %241 : vector<32x128xf32>
    %244 = math.tanh %243 : vector<32x128xf32>
    %cst_86 = arith.constant 5.000000e-01 : f32
    %245 = vector.broadcast %cst_86 : f32 to vector<32x128xf32>
    %246 = arith.mulf %245, %244 : vector<32x128xf32>
    %cst_87 = arith.constant 5.000000e-01 : f32
    %247 = vector.broadcast %cst_87 : f32 to vector<32x128xf32>
    %248 = arith.addf %246, %247 : vector<32x128xf32>
    %249 = math.tanh %241 : vector<32x128xf32>
    %250 = vector.extract_strided_slice %248 {offsets = [0, 0], sizes = [32, 32], strides = [1, 1]} : vector<32x128xf32> to vector<32x32xf32>
    %251 = vector.extract_strided_slice %248 {offsets = [0, 32], sizes = [32, 32], strides = [1, 1]} : vector<32x128xf32> to vector<32x32xf32>
    %252 = vector.extract_strided_slice %249 {offsets = [0, 64], sizes = [32, 32], strides = [1, 1]} : vector<32x128xf32> to vector<32x32xf32>
    %253 = vector.extract_strided_slice %248 {offsets = [0, 96], sizes = [32, 32], strides = [1, 1]} : vector<32x128xf32> to vector<32x32xf32>
    %254 = arith.mulf %251, %211 : vector<32x32xf32>
    %255 = arith.mulf %250, %252 : vector<32x32xf32>
    %256 = arith.addf %254, %255 : vector<32x32xf32>
    %257 = math.tanh %256 : vector<32x32xf32>
    %258 = arith.mulf %253, %257 : vector<32x32xf32>
    %259 = tpu.concatenate %258, %234 in 1 : vector<32x32xf32>, vector<32x32xf32> -> vector<32x64xf32>
    %cst_88 = arith.constant dense<0.000000e+00> : vector<32x128xf32>
    %260 = tpu.matmul %259, %10, %cst_88 {dimension_numbers = #tpu.dot_dimension_numbers<[1], [0], [0], [1], [0, 0, 1, 1], [], []>} : vector<32x64xf32>, vector<64x128xf32>, vector<32x128xf32> -> vector<32x128xf32>
    %261 = vector.broadcast %11 : vector<1x128xf32> to vector<32x128xf32>
    %262 = arith.addf %260, %261 : vector<32x128xf32>
    %cst_89 = arith.constant 5.000000e-01 : f32
    %263 = vector.broadcast %cst_89 : f32 to vector<32x128xf32>
    %264 = arith.mulf %263, %262 : vector<32x128xf32>
    %265 = math.tanh %264 : vector<32x128xf32>
    %cst_90 = arith.constant 5.000000e-01 : f32
    %266 = vector.broadcast %cst_90 : f32 to vector<32x128xf32>
    %267 = arith.mulf %266, %265 : vector<32x128xf32>
    %cst_91 = arith.constant 5.000000e-01 : f32
    %268 = vector.broadcast %cst_91 : f32 to vector<32x128xf32>
    %269 = arith.addf %267, %268 : vector<32x128xf32>
    %270 = math.tanh %262 : vector<32x128xf32>
    %271 = vector.extract_strided_slice %269 {offsets = [0, 0], sizes = [32, 32], strides = [1, 1]} : vector<32x128xf32> to vector<32x32xf32>
    %272 = vector.extract_strided_slice %269 {offsets = [0, 32], sizes = [32, 32], strides = [1, 1]} : vector<32x128xf32> to vector<32x32xf32>
    %273 = vector.extract_strided_slice %270 {offsets = [0, 64], sizes = [32, 32], strides = [1, 1]} : vector<32x128xf32> to vector<32x32xf32>
    %274 = vector.extract_strided_slice %269 {offsets = [0, 96], sizes = [32, 32], strides = [1, 1]} : vector<32x128xf32> to vector<32x32xf32>
    %275 = arith.mulf %272, %232 : vector<32x32xf32>
    %276 = arith.mulf %271, %273 : vector<32x32xf32>
    %277 = arith.addf %275, %276 : vector<32x32xf32>
    %278 = math.tanh %277 : vector<32x32xf32>
    %279 = arith.mulf %274, %278 : vector<32x32xf32>
    %c5_92 = arith.constant 5 : index
    %c0_93 = arith.constant 0 : index
    %c0_94 = arith.constant 0 : index
    %280 = vector.load %arg15[%c5_92, %c0_93, %c0_94] : memref<8x32x32xf32, #tpu.memory_space<vmem>>, vector<1x32x32xf32>
    %281 = vector.shape_cast %280 : vector<1x32x32xf32> to vector<32x32xf32>
    %282 = vector.shape_cast %279 : vector<32x32xf32> to vector<1x32x32xf32>
    tpu.vector_store %arg15[%c5_92, %c0_93, %c0_94], %282 {strides = array<i32>} : memref<8x32x32xf32, #tpu.memory_space<vmem>>, vector<1x32x32xf32>,
    %c6 = arith.constant 6 : index
    %c0_95 = arith.constant 0 : index
    %c0_96 = arith.constant 0 : index
    %283 = vector.load %arg14[%c6, %c0_95, %c0_96] : memref<8x32x128xf32, #tpu.memory_space<vmem>>, vector<1x32x128xf32>
    %284 = vector.shape_cast %283 : vector<1x32x128xf32> to vector<32x128xf32>
    %cst_97 = arith.constant dense<0.000000e+00> : vector<32x128xf32>
    %285 = tpu.matmul %258, %9, %cst_97 {dimension_numbers = #tpu.dot_dimension_numbers<[1], [0], [0], [1], [0, 0, 1, 1], [], []>} : vector<32x32xf32>, vector<32x128xf32>, vector<32x128xf32> -> vector<32x128xf32>
    %286 = arith.addf %284, %285 : vector<32x128xf32>
    %cst_98 = arith.constant 5.000000e-01 : f32
    %287 = vector.broadcast %cst_98 : f32 to vector<32x128xf32>
    %288 = arith.mulf %287, %286 : vector<32x128xf32>
    %289 = math.tanh %288 : vector<32x128xf32>
    %cst_99 = arith.constant 5.000000e-01 : f32
    %290 = vector.broadcast %cst_99 : f32 to vector<32x128xf32>
    %291 = arith.mulf %290, %289 : vector<32x128xf32>
    %cst_100 = arith.constant 5.000000e-01 : f32
    %292 = vector.broadcast %cst_100 : f32 to vector<32x128xf32>
    %293 = arith.addf %291, %292 : vector<32x128xf32>
    %294 = math.tanh %286 : vector<32x128xf32>
    %295 = vector.extract_strided_slice %293 {offsets = [0, 0], sizes = [32, 32], strides = [1, 1]} : vector<32x128xf32> to vector<32x32xf32>
    %296 = vector.extract_strided_slice %293 {offsets = [0, 32], sizes = [32, 32], strides = [1, 1]} : vector<32x128xf32> to vector<32x32xf32>
    %297 = vector.extract_strided_slice %294 {offsets = [0, 64], sizes = [32, 32], strides = [1, 1]} : vector<32x128xf32> to vector<32x32xf32>
    %298 = vector.extract_strided_slice %293 {offsets = [0, 96], sizes = [32, 32], strides = [1, 1]} : vector<32x128xf32> to vector<32x32xf32>
    %299 = arith.mulf %296, %256 : vector<32x32xf32>
    %300 = arith.mulf %295, %297 : vector<32x32xf32>
    %301 = arith.addf %299, %300 : vector<32x32xf32>
    %302 = math.tanh %301 : vector<32x32xf32>
    %303 = arith.mulf %298, %302 : vector<32x32xf32>
    %304 = tpu.concatenate %303, %279 in 1 : vector<32x32xf32>, vector<32x32xf32> -> vector<32x64xf32>
    %cst_101 = arith.constant dense<0.000000e+00> : vector<32x128xf32>
    %305 = tpu.matmul %304, %10, %cst_101 {dimension_numbers = #tpu.dot_dimension_numbers<[1], [0], [0], [1], [0, 0, 1, 1], [], []>} : vector<32x64xf32>, vector<64x128xf32>, vector<32x128xf32> -> vector<32x128xf32>
    %306 = vector.broadcast %11 : vector<1x128xf32> to vector<32x128xf32>
    %307 = arith.addf %305, %306 : vector<32x128xf32>
    %cst_102 = arith.constant 5.000000e-01 : f32
    %308 = vector.broadcast %cst_102 : f32 to vector<32x128xf32>
    %309 = arith.mulf %308, %307 : vector<32x128xf32>
    %310 = math.tanh %309 : vector<32x128xf32>
    %cst_103 = arith.constant 5.000000e-01 : f32
    %311 = vector.broadcast %cst_103 : f32 to vector<32x128xf32>
    %312 = arith.mulf %311, %310 : vector<32x128xf32>
    %cst_104 = arith.constant 5.000000e-01 : f32
    %313 = vector.broadcast %cst_104 : f32 to vector<32x128xf32>
    %314 = arith.addf %312, %313 : vector<32x128xf32>
    %315 = math.tanh %307 : vector<32x128xf32>
    %316 = vector.extract_strided_slice %314 {offsets = [0, 0], sizes = [32, 32], strides = [1, 1]} : vector<32x128xf32> to vector<32x32xf32>
    %317 = vector.extract_strided_slice %314 {offsets = [0, 32], sizes = [32, 32], strides = [1, 1]} : vector<32x128xf32> to vector<32x32xf32>
    %318 = vector.extract_strided_slice %315 {offsets = [0, 64], sizes = [32, 32], strides = [1, 1]} : vector<32x128xf32> to vector<32x32xf32>
    %319 = vector.extract_strided_slice %314 {offsets = [0, 96], sizes = [32, 32], strides = [1, 1]} : vector<32x128xf32> to vector<32x32xf32>
    %320 = arith.mulf %317, %277 : vector<32x32xf32>
    %321 = arith.mulf %316, %318 : vector<32x32xf32>
    %322 = arith.addf %320, %321 : vector<32x32xf32>
    %323 = math.tanh %322 : vector<32x32xf32>
    %324 = arith.mulf %319, %323 : vector<32x32xf32>
    %c6_105 = arith.constant 6 : index
    %c0_106 = arith.constant 0 : index
    %c0_107 = arith.constant 0 : index
    %325 = vector.load %arg15[%c6_105, %c0_106, %c0_107] : memref<8x32x32xf32, #tpu.memory_space<vmem>>, vector<1x32x32xf32>
    %326 = vector.shape_cast %325 : vector<1x32x32xf32> to vector<32x32xf32>
    %327 = vector.shape_cast %324 : vector<32x32xf32> to vector<1x32x32xf32>
    tpu.vector_store %arg15[%c6_105, %c0_106, %c0_107], %327 {strides = array<i32>} : memref<8x32x32xf32, #tpu.memory_space<vmem>>, vector<1x32x32xf32>,
    %c7 = arith.constant 7 : index
    %c0_108 = arith.constant 0 : index
    %c0_109 = arith.constant 0 : index
    %328 = vector.load %arg14[%c7, %c0_108, %c0_109] : memref<8x32x128xf32, #tpu.memory_space<vmem>>, vector<1x32x128xf32>
    %329 = vector.shape_cast %328 : vector<1x32x128xf32> to vector<32x128xf32>
    %cst_110 = arith.constant dense<0.000000e+00> : vector<32x128xf32>
    %330 = tpu.matmul %303, %9, %cst_110 {dimension_numbers = #tpu.dot_dimension_numbers<[1], [0], [0], [1], [0, 0, 1, 1], [], []>} : vector<32x32xf32>, vector<32x128xf32>, vector<32x128xf32> -> vector<32x128xf32>
    %331 = arith.addf %329, %330 : vector<32x128xf32>
    %cst_111 = arith.constant 5.000000e-01 : f32
    %332 = vector.broadcast %cst_111 : f32 to vector<32x128xf32>
    %333 = arith.mulf %332, %331 : vector<32x128xf32>
    %334 = math.tanh %333 : vector<32x128xf32>
    %cst_112 = arith.constant 5.000000e-01 : f32
    %335 = vector.broadcast %cst_112 : f32 to vector<32x128xf32>
    %336 = arith.mulf %335, %334 : vector<32x128xf32>
    %cst_113 = arith.constant 5.000000e-01 : f32
    %337 = vector.broadcast %cst_113 : f32 to vector<32x128xf32>
    %338 = arith.addf %336, %337 : vector<32x128xf32>
    %339 = math.tanh %331 : vector<32x128xf32>
    %340 = vector.extract_strided_slice %338 {offsets = [0, 0], sizes = [32, 32], strides = [1, 1]} : vector<32x128xf32> to vector<32x32xf32>
    %341 = vector.extract_strided_slice %338 {offsets = [0, 32], sizes = [32, 32], strides = [1, 1]} : vector<32x128xf32> to vector<32x32xf32>
    %342 = vector.extract_strided_slice %339 {offsets = [0, 64], sizes = [32, 32], strides = [1, 1]} : vector<32x128xf32> to vector<32x32xf32>
    %343 = vector.extract_strided_slice %338 {offsets = [0, 96], sizes = [32, 32], strides = [1, 1]} : vector<32x128xf32> to vector<32x32xf32>
    %344 = arith.mulf %341, %301 : vector<32x32xf32>
    %345 = arith.mulf %340, %342 : vector<32x32xf32>
    %346 = arith.addf %344, %345 : vector<32x32xf32>
    %347 = math.tanh %346 : vector<32x32xf32>
    %348 = arith.mulf %343, %347 : vector<32x32xf32>
    %349 = tpu.concatenate %348, %324 in 1 : vector<32x32xf32>, vector<32x32xf32> -> vector<32x64xf32>
    %cst_114 = arith.constant dense<0.000000e+00> : vector<32x128xf32>
    %350 = tpu.matmul %349, %10, %cst_114 {dimension_numbers = #tpu.dot_dimension_numbers<[1], [0], [0], [1], [0, 0, 1, 1], [], []>} : vector<32x64xf32>, vector<64x128xf32>, vector<32x128xf32> -> vector<32x128xf32>
    %351 = vector.broadcast %11 : vector<1x128xf32> to vector<32x128xf32>
    %352 = arith.addf %350, %351 : vector<32x128xf32>
    %cst_115 = arith.constant 5.000000e-01 : f32
    %353 = vector.broadcast %cst_115 : f32 to vector<32x128xf32>
    %354 = arith.mulf %353, %352 : vector<32x128xf32>
    %355 = math.tanh %354 : vector<32x128xf32>
    %cst_116 = arith.constant 5.000000e-01 : f32
    %356 = vector.broadcast %cst_116 : f32 to vector<32x128xf32>
    %357 = arith.mulf %356, %355 : vector<32x128xf32>
    %cst_117 = arith.constant 5.000000e-01 : f32
    %358 = vector.broadcast %cst_117 : f32 to vector<32x128xf32>
    %359 = arith.addf %357, %358 : vector<32x128xf32>
    %360 = math.tanh %352 : vector<32x128xf32>
    %361 = vector.extract_strided_slice %359 {offsets = [0, 0], sizes = [32, 32], strides = [1, 1]} : vector<32x128xf32> to vector<32x32xf32>
    %362 = vector.extract_strided_slice %359 {offsets = [0, 32], sizes = [32, 32], strides = [1, 1]} : vector<32x128xf32> to vector<32x32xf32>
    %363 = vector.extract_strided_slice %360 {offsets = [0, 64], sizes = [32, 32], strides = [1, 1]} : vector<32x128xf32> to vector<32x32xf32>
    %364 = vector.extract_strided_slice %359 {offsets = [0, 96], sizes = [32, 32], strides = [1, 1]} : vector<32x128xf32> to vector<32x32xf32>
    %365 = arith.mulf %362, %322 : vector<32x32xf32>
    %366 = arith.mulf %361, %363 : vector<32x32xf32>
    %367 = arith.addf %365, %366 : vector<32x32xf32>
    %368 = math.tanh %367 : vector<32x32xf32>
    %369 = arith.mulf %364, %368 : vector<32x32xf32>
    %c7_118 = arith.constant 7 : index
    %c0_119 = arith.constant 0 : index
    %c0_120 = arith.constant 0 : index
    %370 = vector.load %arg15[%c7_118, %c0_119, %c0_120] : memref<8x32x32xf32, #tpu.memory_space<vmem>>, vector<1x32x32xf32>
    %371 = vector.shape_cast %370 : vector<1x32x32xf32> to vector<32x32xf32>
    %372 = vector.shape_cast %369 : vector<32x32xf32> to vector<1x32x32xf32>
    tpu.vector_store %arg15[%c7_118, %c0_119, %c0_120], %372 {strides = array<i32>} : memref<8x32x32xf32, #tpu.memory_space<vmem>>, vector<1x32x32xf32>,
    %c0_121 = arith.constant 0 : index
    %c0_122 = arith.constant 0 : index
    %c0_123 = arith.constant 0 : index
    %373 = vector.load %arg15[%c0_121, %c0_122, %c0_123] : memref<8x32x32xf32, #tpu.memory_space<vmem>>, vector<8x32x32xf32>
    %374 = vector.shape_cast %373 : vector<8x32x32xf32> to vector<256x32xf32>
    %c0_124 = arith.constant 0 : index
    %c0_125 = arith.constant 0 : index
    %375 = vector.load %arg7[%c0_124, %c0_125] : memref<32x10xf32, #tpu.memory_space<vmem>>, vector<32x10xf32>
    %cst_126 = arith.constant dense<0.000000e+00> : vector<256x10xf32>
    %376 = tpu.matmul %374, %375, %cst_126 {dimension_numbers = #tpu.dot_dimension_numbers<[1], [0], [0], [1], [0, 0, 1, 1], [], []>} : vector<256x32xf32>, vector<32x10xf32>, vector<256x10xf32> -> vector<256x10xf32>
    %c0_127 = arith.constant 0 : index
    %c0_128 = arith.constant 0 : index
    %377 = vector.load %arg8[%c0_127, %c0_128] : memref<1x10xf32, #tpu.memory_space<vmem>>, vector<1x10xf32>
    %378 = vector.broadcast %377 : vector<1x10xf32> to vector<256x10xf32>
    %379 = arith.addf %376, %378 : vector<256x10xf32>
    %cst_129 = arith.constant 0.000000e+00 : f32
    %380 = vector.broadcast %cst_129 : f32 to vector<256x10xf32>
    %381 = arith.cmpf ogt, %379, %380 : vector<256x10xf32>
    %382 = math.exp %379 : vector<256x10xf32>
    %cst_130 = arith.constant 1.000000e+00 : f32
    %383 = vector.broadcast %cst_130 : f32 to vector<256x10xf32>
    %384 = arith.subf %382, %383 : vector<256x10xf32>
    %cst_131 = arith.constant 1.67326319 : f32
    %385 = vector.broadcast %cst_131 : f32 to vector<256x10xf32>
    %386 = arith.mulf %385, %384 : vector<256x10xf32>
    %387 = arith.select %381, %379, %386 : vector<256x10xi1>, vector<256x10xf32>
    %cst_132 = arith.constant 1.05070102 : f32
    %388 = vector.broadcast %cst_132 : f32 to vector<256x10xf32>
    %389 = arith.mulf %388, %387 : vector<256x10xf32>
    %390 = vector.shape_cast %389 : vector<256x10xf32> to vector<8x32x10xf32>
    %cst_133 = arith.constant 0.000000e+00 : f32
    %391 = vector.broadcast %cst_133 : f32 to vector<32x128xf32>
    %392 = vector.extract_strided_slice %390 {offsets = [0, 0, 0], sizes = [1, 32, 10], strides = [1, 1, 1]} : vector<8x32x10xf32> to vector<1x32x10xf32>
    %393 = vector.shape_cast %392 : vector<1x32x10xf32> to vector<32x10xf32>
    %c0_134 = arith.constant 0 : index
    %c0_135 = arith.constant 0 : index
    %c0_136 = arith.constant 0 : index
    %394 = vector.load %arg9[%c0_134, %c0_135, %c0_136] : memref<8x10x128xf32, #tpu.memory_space<vmem>>, vector<1x10x128xf32>
    %395 = vector.shape_cast %394 : vector<1x10x128xf32> to vector<10x128xf32>
    %cst_137 = arith.constant dense<0.000000e+00> : vector<32x128xf32>
    %396 = tpu.matmul %393, %395, %cst_137 {dimension_numbers = #tpu.dot_dimension_numbers<[1], [0], [0], [1], [0, 0, 1, 1], [], []>} : vector<32x10xf32>, vector<10x128xf32>, vector<32x128xf32> -> vector<32x128xf32>
    %397 = arith.addf %391, %396 : vector<32x128xf32>
    %398 = vector.extract_strided_slice %390 {offsets = [1, 0, 0], sizes = [1, 32, 10], strides = [1, 1, 1]} : vector<8x32x10xf32> to vector<1x32x10xf32>
    %399 = vector.shape_cast %398 : vector<1x32x10xf32> to vector<32x10xf32>
    %c1_138 = arith.constant 1 : index
    %c0_139 = arith.constant 0 : index
    %c0_140 = arith.constant 0 : index
    %400 = vector.load %arg9[%c1_138, %c0_139, %c0_140] : memref<8x10x128xf32, #tpu.memory_space<vmem>>, vector<1x10x128xf32>
    %401 = vector.shape_cast %400 : vector<1x10x128xf32> to vector<10x128xf32>
    %cst_141 = arith.constant dense<0.000000e+00> : vector<32x128xf32>
    %402 = tpu.matmul %399, %401, %cst_141 {dimension_numbers = #tpu.dot_dimension_numbers<[1], [0], [0], [1], [0, 0, 1, 1], [], []>} : vector<32x10xf32>, vector<10x128xf32>, vector<32x128xf32> -> vector<32x128xf32>
    %403 = arith.addf %397, %402 : vector<32x128xf32>
    %404 = vector.extract_strided_slice %390 {offsets = [2, 0, 0], sizes = [1, 32, 10], strides = [1, 1, 1]} : vector<8x32x10xf32> to vector<1x32x10xf32>
    %405 = vector.shape_cast %404 : vector<1x32x10xf32> to vector<32x10xf32>
    %c2_142 = arith.constant 2 : index
    %c0_143 = arith.constant 0 : index
    %c0_144 = arith.constant 0 : index
    %406 = vector.load %arg9[%c2_142, %c0_143, %c0_144] : memref<8x10x128xf32, #tpu.memory_space<vmem>>, vector<1x10x128xf32>
    %407 = vector.shape_cast %406 : vector<1x10x128xf32> to vector<10x128xf32>
    %cst_145 = arith.constant dense<0.000000e+00> : vector<32x128xf32>
    %408 = tpu.matmul %405, %407, %cst_145 {dimension_numbers = #tpu.dot_dimension_numbers<[1], [0], [0], [1], [0, 0, 1, 1], [], []>} : vector<32x10xf32>, vector<10x128xf32>, vector<32x128xf32> -> vector<32x128xf32>
    %409 = arith.addf %403, %408 : vector<32x128xf32>
    %410 = vector.extract_strided_slice %390 {offsets = [3, 0, 0], sizes = [1, 32, 10], strides = [1, 1, 1]} : vector<8x32x10xf32> to vector<1x32x10xf32>
    %411 = vector.shape_cast %410 : vector<1x32x10xf32> to vector<32x10xf32>
    %c3_146 = arith.constant 3 : index
    %c0_147 = arith.constant 0 : index
    %c0_148 = arith.constant 0 : index
    %412 = vector.load %arg9[%c3_146, %c0_147, %c0_148] : memref<8x10x128xf32, #tpu.memory_space<vmem>>, vector<1x10x128xf32>
    %413 = vector.shape_cast %412 : vector<1x10x128xf32> to vector<10x128xf32>
    %cst_149 = arith.constant dense<0.000000e+00> : vector<32x128xf32>
    %414 = tpu.matmul %411, %413, %cst_149 {dimension_numbers = #tpu.dot_dimension_numbers<[1], [0], [0], [1], [0, 0, 1, 1], [], []>} : vector<32x10xf32>, vector<10x128xf32>, vector<32x128xf32> -> vector<32x128xf32>
    %415 = arith.addf %409, %414 : vector<32x128xf32>
    %416 = vector.extract_strided_slice %390 {offsets = [4, 0, 0], sizes = [1, 32, 10], strides = [1, 1, 1]} : vector<8x32x10xf32> to vector<1x32x10xf32>
    %417 = vector.shape_cast %416 : vector<1x32x10xf32> to vector<32x10xf32>
    %c4_150 = arith.constant 4 : index
    %c0_151 = arith.constant 0 : index
    %c0_152 = arith.constant 0 : index
    %418 = vector.load %arg9[%c4_150, %c0_151, %c0_152] : memref<8x10x128xf32, #tpu.memory_space<vmem>>, vector<1x10x128xf32>
    %419 = vector.shape_cast %418 : vector<1x10x128xf32> to vector<10x128xf32>
    %cst_153 = arith.constant dense<0.000000e+00> : vector<32x128xf32>
    %420 = tpu.matmul %417, %419, %cst_153 {dimension_numbers = #tpu.dot_dimension_numbers<[1], [0], [0], [1], [0, 0, 1, 1], [], []>} : vector<32x10xf32>, vector<10x128xf32>, vector<32x128xf32> -> vector<32x128xf32>
    %421 = arith.addf %415, %420 : vector<32x128xf32>
    %422 = vector.extract_strided_slice %390 {offsets = [5, 0, 0], sizes = [1, 32, 10], strides = [1, 1, 1]} : vector<8x32x10xf32> to vector<1x32x10xf32>
    %423 = vector.shape_cast %422 : vector<1x32x10xf32> to vector<32x10xf32>
    %c5_154 = arith.constant 5 : index
    %c0_155 = arith.constant 0 : index
    %c0_156 = arith.constant 0 : index
    %424 = vector.load %arg9[%c5_154, %c0_155, %c0_156] : memref<8x10x128xf32, #tpu.memory_space<vmem>>, vector<1x10x128xf32>
    %425 = vector.shape_cast %424 : vector<1x10x128xf32> to vector<10x128xf32>
    %cst_157 = arith.constant dense<0.000000e+00> : vector<32x128xf32>
    %426 = tpu.matmul %423, %425, %cst_157 {dimension_numbers = #tpu.dot_dimension_numbers<[1], [0], [0], [1], [0, 0, 1, 1], [], []>} : vector<32x10xf32>, vector<10x128xf32>, vector<32x128xf32> -> vector<32x128xf32>
    %427 = arith.addf %421, %426 : vector<32x128xf32>
    %428 = vector.extract_strided_slice %390 {offsets = [6, 0, 0], sizes = [1, 32, 10], strides = [1, 1, 1]} : vector<8x32x10xf32> to vector<1x32x10xf32>
    %429 = vector.shape_cast %428 : vector<1x32x10xf32> to vector<32x10xf32>
    %c6_158 = arith.constant 6 : index
    %c0_159 = arith.constant 0 : index
    %c0_160 = arith.constant 0 : index
    %430 = vector.load %arg9[%c6_158, %c0_159, %c0_160] : memref<8x10x128xf32, #tpu.memory_space<vmem>>, vector<1x10x128xf32>
    %431 = vector.shape_cast %430 : vector<1x10x128xf32> to vector<10x128xf32>
    %cst_161 = arith.constant dense<0.000000e+00> : vector<32x128xf32>
    %432 = tpu.matmul %429, %431, %cst_161 {dimension_numbers = #tpu.dot_dimension_numbers<[1], [0], [0], [1], [0, 0, 1, 1], [], []>} : vector<32x10xf32>, vector<10x128xf32>, vector<32x128xf32> -> vector<32x128xf32>
    %433 = arith.addf %427, %432 : vector<32x128xf32>
    %434 = vector.extract_strided_slice %390 {offsets = [7, 0, 0], sizes = [1, 32, 10], strides = [1, 1, 1]} : vector<8x32x10xf32> to vector<1x32x10xf32>
    %435 = vector.shape_cast %434 : vector<1x32x10xf32> to vector<32x10xf32>
    %c7_162 = arith.constant 7 : index
    %c0_163 = arith.constant 0 : index
    %c0_164 = arith.constant 0 : index
    %436 = vector.load %arg9[%c7_162, %c0_163, %c0_164] : memref<8x10x128xf32, #tpu.memory_space<vmem>>, vector<1x10x128xf32>
    %437 = vector.shape_cast %436 : vector<1x10x128xf32> to vector<10x128xf32>
    %cst_165 = arith.constant dense<0.000000e+00> : vector<32x128xf32>
    %438 = tpu.matmul %435, %437, %cst_165 {dimension_numbers = #tpu.dot_dimension_numbers<[1], [0], [0], [1], [0, 0, 1, 1], [], []>} : vector<32x10xf32>, vector<10x128xf32>, vector<32x128xf32> -> vector<32x128xf32>
    %439 = arith.addf %433, %438 : vector<32x128xf32>
    %c0_166 = arith.constant 0 : index
    %c0_167 = arith.constant 0 : index
    %440 = vector.load %arg10[%c0_166, %c0_167] : memref<1x128xf32, #tpu.memory_space<vmem>>, vector<1x128xf32>
    %441 = vector.broadcast %440 : vector<1x128xf32> to vector<32x128xf32>
    %442 = arith.addf %439, %441 : vector<32x128xf32>
    %c0_168 = arith.constant 0 : index
    %c0_169 = arith.constant 0 : index
    %443 = vector.load %arg11[%c0_168, %c0_169] : memref<128x128xf32, #tpu.memory_space<vmem>>, vector<128x128xf32>
    %cst_170 = arith.constant dense<0.000000e+00> : vector<32x128xf32>
    %444 = tpu.matmul %442, %443, %cst_170 {dimension_numbers = #tpu.dot_dimension_numbers<[1], [0], [0], [1], [0, 0, 1, 1], [], []>} : vector<32x128xf32>, vector<128x128xf32>, vector<32x128xf32> -> vector<32x128xf32>
    %c0_171 = arith.constant 0 : index
    %c0_172 = arith.constant 0 : index
    %445 = vector.load %arg12[%c0_171, %c0_172] : memref<1x128xf32, #tpu.memory_space<vmem>>, vector<1x128xf32>
    %446 = vector.broadcast %445 : vector<1x128xf32> to vector<32x128xf32>
    %447 = arith.addf %444, %446 : vector<32x128xf32>
    %c0_173 = arith.constant 0 : index
    %c0_174 = arith.constant 0 : index
    %448 = vector.load %arg13[%c0_173, %c0_174] : memref<32x128xf32, #tpu.memory_space<vmem>>, vector<32x128xf32>
    tpu.vector_store %arg13[%c0_173, %c0_174], %447 {strides = array<i32>} : memref<32x128xf32, #tpu.memory_space<vmem>>, vector<32x128xf32>,
    return
  }
  func.func @transform_0(%arg0: i32) -> (i32, i32, i32) {
    %c0_i32 = arith.constant 0 : i32
    %c0_i32_0 = arith.constant 0 : i32
    %c0_i32_1 = arith.constant 0 : i32
    return %c0_i32, %arg0, %c0_i32_0 : i32, i32, i32
  }
  func.func @transform_1(%arg0: i32) -> (i32, i32) {
    %c0_i32 = arith.constant 0 : i32
    %c0_i32_0 = arith.constant 0 : i32
    %c0_i32_1 = arith.constant 0 : i32
    return %c0_i32, %c0_i32_0 : i32, i32
  }
  func.func @transform_2(%arg0: i32) -> (i32, i32) {
    %c0_i32 = arith.constant 0 : i32
    %c0_i32_0 = arith.constant 0 : i32
    %c0_i32_1 = arith.constant 0 : i32
    return %c0_i32, %c0_i32_0 : i32, i32
  }
  func.func @transform_3(%arg0: i32) -> (i32, i32) {
    %c0_i32 = arith.constant 0 : i32
    %c0_i32_0 = arith.constant 0 : i32
    %c0_i32_1 = arith.constant 0 : i32
    return %c0_i32, %c0_i32_0 : i32, i32
  }
  func.func @transform_4(%arg0: i32) -> (i32, i32) {
    %c0_i32 = arith.constant 0 : i32
    %c0_i32_0 = arith.constant 0 : i32
    %c0_i32_1 = arith.constant 0 : i32
    return %c0_i32, %c0_i32_0 : i32, i32
  }
  func.func @transform_5(%arg0: i32) -> (i32, i32) {
    %c0_i32 = arith.constant 0 : i32
    %c0_i32_0 = arith.constant 0 : i32
    %c0_i32_1 = arith.constant 0 : i32
    return %c0_i32, %c0_i32_0 : i32, i32
  }
  func.func @transform_6(%arg0: i32) -> (i32, i32) {
    %c0_i32 = arith.constant 0 : i32
    %c0_i32_0 = arith.constant 0 : i32
    %c0_i32_1 = arith.constant 0 : i32
    return %c0_i32, %c0_i32_0 : i32, i32
  }
  func.func @transform_7(%arg0: i32) -> (i32, i32) {
    %c0_i32 = arith.constant 0 : i32
    %c0_i32_0 = arith.constant 0 : i32
    %c0_i32_1 = arith.constant 0 : i32
    return %c0_i32, %c0_i32_0 : i32, i32
  }
  func.func @transform_8(%arg0: i32) -> (i32, i32, i32) {
    %c0_i32 = arith.constant 0 : i32
    %c0_i32_0 = arith.constant 0 : i32
    %c0_i32_1 = arith.constant 0 : i32
    %c0_i32_2 = arith.constant 0 : i32
    return %c0_i32, %c0_i32_0, %c0_i32_1 : i32, i32, i32
  }
  func.func @transform_9(%arg0: i32) -> (i32, i32) {
    %c0_i32 = arith.constant 0 : i32
    %c0_i32_0 = arith.constant 0 : i32
    %c0_i32_1 = arith.constant 0 : i32
    return %c0_i32, %c0_i32_0 : i32, i32
  }
  func.func @transform_10(%arg0: i32) -> (i32, i32) {
    %c0_i32 = arith.constant 0 : i32
    %c0_i32_0 = arith.constant 0 : i32
    %c0_i32_1 = arith.constant 0 : i32
    return %c0_i32, %c0_i32_0 : i32, i32
  }
  func.func @transform_11(%arg0: i32) -> (i32, i32) {
    %c0_i32 = arith.constant 0 : i32
    %c0_i32_0 = arith.constant 0 : i32
    %c0_i32_1 = arith.constant 0 : i32
    return %c0_i32, %c0_i32_0 : i32, i32
  }
  func.func @transform_12(%arg0: i32) -> (i32, i32) {
    %c0_i32 = arith.constant 0 : i32
    %c0_i32_0 = arith.constant 0 : i32
    return %arg0, %c0_i32 : i32, i32
  }
}

</mosaic_0001>

<bundles_post_ra>
// kernel: tpu_custom_call.1
= control target key start
LH: loop header
LB: loop body
LE: loop exit
PB: predicated region body
PF: predicated region fallthrough
CT: control target
= control target key end

     0   :  { %s7160_s0 = inlined_call_operand.vmem [shape: f32[8,64,32], index: 0, kind: input, shape index: {}]   ;;  %s7161_s1 = inlined_call_operand.vmem [shape: f32[32,128], index: 1, kind: input, shape index: {}]   ;;  %s7162_s2 = inlined_call_operand.vmem [shape: f32[32,128], index: 2, kind: input, shape index: {}]   ;;  %s7163_s3 = inlined_call_operand.vmem [shape: f32[1,128], index: 3, kind: input, shape index: {}]   ;;  %s7164_s4 = inlined_call_operand.vmem [shape: f32[64,128], index: 4, kind: input, shape index: {}]   ;;  %s7165_s5 = inlined_call_operand.vmem [shape: f32[1,128], index: 5, kind: input, shape index: {}]   ;;  %s7166_s6 = inlined_call_operand.vmem [shape: f32[32,10], index: 6, kind: input, shape index: {}]   ;;  %s7167_s7 = inlined_call_operand.vmem [shape: f32[1,10], index: 7, kind: input, shape index: {}]   ;;  %s7168_s8 = inlined_call_operand.vmem [shape: f32[8,10,128], index: 8, kind: input, shape index: {}]   ;;  %s7169_s9 = inlined_call_operand.vmem [shape: f32[1,128], index: 9, kind: input, shape index: {}]   ;;  %s7170_s10 = inlined_call_operand.vmem [shape: f32[128,128], index: 10, kind: input, shape index: {}]   ;;  %s7171_s11 = inlined_call_operand.vmem [shape: f32[1,128], index: 11, kind: input, shape index: {}]   ;;  %s7172_s12 = inlined_call_operand.hbm [shape: f32[64,128], index: 12, kind: output, shape index: {}]  }
   0x1   :  { %7176 = sst [smem:[#allocation8_spill]] %s7160_s0 }
   0x2   :  { %7177 = sst [smem:[#allocation9_spill]] %s7161_s1 }
   0x3   :  { %7178 = sst [smem:[#allocation10_spill]] %s7162_s2 }
   0x4   :  { %17 = vsyncpa [#allocation6], 0 }
   0x5   :  { %19 = vsyncpa [#allocation6 + $0x1], 0  ;;  %s5279_s21 = smov 0   ;;  %s5281_s22 = smov 0  }
   0x6   :  { %s5283_s23 = smov 0   ;;  %s5285_s24 = smov 0  }
   0x7 LB: > { %s7173_s25 = sadd.s32 4294967295, %s5207_s24   ;;  %s4401_s26 = sadd.s32 4294967294, %s5207_s24   ;;  %s5207_s24 = sphi %s5285_s24, %s7189_s24   ;;  %s5203_s23 = sphi %s5283_s23, %s7188_s23   ;;  %s5199_s22 = sphi %s5281_s22, %s7187_s22   ;;  %s5195_s21 = sphi %s5279_s21, %s7186_s21  }
   0x8   : > { %s5302_s27 = sadd.s32 1, %s5207_s24   ;;  %s32_s28 = sadd.s32 1, %s5203_s23 }
   0x9   : > { %s29_s29 = ssub.s32 %s5207_s24, %s5302_s27  ;;  %p39_p0 = scmp.ne.s32.totalorder %s5203_s23, %s5199_s22 }
   0xa   : > { %p30_p1 = scmp.eq.s32.totalorder %s29_s29, 0  ;;  %p40_p2 = scmp.eq.s32.totalorder %s5207_s24, 0 }
   0xb   : > { %p300_p3 = scmp.eq.s32.totalorder %s7173_s25, 1  ;;  %p305_p4 = scmp.ne.s32.totalorder %s5199_s22, %s5195_s21 }
   0xc   : > { %s5315_s30 = scalar_select %p30_p1, %s5203_s23, %s32_s28  }
   0xd   : > { %p41_p5 = por %p40_p2, %p39_p0  ;;  %p5317_p6 = por %p300_p3, %p39_p0 }
   0xe   : > { %p306_p7 = scmp.eq.s32.totalorder %s4401_s26, 1  ;;  %p4403_p9 = scmp.ge.s32.totalorder %s5207_s24, 2 }
  0x10   : > { %p5321_p8 = por %p306_p7, %p305_p4  ;;  %355 = sbr.rel (%p4403_p9) target bundleno = 63 (0x3f), region = 60 }
  0x15   : > { %358 = sbr.rel (!%p41_p5) target bundleno = 63 (0x3f), region = 64  ;;  %s360_s15 = sand.u32 (%p41_p5), 1, %s5203_s23  }
  0x16   : > { %s4625_s16 = sshll.u32 (%p41_p5), %s5207_s24, 5  ;;  %s4404_s17 = sshll.u32 (%p41_p5), %s360_s15, 8 }
  0x17   : > { %s7181_s0 = sld [smem:[#allocation8_spill]] (%p41_p5)  ;;  %s5338_s26 = scalar_lea.vmem (%p41_p5), [#allocation4], %s4404_s17 }
  0x1d   : > { %s5333_s20 = scalar_lea.vmem %s7181_s0, %s4625_s16 }
  0x1e   : > { %v456_v0 = vld [vmem:[%s5333_s20] sm:$0xff]  ;;  %v458_v1 = vld [vmem:[%s5333_s20 + $0x8] sm:$0xff]  ;;  %v460_v2 = vld [vmem:[%s5333_s20 + $0x10] sm:$0xff] }
  0x1f   : > { %457 = vst [vmem:[%s5338_s26] sm:$0xff] %v456_v0  ;;  %v462_v3 = vld [vmem:[%s5333_s20 + $0x18] sm:$0xff]  ;;  %v464_v4 = vld [vmem:[%s5333_s20 + $0x40] sm:$0xff]  ;;  %v466_v5 = vld [vmem:[%s5333_s20 + $0x48] sm:$0xff] }
  0x20   : > { %459 = vst [vmem:[%s5338_s26 + $0x8] sm:$0xff] %v458_v1  ;;  %v468_v6 = vld [vmem:[%s5333_s20 + $0x50] sm:$0xff]  ;;  %v470_v7 = vld [vmem:[%s5333_s20 + $0x58] sm:$0xff]  ;;  %v472_v8 = vld [vmem:[%s5333_s20 + $0x80] sm:$0xff] }
  0x21   : > { %461 = vst [vmem:[%s5338_s26 + $0x10] sm:$0xff] %v460_v2  ;;  %v474_v9 = vld [vmem:[%s5333_s20 + $0x88] sm:$0xff]  ;;  %v476_v10 = vld [vmem:[%s5333_s20 + $0x90] sm:$0xff]  ;;  %v478_v11 = vld [vmem:[%s5333_s20 + $0x98] sm:$0xff] }
  0x22   : > { %463 = vst [vmem:[%s5338_s26 + $0x18] sm:$0xff] %v462_v3  ;;  %v480_v12 = vld [vmem:[%s5333_s20 + $0xc0] sm:$0xff]  ;;  %v482_v13 = vld [vmem:[%s5333_s20 + $0xc8] sm:$0xff]  ;;  %v484_v14 = vld [vmem:[%s5333_s20 + $0xd0] sm:$0xff] }
  0x23   : > { %465 = vst [vmem:[%s5338_s26 + $0x20] sm:$0xff] %v464_v4  ;;  %v486_v15 = vld [vmem:[%s5333_s20 + $0xd8] sm:$0xff]  ;;  %v488_v16 = vld [vmem:[%s5333_s20 + $0x100] sm:$0xff]  ;;  %v490_v17 = vld [vmem:[%s5333_s20 + $0x108] sm:$0xff] }
  0x24   : > { %467 = vst [vmem:[%s5338_s26 + $0x28] sm:$0xff] %v466_v5  ;;  %v492_v18 = vld [vmem:[%s5333_s20 + $0x110] sm:$0xff]  ;;  %v494_v19 = vld [vmem:[%s5333_s20 + $0x118] sm:$0xff]  ;;  %v496_v20 = vld [vmem:[%s5333_s20 + $0x140] sm:$0xff] }
  0x25   : > { %469 = vst [vmem:[%s5338_s26 + $0x30] sm:$0xff] %v468_v6  ;;  %v498_v21 = vld [vmem:[%s5333_s20 + $0x148] sm:$0xff]  ;;  %v500_v22 = vld [vmem:[%s5333_s20 + $0x150] sm:$0xff]  ;;  %v502_v23 = vld [vmem:[%s5333_s20 + $0x158] sm:$0xff] }
  0x26   : > { %471 = vst [vmem:[%s5338_s26 + $0x38] sm:$0xff] %v470_v7  ;;  %v504_v24 = vld [vmem:[%s5333_s20 + $0x180] sm:$0xff]  ;;  %v506_v25 = vld [vmem:[%s5333_s20 + $0x188] sm:$0xff]  ;;  %v508_v26 = vld [vmem:[%s5333_s20 + $0x190] sm:$0xff] }
  0x27   : > { %473 = vst [vmem:[%s5338_s26 + $0x40] sm:$0xff] %v472_v8  ;;  %v510_v27 = vld [vmem:[%s5333_s20 + $0x198] sm:$0xff]  ;;  %v512_v28 = vld [vmem:[%s5333_s20 + $0x1c0] sm:$0xff]  ;;  %v514_v29 = vld [vmem:[%s5333_s20 + $0x1c8] sm:$0xff] }
  0x28   : > { %475 = vst [vmem:[%s5338_s26 + $0x48] sm:$0xff] %v474_v9  ;;  %v516_v30 = vld [vmem:[%s5333_s20 + $0x1d0] sm:$0xff]  ;;  %v518_v31 = vld [vmem:[%s5333_s20 + $0x1d8] sm:$0xff] }
  0x29   : > { %477 = vst [vmem:[%s5338_s26 + $0x50] sm:$0xff] %v476_v10 }
  0x2a   : > { %479 = vst [vmem:[%s5338_s26 + $0x58] sm:$0xff] %v478_v11 }
  0x2b   : > { %481 = vst [vmem:[%s5338_s26 + $0x60] sm:$0xff] %v480_v12 }
  0x2c   : > { %483 = vst [vmem:[%s5338_s26 + $0x68] sm:$0xff] %v482_v13 }
  0x2d   : > { %485 = vst [vmem:[%s5338_s26 + $0x70] sm:$0xff] %v484_v14 }
  0x2e   : > { %487 = vst [vmem:[%s5338_s26 + $0x78] sm:$0xff] %v486_v15 }
  0x2f   : > { %489 = vst [vmem:[%s5338_s26 + $0x80] sm:$0xff] %v488_v16 }
  0x30   : > { %491 = vst [vmem:[%s5338_s26 + $0x88] sm:$0xff] %v490_v17 }
  0x31   : > { %493 = vst [vmem:[%s5338_s26 + $0x90] sm:$0xff] %v492_v18 }
  0x32   : > { %495 = vst [vmem:[%s5338_s26 + $0x98] sm:$0xff] %v494_v19 }
  0x33   : > { %497 = vst [vmem:[%s5338_s26 + $0xa0] sm:$0xff] %v496_v20 }
  0x34   : > { %499 = vst [vmem:[%s5338_s26 + $0xa8] sm:$0xff] %v498_v21 }
  0x35   : > { %501 = vst [vmem:[%s5338_s26 + $0xb0] sm:$0xff] %v500_v22 }
  0x36   : > { %503 = vst [vmem:[%s5338_s26 + $0xb8] sm:$0xff] %v502_v23 }
  0x37   : > { %505 = vst [vmem:[%s5338_s26 + $0xc0] sm:$0xff] %v504_v24 }
  0x38   : > { %507 = vst [vmem:[%s5338_s26 + $0xc8] sm:$0xff] %v506_v25 }
  0x39   : > { %509 = vst [vmem:[%s5338_s26 + $0xd0] sm:$0xff] %v508_v26 }
  0x3a   : > { %511 = vst [vmem:[%s5338_s26 + $0xd8] sm:$0xff] %v510_v27 }
  0x3b   : > { %513 = vst [vmem:[%s5338_s26 + $0xe0] sm:$0xff] %v512_v28 }
  0x3c   : > { %515 = vst [vmem:[%s5338_s26 + $0xe8] sm:$0xff] %v514_v29 }
  0x3d   : > { %517 = vst [vmem:[%s5338_s26 + $0xf0] sm:$0xff] %v516_v30 }
  0x3e   : > { %519 = vst [vmem:[%s5338_s26 + $0xf8] sm:$0xff] %v518_v31 }
  0x3f PF: > { %p4407_p10 = scmp.ge.s32.totalorder %s5207_s24, 1  ;;  %p524_p11 = scmp.lt.s32.totalorder %s5207_s24, 3 }
  0x41   : > { %p525_p12 = pnand %p4407_p10, %p524_p11 }
  0x42   : > { %s7182_s1 = sld [smem:[#allocation9_spill]] (!%p525_p12)  ;;  %s5415_s19 = sand.u32 (!%p525_p12), 1, %s5199_s22  }
  0x43   : > { %528 = sbr.rel (%p525_p12) target bundleno = 5809 (0x16b1), region = 102  ;;  %s7183_s2 = sld [smem:[#allocation10_spill]] (!%p525_p12) }
  0x44   : > { %s4408_s28 = sshll.u32 (!%p525_p12), %s5415_s19, 8  ;;  %s7174_s15 = smov (!%p525_p12), 64  }
  0x45   : > { %s5437_s20 = scalar_lea.vmem (!%p525_p12), [#allocation4], %s4408_s28  ;;  %s5211_s16 = smov (!%p525_p12), 32  }
  0x46   : > { %s4409_s18 = sshll.u32 (!%p525_p12), %s5415_s19, 5  ;;  %s7185_s25 = sadd.s32 (!%p525_p12), 4294967295, %s5207_s24  }
  0x47   : > { %s571_s29 = scalar_lea.vmem (!%p525_p12), [#allocation5], %s4409_s18  ;;  %s4318_s18 = scalar_lea.sflag (!%p525_p12), [#allocation6], %s5415_s19 }
  0x48   : > { %v609_v32 = vld [vmem:[%s7182_s1 + $0x18] sm:$0xff]  ;;  %v608_v33 = vld [vmem:[%s7182_s1 + $0x10] sm:$0xff]  ;;  %v607_v36 = vld [vmem:[%s7182_s1 + $0x8] sm:$0xff]  ;;  %vm614_vm0 = vcmask 261120   ;;  %v5209_v41 = vmov 0.0   ;;  %vm1020_vm1 = vcmask 523264  }
  0x49   : > { %v5412_v34 = vld [vmem:[%s7183_s2 + $0x18] sm:$0xff]  ;;  %723 = vmatpush.msra.mxu0 %v609_v32  ;;  %v5421_v35 = vld [vmem:[%s7183_s2 + $0x10] sm:$0xff]  ;;  %v5430_v37 = vld [vmem:[%s7183_s2 + $0x8] sm:$0xff]  ;;  %vm3873_vm2 = vcmask 1041408   ;;  %vm3860_vm4 = vcmask 80896   ;;  %s4330_s17 = sshll.u32 %s571_s29, 4  ;;  %s4331_s17 = int_to_ptr.vmem [resolvable:$true] %s4330_s17 }
  0x4a   : > { %888 = vmatpush.msra.mxu1 %v5412_v34  ;;  %1195 = vmatpush.msra.mxu3 %v5412_v34  ;;  %v606_v38 = vld [vmem:[%s7182_s1] sm:$0xff]  ;;  %v575_v42 = vld [vmem:[%s5437_s20 + $0x8] sm:$0xff]  ;;  %v576_v43 = vld [vmem:[%s5437_s20 + $0x10] sm:$0xff]  ;;  %s5165_s28 = scalar_lea.hbm %s7172_s12, 64 }
  0x4b   : > { %724 = vmatpush.msra.mxu0 %v608_v33  ;;  %v574_v39 = vld [vmem:[%s5437_s20] sm:$0xff]  ;;  %v577_v44 = vld [vmem:[%s5437_s20 + $0x18] sm:$0xff] }
  0x4c   : > { %889 = vmatpush.msra.mxu1 %v5421_v35  ;;  %v5443_v40 = vld [vmem:[%s7183_s2] sm:$0xff]  ;;  %1196 = vmatpush.msra.mxu3 %v5421_v35 }
  0x4d   : > { %725 = vmatpush.msra.mxu0 %v607_v36  ;;  %v5468_v45 = vld [vmem:[%s7163_s3] ss:$0 sm:$0xff] }
  0x4e   : > { %890 = vmatpush.msra.mxu1 %v5430_v37  ;;  %1197 = vmatpush.msra.mxu3 %v5430_v37 }
  0x4f   : > { %726 = vmatpush.msra.mxu0 %v606_v38 }
  0x50   : > { %891 = vmatpush.msra.mxu1 %v5443_v40  ;;  %4410 = vmatmul.msk.f32.vlgmr.msra.gmra.mxu0 %vm614_vm0, %v574_v39 }
  0x51   : > { %892 = vmatmul.f32.vlgmr.msra.gmra.mxu1 %v5209_v41  ;;  %1198 = vmatpush.msra.mxu3 %v5443_v40 }
  0x52   : > { %1827 = vmatpush.msrb.mxu1 %v5412_v34 }
  0x53   : > { %1511 = vmatpush.msrb.mxu3 %v5412_v34 }
  0x54   : > { %1828 = vmatpush.msrb.mxu1 %v5421_v35 }
  0x55   : > { %1512 = vmatpush.msrb.mxu3 %v5421_v35 }
  0x56   : > { %1829 = vmatpush.msrb.mxu1 %v5430_v37 }
  0x57   : > { %1513 = vmatpush.msrb.mxu3 %v5430_v37 }
  0x58   : > { %1830 = vmatpush.msrb.mxu1 %v5443_v40  ;;  %4411 = vmatmul.msk.f32.gmra.mxu0 %vm614_vm0, %v575_v42 }
  0x59   : > { %895 = vmatmul.f32.gmra.mxu1 %v5209_v41  ;;  %1514 = vmatpush.msrb.mxu3 %v5443_v40 }
  0x60   : > { %4412 = vmatmul.msk.f32.gmra.mxu0 %vm614_vm0, %v576_v43 }
  0x61   : > { %898 = vmatmul.f32.gmra.mxu1 %v5209_v41 }
  0x68   : > { %4413 = vmatmul.msk.f32.gmra.mxu0 %vm614_vm0, %v577_v44 }
  0x69   : > { %901 = vmatmul.f32.gmra.mxu1 %v5209_v41 }
  0xcd   : > { %v728_v46 = vpop.f32.mrf.mxu0 }
  0xce   : > { %v893_v47 = vpop.f32.mrf.mxu1  ;;  %v729_v48 = vadd.f32 %v5468_v45, %v728_v46 }
  0xd0   : > { %v905_v49 = vadd.f32 %v893_v47, %v729_v48 }
  0xd2   : > { %4680 = vtanh.f32 %v905_v49  ;;  %v909_v2 = vmul.f32 0.5, %v905_v49 }
  0xd5   : > { %v731_v50 = vpop.f32.mrf.mxu0 }
  0xd6   : > { %v896_v51 = vpop.f32.mrf.mxu1  ;;  %v732_v52 = vadd.f32 %v5468_v45, %v731_v50 }
  0xd8   : > { %v4681_v53 = vpop.eup %4680  ;;  %v906_v54 = vadd.f32 %v896_v51, %v732_v52  ;;  %v5507_v51 = vld [vmem:[%s7164_s4 + $0x38] sm:$0xff]  ;;  %v5512_v52 = vld [vmem:[%s7164_s4 + $0x30] sm:$0xff] }
  0xd9   : > { %937 = vrot.lane.b32.xlu0 %v4681_v53, %s7174_s15  ;;  %1041 = vmatpush.msra.mxu2 %v5507_v51  ;;  %v5519_v53 = vld [vmem:[%s7164_s4 + $0x28] sm:$0xff] }
  0xda   : > { %4682 = vtanh.f32 %v906_v54  ;;  %v910_v3 = vmul.f32 0.5, %v906_v54  ;;  %2304 = vmatpush.msra.mxu1 %v5507_v51  ;;  %v5526_v54 = vld [vmem:[%s7164_s4 + $0x20] sm:$0xff] }
  0xdb   : > { %1042 = vmatpush.msra.mxu2 %v5512_v52 }
  0xdc   : > { %2305 = vmatpush.msra.mxu1 %v5512_v52 }
  0xdd   : > { %v734_v55 = vpop.f32.mrf.mxu0  ;;  %1043 = vmatpush.msra.mxu2 %v5519_v53 }
  0xde   : > { %v899_v56 = vpop.f32.mrf.mxu1  ;;  %v735_v57 = vadd.f32 %v5468_v45, %v734_v55  ;;  %2306 = vmatpush.msra.mxu1 %v5519_v53  ;;  %v5533_v55 = vld [vmem:[%s7164_s4 + $0x18] sm:$0xff] }
  0xdf   : > { %1044 = vmatpush.msra.mxu2 %v5526_v54 }
  0xe0   : > { %v4683_v58 = vpop.eup %4682  ;;  %v907_v59 = vadd.f32 %v899_v56, %v735_v57  ;;  %2307 = vmatpush.msra.mxu1 %v5526_v54  ;;  %v5540_v56 = vld [vmem:[%s7164_s4 + $0x10] sm:$0xff]  ;;  %v5547_v57 = vld [vmem:[%s7164_s4 + $0x8] sm:$0xff] }
  0xe1   : > { %939 = vrot.lane.b32.xlu0 %v4683_v58, %s7174_s15  ;;  %1045 = vmatpush.msra.mxu2 %v5533_v55 }
  0xe2   : > { %4684 = vtanh.f32 %v907_v59  ;;  %v911_v6 = vmul.f32 0.5, %v907_v59  ;;  %2308 = vmatpush.msra.mxu1 %v5533_v55 }
  0xe3   : > { %1046 = vmatpush.msra.mxu2 %v5540_v56 }
  0xe4   : > { %2309 = vmatpush.msra.mxu1 %v5540_v56 }
  0xe5   : > { %v737_v60 = vpop.f32.mrf.mxu0  ;;  %1047 = vmatpush.msra.mxu2 %v5547_v57 }
  0xe6   : > { %v902_v61 = vpop.f32.mrf.mxu1  ;;  %v738_v62 = vadd.f32 %v5468_v45, %v737_v60  ;;  %2310 = vmatpush.msra.mxu1 %v5547_v57 }
  0xe8   : > { %v4685_v63 = vpop.eup %4684  ;;  %v908_v0 = vadd.f32 %v902_v61, %v738_v62  ;;  %v5559_v62 = vld [vmem:[%s7164_s4] sm:$0xff] }
  0xe9   : > { %941 = vrot.lane.b32.xlu1 %v4685_v63, %s7174_s15  ;;  %1048 = vmatpush.msra.mxu2 %v5559_v62  ;;  %v578_v63 = vld [vmem:[%s5437_s20 + $0x20] sm:$0xff] }
  0xea   : > { %4686 = vtanh.f32 %v908_v0  ;;  %v912_v12 = vmul.f32 0.5, %v908_v0  ;;  %2311 = vmatpush.msra.mxu1 %v5559_v62  ;;  %4414 = vmatmul.msk.f32.gmra.mxu0 %vm614_vm0, %v578_v63 }
  0xeb   : > { %4688 = vtanh.f32 %v909_v2  ;;  %1356 = vmatpush.msrb.mxu2 %v5507_v51  ;;  %v579_v2 = vld [vmem:[%s5437_s20 + $0x28] sm:$0xff] }
  0xec   : > { %4690 = vtanh.f32 %v910_v3  ;;  %v580_v3 = vld [vmem:[%s5437_s20 + $0x30] sm:$0xff] }
  0xed   : > { %4692 = vtanh.f32 %v911_v6  ;;  %1357 = vmatpush.msrb.mxu2 %v5512_v52 }
  0xee   : > { %4694 = vtanh.f32 %v912_v12 }
  0xef   : > { %1358 = vmatpush.msrb.mxu2 %v5519_v53 }
  0xf0   : > { %v4687_v1 = vpop.eup %4686 }
  0xf1   : > { %943 = vrot.lane.b32.xlu1 %v4687_v1, %s7174_s15  ;;  %v4689_v4 = vpop.eup %4688  ;;  %1359 = vmatpush.msrb.mxu2 %v5526_v54 }
  0xf2   : > { %v917_v5 = vmul.f32 0.5, %v4689_v4  ;;  %v4691_v8 = vpop.eup %4690  ;;  %4415 = vmatmul.msk.f32.gmra.mxu0 %vm614_vm0, %v579_v2  ;;  %v581_v4 = vld [vmem:[%s5437_s20 + $0x38] sm:$0xff] }
  0xf3   : > { %v918_v11 = vmul.f32 0.5, %v4691_v8  ;;  %v4693_v14 = vpop.eup %4692  ;;  %1360 = vmatpush.msrb.mxu2 %v5533_v55 }
  0xf4   : > { %v921_v7 = vadd.f32 0.5, %v917_v5  ;;  %v919_v17 = vmul.f32 0.5, %v4693_v14  ;;  %v4695_v19 = vpop.eup %4694 }
  0xf5   : > { %v922_v13 = vadd.f32 0.5, %v918_v11  ;;  %v920_v22 = vmul.f32 0.5, %v4695_v19  ;;  %1361 = vmatpush.msrb.mxu2 %v5540_v56 }
  0xf6   : > { %v5480_v18 = vadd.f32 0.5, %v919_v17  ;;  %v929_v26 = vmul.f32 0.0, %v921_v7 }
  0xf7   : > { %v924_v23 = vadd.f32 0.5, %v920_v22  ;;  %v930_v29 = vmul.f32 0.0, %v922_v13  ;;  %1362 = vmatpush.msrb.mxu2 %v5547_v57 }
  0xf8   : > { %v931_v36 = vmul.f32 0.0, %v5480_v18 }
  0xf9   : > { %v932_v41 = vmul.f32 0.0, %v924_v23  ;;  %1363 = vmatpush.msrb.mxu2 %v5559_v62 }
  0xfa   : > { %4416 = vmatmul.msk.f32.gmra.mxu0 %vm614_vm0, %v580_v3 }
 0x102   : > { %4417 = vmatmul.msk.f32.gmra.mxu0 %vm614_vm0, %v581_v4 }
 0x14b   : > { %v938_v9 = vpop.permute.xlu0 %937 }
 0x14c   : > { %v949_v10 = vmul.f32 %v938_v9, %v921_v7 }
 0x14e   : > { %957 = vrot.lane.b32.xlu2 %v949_v10, %s5211_s16 }
 0x153   : > { %v940_v15 = vpop.permute.xlu0 %939 }
 0x154   : > { %v950_v16 = vmul.f32 %v940_v15, %v922_v13 }
 0x156   : > { %959 = vrot.lane.b32.xlu2 %v950_v16, %s5211_s16 }
 0x15b   : > { %v942_v20 = vpop.permute.xlu1 %941 }
 0x15c   : > { %v951_v21 = vmul.f32 %v942_v20, %v5480_v18 }
 0x15e   : > { %961 = vrot.lane.b32.xlu0 %v951_v21, %s5211_s16 }
 0x163   : > { %v944_v24 = vpop.permute.xlu1 %943 }
 0x164   : > { %v952_v25 = vmul.f32 %v944_v24, %v924_v23 }
 0x166   : > { %963 = vrot.lane.b32.xlu1 %v952_v25, %s5211_s16 }
 0x167   : > { %v740_v11 = vpop.f32.mrf.mxu0 }
 0x168   : > { %v741_v12 = vadd.f32 %v5468_v45, %v740_v11 }
 0x16f   : > { %v743_v20 = vpop.f32.mrf.mxu0 }
 0x170   : > { %v744_v21 = vadd.f32 %v5468_v45, %v743_v20 }
 0x1a8   : > { %v958_v27 = vpop.permute.xlu2 %957 }
 0x1a9   : > { %v5485_v28 = vadd.f32 %v958_v27, %v929_v26 }
 0x1ab   : > { %4696 = vtanh.f32 %v5485_v28 }
 0x1b0   : > { %v960_v30 = vpop.permute.xlu2 %959 }
 0x1b1   : > { %v4697_v31 = vpop.eup %4696  ;;  %v5488_v32 = vadd.f32 %v960_v30, %v930_v29 }
 0x1b2   : > { %981 = vrot.lane.b32.xlu2 %v4697_v31, %s7174_s15 }
 0x1b3   : > { %4698 = vtanh.f32 %v5488_v32 }
 0x1b9   : > { %v4699_v33 = vpop.eup %4698 }
 0x1ba   : > { %983 = vrot.lane.b32.xlu0 %v4699_v33, %s7174_s15 }
 0x1d0   : > { %v962_v38 = vpop.permute.xlu0 %961 }
 0x1d1   : > { %v5494_v39 = vadd.f32 %v962_v38, %v931_v36 }
 0x1d3   : > { %4700 = vtanh.f32 %v5494_v39 }
 0x1d8   : > { %v964_v42 = vpop.permute.xlu1 %963 }
 0x1d9   : > { %v4701_v43 = vpop.eup %4700  ;;  %v5497_v44 = vadd.f32 %v964_v42, %v932_v41 }
 0x1da   : > { %985 = vrot.lane.b32.xlu1 %v4701_v43, %s7174_s15 }
 0x1db   : > { %4702 = vtanh.f32 %v5497_v44 }
 0x1e1   : > { %v4703_v46 = vpop.eup %4702 }
 0x1e2   : > { %987 = vrot.lane.b32.xlu2 %v4703_v46, %s7174_s15 }
 0x20c   : > { %v982_v47 = vpop.permute.xlu2 %981 }
 0x20d   : > { %v993_v48 = vmul.f32 %v982_v47, %v921_v7 }
 0x20f   : > { %1001 = vrot.lane.b32.xlu0 %v993_v48, %s5211_s16 }
 0x22c   : > { %v984_v49 = vpop.permute.xlu0 %983 }
 0x22d   : > { %v994_v50 = vmul.f32 %v984_v49, %v922_v13  ;;  %v5611_v13 = vld [vmem:[%s7165_s5] ss:$0 sm:$0xff] }
 0x22f   : > { %1003 = vrot.lane.b32.xlu1 %v994_v50, %s5211_s16 }
 0x23c   : > { %v988_v58 = vpop.permute.xlu2 %987 }
 0x23d   : > { %v996_v59 = vmul.f32 %v988_v58, %v924_v23  ;;  %v746_v23 = vpop.f32.mrf.mxu0 }
 0x23e   : > { %v747_v27 = vadd.f32 %v5468_v45, %v746_v23 }
 0x23f   : > { %1007 = vrot.lane.b32.xlu0 %v996_v59, %s5211_s16 }
 0x245   : > { %v749_v41 = vpop.f32.mrf.mxu0 }
 0x246   : > { %v750_v42 = vadd.f32 %v5468_v45, %v749_v41 }
 0x24c   : > { %v986_v60 = vpop.permute.xlu1 %985 }
 0x24d   : > { %v995_v61 = vmul.f32 %v986_v60, %v5480_v18 }
 0x24f   : > { %1005 = vrot.lane.b32.xlu2 %v995_v61, %s5211_s16 }
 0x281   : > { %v1002_v0 = vpop.permute.xlu0 %1001 }
 0x282   : > { %4446 = vmatmul.msk.f32.vlgmr.msra.gmra.mxu3 %vm614_vm0, %v1002_v0  ;;  %v1013_v1 = vsel %vm614_vm0, %v1002_v0, 0.0 }
 0x283   : > { %4442 = vmatmul.msk.f32.vlgmr.msra.gmra.mxu2 %vm1020_vm1, %v1013_v1  ;;  %1988 = vmatpush.msra.mxu3 %v5507_v51 }
 0x284   : > { %1672 = vmatpush.msra.mxu2 %v5507_v51 }
 0x285   : > { %1989 = vmatpush.msra.mxu3 %v5512_v52 }
 0x286   : > { %1673 = vmatpush.msra.mxu2 %v5512_v52 }
 0x287   : > { %1990 = vmatpush.msra.mxu3 %v5519_v53 }
 0x288   : > { %1674 = vmatpush.msra.mxu2 %v5519_v53 }
 0x289   : > { %1991 = vmatpush.msra.mxu3 %v5526_v54 }
 0x28a   : > { %1675 = vmatpush.msra.mxu2 %v5526_v54 }
 0x28b   : > { %1992 = vmatpush.msra.mxu3 %v5533_v55 }
 0x28c   : > { %1676 = vmatpush.msra.mxu2 %v5533_v55 }
 0x28d   : > { %1993 = vmatpush.msra.mxu3 %v5540_v56 }
 0x28e   : > { %1677 = vmatpush.msra.mxu2 %v5540_v56 }
 0x28f   : > { %1994 = vmatpush.msra.mxu3 %v5547_v57 }
 0x290   : > { %1678 = vmatpush.msra.mxu2 %v5547_v57 }
 0x291   : > { %1995 = vmatpush.msra.mxu3 %v5559_v62 }
 0x292   : > { %1679 = vmatpush.msra.mxu2 %v5559_v62 }
 0x2a1   : > { %v1004_v5 = vpop.permute.xlu1 %1003 }
 0x2a2   : > { %4447 = vmatmul.msk.f32.gmra.mxu3 %vm614_vm0, %v1004_v5  ;;  %v1014_v6 = vsel %vm614_vm0, %v1004_v5, 0.0 }
 0x2a3   : > { %4443 = vmatmul.msk.f32.gmra.mxu2 %vm1020_vm1, %v1014_v6 }
 0x2a9   : > { %v1006_v7 = vpop.permute.xlu2 %1005 }
 0x2aa   : > { %4448 = vmatmul.msk.f32.gmra.mxu3 %vm614_vm0, %v1006_v7  ;;  %v1015_v8 = vsel %vm614_vm0, %v1006_v7, 0.0 }
 0x2ab   : > { %4444 = vmatmul.msk.f32.gmra.mxu2 %vm1020_vm1, %v1015_v8 }
 0x2b1   : > { %v1008_v9 = vpop.permute.xlu0 %1007 }
 0x2b2   : > { %4449 = vmatmul.msk.f32.gmra.mxu3 %vm614_vm0, %v1008_v9  ;;  %v1016_v10 = vsel %vm614_vm0, %v1008_v9, 0.0 }
 0x2b3   : > { %4445 = vmatmul.msk.f32.gmra.mxu2 %vm1020_vm1, %v1016_v10 }
 0x305   : > { %v1200_v14 = vpop.f32.mrf.mxu3 }
 0x306   : > { %v1212_v15 = vadd.f32 %v1200_v14, %v741_v12  ;;  %v1050_v16 = vpop.f32.mrf.mxu2 }
 0x307   : > { %v1051_v17 = vadd.f32 %v5611_v13, %v1050_v16 }
 0x308   : > { %4704 = vtanh.f32 %v1212_v15  ;;  %v1216_v60 = vmul.f32 0.5, %v1212_v15 }
 0x309   : > { %4706 = vtanh.f32 %v1051_v17  ;;  %v1062_v3 = vmul.f32 0.5, %v1051_v17 }
 0x30e   : > { %v4705_v18 = vpop.eup %4704 }
 0x30f   : > { %v4707_v19 = vpop.eup %4706  ;;  %1244 = vrot.lane.b32.xlu2 %v4705_v18, %s7174_s15 }
 0x310   : > { %1090 = vrot.lane.b32.xlu1 %v4707_v19, %s7174_s15 }
 0x325   : > { %v1203_v22 = vpop.f32.mrf.mxu3 }
 0x326   : > { %v1213_v24 = vadd.f32 %v1203_v22, %v744_v21  ;;  %v1053_v25 = vpop.f32.mrf.mxu2 }
 0x327   : > { %v1054_v26 = vadd.f32 %v5611_v13, %v1053_v25 }
 0x328   : > { %4708 = vtanh.f32 %v1213_v24  ;;  %v1217_v14 = vmul.f32 0.5, %v1213_v24 }
 0x329   : > { %4710 = vtanh.f32 %v1054_v26  ;;  %v1063_v15 = vmul.f32 0.5, %v1054_v26 }
 0x32d   : > { %v1206_v29 = vpop.f32.mrf.mxu3 }
 0x32e   : > { %v4709_v30 = vpop.eup %4708  ;;  %v1214_v31 = vadd.f32 %v1206_v29, %v747_v27  ;;  %v1056_v33 = vpop.f32.mrf.mxu2 }
 0x32f   : > { %v4711_v36 = vpop.eup %4710  ;;  %v1057_v38 = vadd.f32 %v5611_v13, %v1056_v33  ;;  %1246 = vrot.lane.b32.xlu1 %v4709_v30, %s7174_s15 }
 0x330   : > { %4712 = vtanh.f32 %v1214_v31  ;;  %1092 = vrot.lane.b32.xlu0 %v4711_v36, %s7174_s15  ;;  %v1218_v21 = vmul.f32 0.5, %v1214_v31 }
 0x331   : > { %4714 = vtanh.f32 %v1057_v38  ;;  %v1064_v6 = vmul.f32 0.5, %v1057_v38 }
 0x335   : > { %v1209_v43 = vpop.f32.mrf.mxu3 }
 0x336   : > { %v4713_v46 = vpop.eup %4712  ;;  %v1215_v47 = vadd.f32 %v1209_v43, %v750_v42  ;;  %v1059_v48 = vpop.f32.mrf.mxu2 }
 0x337   : > { %v4715_v49 = vpop.eup %4714  ;;  %v1060_v50 = vadd.f32 %v5611_v13, %v1059_v48 }
 0x338   : > { %4716 = vtanh.f32 %v1215_v47  ;;  %1248 = vrot.lane.b32.xlu0 %v4713_v46, %s7174_s15  ;;  %1094 = vrot.lane.b32.xlu2 %v4715_v49, %s7174_s15  ;;  %v1219_v10 = vmul.f32 0.5, %v1215_v47 }
 0x339   : > { %4718 = vtanh.f32 %v1060_v50  ;;  %v1065_v30 = vmul.f32 0.5, %v1060_v50 }
 0x33a   : > { %4720 = vtanh.f32 %v1216_v60 }
 0x33b   : > { %4722 = vtanh.f32 %v1062_v3 }
 0x33c   : > { %4724 = vtanh.f32 %v1064_v6 }
 0x33d   : > { %4726 = vtanh.f32 %v1219_v10 }
 0x33e   : > { %v4717_v58 = vpop.eup %4716  ;;  %4728 = vtanh.f32 %v1217_v14 }
 0x33f   : > { %v4719_v59 = vpop.eup %4718  ;;  %4730 = vtanh.f32 %v1063_v15 }
 0x340   : > { %1096 = vrot.lane.b32.xlu1 %v4719_v59, %s7174_s15  ;;  %1250 = vrot.lane.b32.xlu2 %v4717_v58, %s7174_s15  ;;  %v4721_v61 = vpop.eup %4720  ;;  %4732 = vtanh.f32 %v1218_v21 }
 0x341   : > { %v1224_v63 = vmul.f32 0.5, %v4721_v61  ;;  %v4723_v4 = vpop.eup %4722  ;;  %4734 = vtanh.f32 %v1065_v30 }
 0x342   : > { %v1070_v5 = vmul.f32 0.5, %v4723_v4  ;;  %v4725_v11 = vpop.eup %4724 }
 0x343   : > { %v5628_v0 = vadd.f32 0.5, %v1224_v63  ;;  %v1072_v12 = vmul.f32 0.5, %v4725_v11  ;;  %v4727_v17 = vpop.eup %4726 }
 0x344   : > { %v5632_v7 = vadd.f32 0.5, %v1070_v5  ;;  %v1227_v20 = vmul.f32 0.5, %v4727_v17  ;;  %v4729_v22 = vpop.eup %4728 }
 0x345   : > { %v5636_v16 = vadd.f32 0.5, %v1072_v12  ;;  %v4731_v25 = vpop.eup %4730  ;;  %v1225_v26 = vmul.f32 0.5, %v4729_v22  ;;  %v1236_v63 = vmul.f32 %v5628_v0, %v5485_v28 }
 0x346   : > { %v5640_v23 = vadd.f32 0.5, %v1227_v20  ;;  %v1071_v29 = vmul.f32 0.5, %v4731_v25  ;;  %v4733_v41 = vpop.eup %4732  ;;  %v1082_v4 = vmul.f32 0.0, %v5632_v7 }
 0x347   : > { %v5644_v33 = vadd.f32 0.5, %v1225_v26  ;;  %v1226_v46 = vmul.f32 0.5, %v4733_v41  ;;  %v4735_v48 = vpop.eup %4734  ;;  %v1084_v11 = vmul.f32 0.0, %v5636_v16 }
 0x348   : > { %v5646_v38 = vadd.f32 0.5, %v1071_v29  ;;  %v1073_v58 = vmul.f32 0.5, %v4735_v48  ;;  %v1239_v20 = vmul.f32 %v5640_v23, %v5497_v44 }
 0x349   : > { %v5652_v47 = vadd.f32 0.5, %v1226_v46 }
 0x34a   : > { %v5656_v59 = vadd.f32 0.5, %v1073_v58 }
 0x34b   : > { %v1238_v12 = vmul.f32 %v5652_v47, %v5494_v39 }
 0x34c   : > { %v1085_v30 = vmul.f32 0.0, %v5656_v59 }
 0x369   : > { %v1245_v1 = vpop.permute.xlu2 %1244 }
 0x36a   : > { %v1256_v2 = vmul.f32 %v1245_v1, %v5628_v0 }
 0x36c   : > { %1264 = vrot.lane.b32.xlu1 %v1256_v2, %s5211_s16 }
 0x382   : > { %v1091_v8 = vpop.permute.xlu1 %1090 }
 0x383   : > { %v1102_v9 = vmul.f32 %v1091_v8, %v5632_v7  ;;  %v1083_v8 = vmul.f32 0.0, %v5646_v38 }
 0x385   : > { %1110 = vrot.lane.b32.xlu0 %v1102_v9, %s5211_s16 }
 0x392   : > { %v1095_v18 = vpop.permute.xlu2 %1094 }
 0x393   : > { %v1104_v19 = vmul.f32 %v1095_v18, %v5636_v16 }
 0x395   : > { %1114 = vrot.lane.b32.xlu1 %v1104_v19, %s5211_s16 }
 0x39a   : > { %v1251_v27 = vpop.permute.xlu2 %1250 }
 0x39b   : > { %v1259_v24 = vmul.f32 %v1251_v27, %v5640_v23  ;;  %v1237_v27 = vmul.f32 %v5644_v33, %v5488_v32 }
 0x39d   : > { %1270 = vrot.lane.b32.xlu1 %v1259_v24, %s5211_s16 }
 0x3a1   : > { %v1247_v36 = vpop.permute.xlu1 %1246 }
 0x3a2   : > { %v1257_v31 = vmul.f32 %v1247_v36, %v5644_v33  ;;  %v1093_v42 = vpop.permute.xlu0 %1092 }
 0x3a3   : > { %v1103_v43 = vmul.f32 %v1093_v42, %v5646_v38 }
 0x3a4   : > { %1266 = vrot.lane.b32.xlu0 %v1257_v31, %s5211_s16 }
 0x3a5   : > { %1112 = vrot.lane.b32.xlu2 %v1103_v43, %s5211_s16 }
 0x3aa   : > { %v1249_v49 = vpop.permute.xlu0 %1248 }
 0x3ab   : > { %v1258_v50 = vmul.f32 %v1249_v49, %v5652_v47 }
 0x3ad   : > { %1268 = vrot.lane.b32.xlu2 %v1258_v50, %s5211_s16 }
 0x3b2   : > { %v1097_v60 = vpop.permute.xlu1 %1096 }
 0x3b3   : > { %v1105_v61 = vmul.f32 %v1097_v60, %v5656_v59 }
 0x3b5   : > { %1116 = vrot.lane.b32.xlu0 %v1105_v61, %s5211_s16 }
 0x3de   : > { %v1265_v1 = vpop.permute.xlu1 %1264 }
 0x3df   : > { %v5662_v2 = vadd.f32 %v1265_v1, %v1236_v63 }
 0x3e1   : > { %4736 = vtanh.f32 %v5662_v2 }
 0x3e7   : > { %v4737_v3 = vpop.eup %4736 }
 0x3e8   : > { %1288 = vrot.lane.b32.xlu0 %v4737_v3, %s7174_s15 }
 0x3f7   : > { %v1111_v5 = vpop.permute.xlu0 %1110 }
 0x3f8   : > { %v5667_v6 = vadd.f32 %v1111_v5, %v1082_v4  ;;  %v585_v5 = vld [vmem:[%s5437_s20 + $0x58] sm:$0xff] }
 0x3fa   : > { %4738 = vtanh.f32 %v5667_v6 }
 0x3ff   : > { %v1113_v9 = vpop.permute.xlu2 %1112 }
 0x400   : > { %v4739_v10 = vpop.eup %4738  ;;  %v5671_v28 = vadd.f32 %v1113_v9, %v1083_v8 }
 0x401   : > { %1134 = vrot.lane.b32.xlu2 %v4739_v10, %s7174_s15 }
 0x402   : > { %4740 = vtanh.f32 %v5671_v28 }
 0x407   : > { %v1115_v14 = vpop.permute.xlu1 %1114  ;;  %v1269_v15 = vpop.permute.xlu2 %1268 }
 0x408   : > { %v4741_v17 = vpop.eup %4740  ;;  %v5678_v18 = vadd.f32 %v1115_v14, %v1084_v11  ;;  %v5680_v19 = vadd.f32 %v1269_v15, %v1238_v12 }
 0x409   : > { %1136 = vrot.lane.b32.xlu1 %v4741_v17, %s7174_s15 }
 0x40a   : > { %4742 = vtanh.f32 %v5678_v18 }
 0x40b   : > { %4744 = vtanh.f32 %v5680_v19 }
 0x40f   : > { %v1271_v21 = vpop.permute.xlu1 %1270 }
 0x410   : > { %v4743_v22 = vpop.eup %4742  ;;  %v5687_v25 = vadd.f32 %v1271_v21, %v1239_v20 }
 0x411   : > { %v4745_v39 = vpop.eup %4744  ;;  %1138 = vrot.lane.b32.xlu0 %v4743_v22, %s7174_s15 }
 0x412   : > { %4746 = vtanh.f32 %v5687_v25  ;;  %1292 = vrot.lane.b32.xlu1 %v4745_v39, %s7174_s15 }
 0x416   : > { %v1267_v24 = vpop.permute.xlu0 %1266 }
 0x417   : > { %v5694_v26 = vadd.f32 %v1267_v24, %v1237_v27 }
 0x418   : > { %v4747_v29 = vpop.eup %4746 }
 0x419   : > { %4748 = vtanh.f32 %v5694_v26  ;;  %1294 = vrot.lane.b32.xlu0 %v4747_v29, %s7174_s15 }
 0x41f   : > { %v4749_v44 = vpop.eup %4748 }
 0x420   : > { %1290 = vrot.lane.b32.xlu2 %v4749_v44, %s7174_s15 }
 0x427   : > { %v1117_v36 = vpop.permute.xlu0 %1116 }
 0x428   : > { %v5700_v41 = vadd.f32 %v1117_v36, %v1085_v30 }
 0x42a   : > { %4750 = vtanh.f32 %v5700_v41 }
 0x430   : > { %v4751_v31 = vpop.eup %4750 }
 0x431   : > { %1140 = vrot.lane.b32.xlu2 %v4751_v31, %s7174_s15 }
 0x45a   : > { %v1289_v32 = vpop.permute.xlu0 %1288 }
 0x45b   : > { %v1300_v42 = vmul.f32 %v1289_v32, %v5628_v0  ;;  %v1135_v43 = vpop.permute.xlu2 %1134 }
 0x45c   : > { %v5706_v46 = vmul.f32 %v1135_v43, %v5632_v7 }
 0x45d   : > { %1308 = vrot.lane.b32.xlu1 %v1300_v42, %s5211_s16 }
 0x45e   : > { %1320 = vrot.lane.b32.xlu2 %v5706_v46, %s7174_s15 }
 0x47a   : > { %v1291_v48 = vpop.permute.xlu2 %1290 }
 0x47b   : > { %v1301_v49 = vmul.f32 %v1291_v48, %v5644_v33  ;;  %v1137_v50 = vpop.permute.xlu1 %1136 }
 0x47c   : > { %v5713_v58 = vmul.f32 %v1137_v50, %v5646_v38 }
 0x47d   : > { %1310 = vrot.lane.b32.xlu0 %v1301_v49, %s5211_s16 }
 0x47e   : > { %1322 = vrot.lane.b32.xlu1 %v5713_v58, %s7174_s15 }
 0x483   : > { %v1139_v0 = vpop.permute.xlu0 %1138 }
 0x484   : > { %v5719_v7 = vmul.f32 %v1139_v0, %v5636_v16  ;;  %v1293_v60 = vpop.permute.xlu1 %1292  ;;  %v582_v16 = vld [vmem:[%s5437_s20 + $0x40] sm:$0xff] }
 0x485   : > { %v1302_v61 = vmul.f32 %v1293_v60, %v5652_v47  ;;  %4418 = vmatmul.msk.f32.gmra.mxu0 %vm614_vm0, %v582_v16 }
 0x486   : > { %1324 = vrot.lane.b32.xlu0 %v5719_v7, %s7174_s15 }
 0x487   : > { %1312 = vrot.lane.b32.xlu2 %v1302_v61, %s5211_s16 }
 0x48b   : > { %v1295_v33 = vpop.permute.xlu0 %1294  ;;  %v1141_v38 = vpop.permute.xlu2 %1140 }
 0x48c   : > { %v1303_v63 = vmul.f32 %v1295_v33, %v5640_v23  ;;  %v5727_v1 = vmul.f32 %v1141_v38, %v5656_v59  ;;  %v583_v23 = vld [vmem:[%s5437_s20 + $0x48] sm:$0xff]  ;;  %v584_v59 = vld [vmem:[%s5437_s20 + $0x50] sm:$0xff] }
 0x48d   : > { %4419 = vmatmul.msk.f32.gmra.mxu0 %vm614_vm0, %v583_v23 }
 0x48e   : > { %1314 = vrot.lane.b32.xlu1 %v1303_v63, %s5211_s16 }
 0x48f   : > { %1326 = vrot.lane.b32.xlu2 %v5727_v1, %s7174_s15 }
 0x495   : > { %4420 = vmatmul.msk.f32.gmra.mxu0 %vm614_vm0, %v584_v59 }
 0x49d   : > { %4421 = vmatmul.msk.f32.gmra.mxu0 %vm614_vm0, %v585_v5 }
 0x4b8   : > { %v1321_v47 = vpop.permute.xlu2 %1320 }
 0x4cf   : > { %v1309_v3 = vpop.permute.xlu1 %1308 }
 0x4d0   : > { %4454 = vmatmul.msk.f32.vlgmr.msrb.gmra.mxu3 %vm614_vm0, %v1309_v3  ;;  %v1332_v4 = vsel %vm614_vm0, %v1309_v3, %v1321_v47 }
 0x4d1   : > { %4450 = vmatmul.msk.f32.vlgmr.msrb.gmra.mxu2 %vm1020_vm1, %v1332_v4  ;;  %2459 = vmatpush.msrb.mxu3 %v5412_v34 }
 0x4d2   : > { %2143 = vmatpush.msrb.mxu2 %v5412_v34 }
 0x4d3   : > { %2460 = vmatpush.msrb.mxu3 %v5421_v35 }
 0x4d4   : > { %2144 = vmatpush.msrb.mxu2 %v5421_v35 }
 0x4d5   : > { %2461 = vmatpush.msrb.mxu3 %v5430_v37 }
 0x4d6   : > { %2145 = vmatpush.msrb.mxu2 %v5430_v37 }
 0x4d7   : > { %2462 = vmatpush.msrb.mxu3 %v5443_v40 }
 0x4d8   : > { %2146 = vmatpush.msrb.mxu2 %v5443_v40 }
 0x4e1   : > { %v1313_v9 = vpop.permute.xlu2 %1312 }
 0x4e9   : > { %v1327_v10 = vpop.permute.xlu2 %1326 }
 0x4ef   : > { %v1311_v34 = vpop.permute.xlu0 %1310 }
 0x4f0   : > { %v1323_v8 = vpop.permute.xlu1 %1322  ;;  %4455 = vmatmul.msk.f32.gmra.mxu3 %vm614_vm0, %v1311_v34 }
 0x4f1   : > { %v1333_v35 = vsel %vm614_vm0, %v1311_v34, %v1323_v8 }
 0x4f2   : > { %4451 = vmatmul.msk.f32.gmra.mxu2 %vm1020_vm1, %v1333_v35 }
 0x4f8   : > { %v1325_v37 = vpop.permute.xlu0 %1324  ;;  %4456 = vmatmul.msk.f32.gmra.mxu3 %vm614_vm0, %v1313_v9 }
 0x4f9   : > { %v1334_v40 = vsel %vm614_vm0, %v1313_v9, %v1325_v37 }
 0x4fa   : > { %4452 = vmatmul.msk.f32.gmra.mxu2 %vm1020_vm1, %v1334_v40 }
 0x500   : > { %v1315_v11 = vpop.permute.xlu1 %1314 }
 0x501   : > { %4457 = vmatmul.msk.f32.gmra.mxu3 %vm614_vm0, %v1315_v11  ;;  %v1335_v12 = vsel %vm614_vm0, %v1315_v11, %v1327_v10 }
 0x502   : > { %4453 = vmatmul.msk.f32.gmra.mxu2 %vm1020_vm1, %v1335_v12  ;;  %v752_v14 = vpop.f32.mrf.mxu0 }
 0x503   : > { %v753_v15 = vadd.f32 %v5468_v45, %v752_v14 }
 0x50a   : > { %v755_v24 = vpop.f32.mrf.mxu0 }
 0x50b   : > { %v756_v29 = vadd.f32 %v5468_v45, %v755_v24 }
 0x512   : > { %v758_v36 = vpop.f32.mrf.mxu0 }
 0x513   : > { %v759_v42 = vadd.f32 %v5468_v45, %v758_v36 }
 0x51a   : > { %v761_v60 = vpop.f32.mrf.mxu0 }
 0x51b   : > { %v762_v33 = vadd.f32 %v5468_v45, %v761_v60 }
 0x553   : > { %v1516_v17 = vpop.f32.mrf.mxu3 }
 0x554   : > { %v1528_v20 = vadd.f32 %v1516_v17, %v753_v15  ;;  %v1365_v21 = vpop.f32.mrf.mxu2 }
 0x555   : > { %v1366_v22 = vadd.f32 %v5611_v13, %v1365_v21 }
 0x556   : > { %4752 = vtanh.f32 %v1528_v20  ;;  %v1532_v45 = vmul.f32 0.5, %v1528_v20 }
 0x557   : > { %4754 = vtanh.f32 %v1366_v22  ;;  %v1377_v5 = vmul.f32 0.5, %v1366_v22 }
 0x55c   : > { %v4753_v39 = vpop.eup %4752 }
 0x55d   : > { %v4755_v27 = vpop.eup %4754  ;;  %1560 = vrot.lane.b32.xlu1 %v4753_v39, %s7174_s15 }
 0x55e   : > { %1405 = vrot.lane.b32.xlu0 %v4755_v27, %s7174_s15 }
 0x573   : > { %v1519_v44 = vpop.f32.mrf.mxu3 }
 0x574   : > { %v1529_v30 = vadd.f32 %v1519_v44, %v756_v29 }
 0x575   : > { %v1368_v31 = vpop.f32.mrf.mxu2 }
 0x576   : > { %4756 = vtanh.f32 %v1529_v30  ;;  %v1369_v32 = vadd.f32 %v5611_v13, %v1368_v31  ;;  %v1533_v29 = vmul.f32 0.5, %v1529_v30 }
 0x578   : > { %4758 = vtanh.f32 %v1369_v32  ;;  %v1378_v35 = vmul.f32 0.5, %v1369_v32 }
 0x57b   : > { %v1522_v43 = vpop.f32.mrf.mxu3 }
 0x57c   : > { %v4757_v48 = vpop.eup %4756  ;;  %v1530_v49 = vadd.f32 %v1522_v43, %v759_v42 }
 0x57d   : > { %1562 = vrot.lane.b32.xlu0 %v4757_v48, %s7174_s15  ;;  %v1371_v50 = vpop.f32.mrf.mxu2 }
 0x57e   : > { %v1372_v0 = vadd.f32 %v5611_v13, %v1371_v50  ;;  %v4759_v61 = vpop.eup %4758  ;;  %4760 = vtanh.f32 %v1530_v49  ;;  %v1534_v12 = vmul.f32 0.5, %v1530_v49 }
 0x57f   : > { %1407 = vrot.lane.b32.xlu2 %v4759_v61, %s7174_s15 }
 0x580   : > { %4762 = vtanh.f32 %v1372_v0  ;;  %v1379_v43 = vmul.f32 0.5, %v1372_v0 }
 0x584   : > { %v1525_v38 = vpop.f32.mrf.mxu3  ;;  %v4761_v47 = vpop.eup %4760 }
 0x585   : > { %v1531_v63 = vadd.f32 %v1525_v38, %v762_v33  ;;  %v1374_v16 = vpop.f32.mrf.mxu2 }
 0x586   : > { %v1375_v3 = vadd.f32 %v5611_v13, %v1374_v16  ;;  %v4763_v4 = vpop.eup %4762 }
 0x587   : > { %4764 = vtanh.f32 %v1531_v63  ;;  %1564 = vrot.lane.b32.xlu2 %v4761_v47, %s7174_s15  ;;  %1409 = vrot.lane.b32.xlu1 %v4763_v4, %s7174_s15  ;;  %v1535_v30 = vmul.f32 0.5, %v1531_v63 }
 0x588   : > { %4766 = vtanh.f32 %v1375_v3  ;;  %v1380_v50 = vmul.f32 0.5, %v1375_v3 }
 0x589   : > { %4768 = vtanh.f32 %v1532_v45 }
 0x58a   : > { %4770 = vtanh.f32 %v1377_v5 }
 0x58b   : > { %4772 = vtanh.f32 %v1378_v35 }
 0x58c   : > { %4774 = vtanh.f32 %v1534_v12 }
 0x58d   : > { %v4765_v23 = vpop.eup %4764  ;;  %4776 = vtanh.f32 %v1533_v29 }
 0x58e   : > { %v4767_v59 = vpop.eup %4766  ;;  %4778 = vtanh.f32 %v1379_v43 }
 0x58f   : > { %1411 = vrot.lane.b32.xlu0 %v4767_v59, %s7174_s15  ;;  %1566 = vrot.lane.b32.xlu1 %v4765_v23, %s7174_s15  ;;  %v4769_v34 = vpop.eup %4768  ;;  %4780 = vtanh.f32 %v1380_v50 }
 0x590   : > { %v4771_v8 = vpop.eup %4770  ;;  %v1540_v9 = vmul.f32 0.5, %v4769_v34  ;;  %4782 = vtanh.f32 %v1535_v30 }
 0x591   : > { %v1385_v37 = vmul.f32 0.5, %v4771_v8  ;;  %v4773_v20 = vpop.eup %4772 }
 0x592   : > { %v5776_v40 = vadd.f32 0.5, %v1540_v9  ;;  %v1386_v21 = vmul.f32 0.5, %v4773_v20  ;;  %v4775_v39 = vpop.eup %4774 }
 0x593   : > { %v5778_v11 = vadd.f32 0.5, %v1385_v37  ;;  %v1542_v44 = vmul.f32 0.5, %v4775_v39  ;;  %v4777_v42 = vpop.eup %4776 }
 0x594   : > { %v5784_v22 = vadd.f32 0.5, %v1386_v21  ;;  %v1541_v48 = vmul.f32 0.5, %v4777_v42  ;;  %v4779_v33 = vpop.eup %4778 }
 0x595   : > { %v5788_v36 = vadd.f32 0.5, %v1542_v44  ;;  %v1387_v38 = vmul.f32 0.5, %v4779_v33  ;;  %v4781_v16 = vpop.eup %4780  ;;  %v1397_v9 = vmul.f32 %v5778_v11, %v5667_v6 }
 0x596   : > { %v5792_v49 = vadd.f32 0.5, %v1541_v48  ;;  %v4783_v4 = vpop.eup %4782  ;;  %v1388_v59 = vmul.f32 0.5, %v4781_v16 }
 0x597   : > { %v5796_v47 = vadd.f32 0.5, %v1387_v38  ;;  %v1543_v45 = vmul.f32 0.5, %v4783_v4 }
 0x598   : > { %v5800_v63 = vadd.f32 0.5, %v1388_v59  ;;  %v1553_v20 = vmul.f32 %v5792_v49, %v5694_v26  ;;  %v1554_v26 = vmul.f32 %v5788_v36, %v5680_v19 }
 0x599   : > { %v5802_v3 = vadd.f32 0.5, %v1543_v45  ;;  %v1399_v50 = vmul.f32 %v5796_v47, %v5678_v18 }
 0x5cf   : > { %v1561_v10 = vpop.permute.xlu1 %1560 }
 0x5d0   : > { %v1572_v14 = vmul.f32 %v1561_v10, %v5776_v40  ;;  %v1406_v15 = vpop.permute.xlu0 %1405 }
 0x5d1   : > { %v1417_v17 = vmul.f32 %v1406_v15, %v5778_v11 }
 0x5d2   : > { %1580 = vrot.lane.b32.xlu0 %v1572_v14, %s5211_s16  ;;  %v1552_v14 = vmul.f32 %v5776_v40, %v5662_v2 }
 0x5d3   : > { %1425 = vrot.lane.b32.xlu2 %v1417_v17, %s5211_s16 }
 0x5d9   : > { %v1408_v27 = vpop.permute.xlu2 %1407 }
 0x5da   : > { %v1418_v24 = vmul.f32 %v1408_v27, %v5784_v22  ;;  %v1398_v27 = vmul.f32 %v5784_v22, %v5671_v28  ;;  %v1400_v28 = vmul.f32 %v5800_v63, %v5700_v41  ;;  %v1555_v41 = vmul.f32 %v5802_v3, %v5687_v25  ;;  %v586_v25 = vld [vmem:[%s5437_s20 + $0x60] sm:$0xff] }
 0x5db   : > { %4422 = vmatmul.msk.f32.gmra.mxu0 %vm614_vm0, %v586_v25 }
 0x5dc   : > { %1427 = vrot.lane.b32.xlu1 %v1418_v24, %s5211_s16 }
 0x5e1   : > { %v1565_v31 = vpop.permute.xlu2 %1564 }
 0x5e2   : > { %v1574_v32 = vmul.f32 %v1565_v31, %v5788_v36 }
 0x5e4   : > { %1584 = vrot.lane.b32.xlu1 %v1574_v32, %s5211_s16 }
 0x5ef   : > { %v1563_v60 = vpop.permute.xlu0 %1562 }
 0x5f0   : > { %v1573_v61 = vmul.f32 %v1563_v60, %v5792_v49 }
 0x5f2   : > { %1582 = vrot.lane.b32.xlu2 %v1573_v61, %s5211_s16 }
 0x5f9   : > { %v1410_v0 = vpop.permute.xlu1 %1409 }
 0x5fa   : > { %v1419_v23 = vmul.f32 %v1410_v0, %v5796_v47 }
 0x5fc   : > { %1429 = vrot.lane.b32.xlu0 %v1419_v23, %s5211_s16 }
 0x601   : > { %v1412_v5 = vpop.permute.xlu0 %1411  ;;  %v1567_v34 = vpop.permute.xlu1 %1566 }
 0x602   : > { %v1420_v8 = vmul.f32 %v1412_v5, %v5800_v63  ;;  %v1575_v35 = vmul.f32 %v1567_v34, %v5802_v3 }
 0x604   : > { %1431 = vrot.lane.b32.xlu2 %v1420_v8, %s5211_s16  ;;  %1586 = vrot.lane.b32.xlu0 %v1575_v35, %s5211_s16 }
 0x62d   : > { %v1426_v37 = vpop.permute.xlu2 %1425 }
 0x62e   : > { %v5810_v10 = vadd.f32 %v1426_v37, %v1397_v9 }
 0x630   : > { %4784 = vtanh.f32 %v5810_v10 }
 0x636   : > { %v4785_v12 = vpop.eup %4784 }
 0x637   : > { %1449 = vrot.lane.b32.xlu1 %v4785_v12, %s7174_s15 }
 0x644   : > { %v1581_v15 = vpop.permute.xlu0 %1580 }
 0x645   : > { %v5816_v17 = vadd.f32 %v1581_v15, %v1552_v14  ;;  %v588_v15 = vld [vmem:[%s5437_s20 + $0x70] sm:$0xff] }
 0x647   : > { %4786 = vtanh.f32 %v5816_v17 }
 0x64c   : > { %v1583_v6 = vpop.permute.xlu2 %1582 }
 0x64d   : > { %v4787_v21 = vpop.eup %4786  ;;  %v5821_v39 = vadd.f32 %v1583_v6, %v1553_v20  ;;  %v5910_v20 = vld [vmem:[%s7183_s2 + $0x8] sm:$0xff]  ;;  %v5919_v6 = vld [vmem:[%s7183_s2] sm:$0xff] }
 0x64e   : > { %1604 = vrot.lane.b32.xlu2 %v4787_v21, %s7174_s15  ;;  %v1428_v2 = vpop.permute.xlu1 %1427 }
 0x64f   : > { %4788 = vtanh.f32 %v5821_v39  ;;  %v5827_v24 = vadd.f32 %v1428_v2, %v1398_v27 }
 0x651   : > { %4790 = vtanh.f32 %v5827_v24 }
 0x655   : > { %v4789_v29 = vpop.eup %4788 }
 0x656   : > { %1606 = vrot.lane.b32.xlu1 %v4789_v29, %s7174_s15  ;;  %v1585_v44 = vpop.permute.xlu1 %1584 }
 0x657   : > { %v4791_v31 = vpop.eup %4790  ;;  %v5833_v32 = vadd.f32 %v1585_v44, %v1554_v26 }
 0x658   : > { %1451 = vrot.lane.b32.xlu0 %v4791_v31, %s7174_s15 }
 0x659   : > { %4792 = vtanh.f32 %v5833_v32 }
 0x65e   : > { %v1432_v42 = vpop.permute.xlu2 %1431 }
 0x65f   : > { %v5839_v43 = vadd.f32 %v1432_v42, %v1400_v28  ;;  %v4793_v48 = vpop.eup %4792 }
 0x660   : > { %1608 = vrot.lane.b32.xlu0 %v4793_v48, %s7174_s15 }
 0x661   : > { %4794 = vtanh.f32 %v5839_v43 }
 0x667   : > { %v4795_v19 = vpop.eup %4794 }
 0x668   : > { %1455 = vrot.lane.b32.xlu1 %v4795_v19, %s7174_s15 }
 0x66e   : > { %v1430_v60 = vpop.permute.xlu0 %1429 }
 0x66f   : > { %v5846_v30 = vadd.f32 %v1430_v60, %v1399_v50 }
 0x671   : > { %4796 = vtanh.f32 %v5846_v30 }
 0x676   : > { %v1587_v61 = vpop.permute.xlu0 %1586 }
 0x677   : > { %v4797_v33 = vpop.eup %4796  ;;  %v5851_v38 = vadd.f32 %v1587_v61, %v1555_v41 }
 0x678   : > { %1453 = vrot.lane.b32.xlu2 %v4797_v33, %s7174_s15 }
 0x679   : > { %4798 = vtanh.f32 %v5851_v38 }
 0x67f   : > { %v4799_v16 = vpop.eup %4798 }
 0x680   : > { %1610 = vrot.lane.b32.xlu2 %v4799_v16, %s7174_s15 }
 0x6a8   : > { %v1605_v18 = vpop.permute.xlu2 %1604 }
 0x6a9   : > { %v1616_v4 = vmul.f32 %v1605_v18, %v5776_v40  ;;  %v1450_v0 = vpop.permute.xlu1 %1449 }
 0x6aa   : > { %v5858_v23 = vmul.f32 %v1450_v0, %v5778_v11 }
 0x6ab   : > { %1624 = vrot.lane.b32.xlu0 %v1616_v4, %s5211_s16 }
 0x6ac   : > { %1636 = vrot.lane.b32.xlu1 %v5858_v23, %s7174_s15 }
 0x6c8   : > { %v1607_v59 = vpop.permute.xlu1 %1606 }
 0x6c9   : > { %v1617_v45 = vmul.f32 %v1607_v59, %v5792_v49 }
 0x6ca   : > { %v1452_v5 = vpop.permute.xlu0 %1451 }
 0x6cb   : > { %1626 = vrot.lane.b32.xlu2 %v1617_v45, %s5211_s16  ;;  %v5868_v40 = vmul.f32 %v1452_v5, %v5784_v22 }
 0x6cd   : > { %1638 = vrot.lane.b32.xlu0 %v5868_v40, %s7174_s15 }
 0x6d2   : > { %v1609_v11 = vpop.permute.xlu0 %1608  ;;  %v1454_v34 = vpop.permute.xlu2 %1453 }
 0x6d3   : > { %v1618_v8 = vmul.f32 %v1609_v11, %v5788_v36  ;;  %v5874_v35 = vmul.f32 %v1454_v34, %v5796_v47  ;;  %v587_v36 = vld [vmem:[%s5437_s20 + $0x68] sm:$0xff] }
 0x6d4   : > { %4423 = vmatmul.msk.f32.gmra.mxu0 %vm614_vm0, %v587_v36 }
 0x6d5   : > { %1628 = vrot.lane.b32.xlu1 %v1618_v8, %s5211_s16  ;;  %1640 = vrot.lane.b32.xlu2 %v5874_v35, %s7174_s15 }
 0x6da   : > { %v1456_v49 = vpop.permute.xlu1 %1455  ;;  %v1611_v22 = vpop.permute.xlu2 %1610 }
 0x6db   : > { %v5880_v9 = vmul.f32 %v1456_v49, %v5800_v63  ;;  %v1619_v37 = vmul.f32 %v1611_v22, %v5802_v3  ;;  %v5893_v63 = vld [vmem:[%s7183_s2 + $0x18] sm:$0xff]  ;;  %v5901_v3 = vld [vmem:[%s7183_s2 + $0x10] sm:$0xff] }
 0x6dc   : > { %4424 = vmatmul.msk.f32.gmra.mxu0 %vm614_vm0, %v588_v15 }
 0x6dd   : > { %1642 = vrot.lane.b32.xlu1 %v5880_v9, %s7174_s15  ;;  %1630 = vrot.lane.b32.xlu0 %v1619_v37, %s5211_s16 }
 0x71d   : > { %v1625_v47 = vpop.permute.xlu0 %1624 }
 0x71e   : > { %v1637_v12 = vpop.permute.xlu1 %1636  ;;  %4462 = vmatmul.msk.f32.vlgmr.msrb.gmra.mxu1 %vm614_vm0, %v1625_v47 }
 0x71f   : > { %v1648_v14 = vsel %vm614_vm0, %v1625_v47, %v1637_v12  ;;  %2775 = vmatpush.msrb.mxu1 %v5893_v63 }
 0x720   : > { %4458 = vmatmul.msk.f32.vlgmr.msra.gmra.mxu2 %vm1020_vm1, %v1648_v14 }
 0x721   : > { %2620 = vmatpush.msra.mxu2 %v5507_v51  ;;  %2776 = vmatpush.msrb.mxu1 %v5901_v3 }
 0x723   : > { %2621 = vmatpush.msra.mxu2 %v5512_v52  ;;  %2777 = vmatpush.msrb.mxu1 %v5910_v20  ;;  %v589_v52 = vld [vmem:[%s5437_s20 + $0x78] sm:$0xff] }
 0x724   : > { %4425 = vmatmul.msk.f32.gmra.mxu0 %vm614_vm0, %v589_v52 }
 0x725   : > { %v1627_v51 = vpop.permute.xlu2 %1626  ;;  %2622 = vmatpush.msra.mxu2 %v5519_v53  ;;  %2778 = vmatpush.msrb.mxu1 %v5919_v6 }
 0x726   : > { %4463 = vmatmul.msk.f32.gmra.mxu1 %vm614_vm0, %v1627_v51 }
 0x727   : > { %2623 = vmatpush.msra.mxu2 %v5526_v54 }
 0x729   : > { %2624 = vmatpush.msra.mxu2 %v5533_v55 }
 0x72b   : > { %2625 = vmatpush.msra.mxu2 %v5540_v56 }
 0x72d   : > { %2626 = vmatpush.msra.mxu2 %v5547_v57  ;;  %v764_v57 = vpop.f32.mrf.mxu0 }
 0x72f   : > { %2627 = vmatpush.msra.mxu2 %v5559_v62  ;;  %v1641_v21 = vpop.permute.xlu2 %1640  ;;  %v5939_v62 = vld [vmem:[%s7163_s3] ss:$0 sm:$0xff] }
 0x730   : > { %v765_v26 = vadd.f32 %v5939_v62, %v764_v57 }
 0x73f   : > { %v1639_v53 = vpop.permute.xlu0 %1638 }
 0x740   : > { %v1649_v54 = vsel %vm614_vm0, %v1627_v51, %v1639_v53 }
 0x741   : > { %4459 = vmatmul.msk.f32.gmra.mxu2 %vm1020_vm1, %v1649_v54 }
 0x747   : > { %v1629_v27 = vpop.permute.xlu1 %1628 }
 0x748   : > { %4464 = vmatmul.msk.f32.gmra.mxu1 %vm614_vm0, %v1629_v27  ;;  %v1650_v55 = vsel %vm614_vm0, %v1629_v27, %v1641_v21 }
 0x749   : > { %4460 = vmatmul.msk.f32.gmra.mxu2 %vm1020_vm1, %v1650_v55 }
 0x74f   : > { %v1643_v2 = vpop.permute.xlu1 %1642  ;;  %v1631_v29 = vpop.permute.xlu0 %1630 }
 0x750   : > { %4465 = vmatmul.msk.f32.gmra.mxu1 %vm614_vm0, %v1631_v29  ;;  %v1651_v56 = vsel %vm614_vm0, %v1631_v29, %v1643_v2 }
 0x751   : > { %4461 = vmatmul.msk.f32.gmra.mxu2 %vm1020_vm1, %v1651_v56  ;;  %v767_v28 = vpop.f32.mrf.mxu0 }
 0x752   : > { %v768_v42 = vadd.f32 %v5939_v62, %v767_v28 }
 0x759   : > { %v770_v16 = vpop.f32.mrf.mxu0 }
 0x75a   : > { %v771_v18 = vadd.f32 %v5939_v62, %v770_v16 }
 0x79b   : > { %v1832_v44 = vpop.f32.mrf.mxu1 }
 0x79c   : > { %v1844_v31 = vadd.f32 %v1832_v44, %v765_v26 }
 0x79e   : > { %4800 = vtanh.f32 %v1844_v31  ;;  %v1848_v51 = vmul.f32 0.5, %v1844_v31 }
 0x7a1   : > { %v773_v45 = vpop.f32.mrf.mxu0 }
 0x7a2   : > { %v774_v5 = vadd.f32 %v5939_v62, %v773_v45 }
 0x7a3   : > { %v1681_v48 = vpop.f32.mrf.mxu2  ;;  %v1835_v19 = vpop.f32.mrf.mxu1 }
 0x7a4   : > { %v4801_v50 = vpop.eup %4800  ;;  %v1682_v60 = vadd.f32 %v5611_v13, %v1681_v48  ;;  %v1845_v41 = vadd.f32 %v1835_v19, %v768_v42 }
 0x7a5   : > { %1876 = vrot.lane.b32.xlu2 %v4801_v50, %s7174_s15 }
 0x7a6   : > { %4802 = vtanh.f32 %v1682_v60  ;;  %v1849_v55 = vmul.f32 0.5, %v1845_v41 }
 0x7a7   : > { %4804 = vtanh.f32 %v1845_v41 }
 0x7ac   : > { %v4803_v61 = vpop.eup %4802 }
 0x7ad   : > { %v4805_v33 = vpop.eup %4804  ;;  %1721 = vrot.lane.b32.xlu0 %v4803_v61, %s7174_s15 }
 0x7ae   : > { %1878 = vrot.lane.b32.xlu1 %v4805_v33, %s7174_s15 }
 0x7c4   : > { %v1684_v4 = vpop.f32.mrf.mxu2 }
 0x7c5   : > { %v1685_v0 = vadd.f32 %v5611_v13, %v1684_v4  ;;  %v1838_v25 = vpop.f32.mrf.mxu1 }
 0x7c6   : > { %v1846_v59 = vadd.f32 %v1838_v25, %v771_v18 }
 0x7c7   : > { %4806 = vtanh.f32 %v1685_v0  ;;  %v1694_v29 = vmul.f32 0.5, %v1685_v0 }
 0x7c8   : > { %4808 = vtanh.f32 %v1846_v59  ;;  %v1850_v0 = vmul.f32 0.5, %v1846_v59 }
 0x7cc   : > { %v1687_v11 = vpop.f32.mrf.mxu2 }
 0x7cd   : > { %v4807_v34 = vpop.eup %4806  ;;  %v1688_v8 = vadd.f32 %v5611_v13, %v1687_v11  ;;  %v1841_v49 = vpop.f32.mrf.mxu1 }
 0x7ce   : > { %v4809_v22 = vpop.eup %4808  ;;  %v1847_v37 = vadd.f32 %v1841_v49, %v774_v5  ;;  %1723 = vrot.lane.b32.xlu2 %v4807_v34, %s7174_s15 }
 0x7cf   : > { %4810 = vtanh.f32 %v1688_v8  ;;  %1880 = vrot.lane.b32.xlu0 %v4809_v22, %s7174_s15  ;;  %v1695_v11 = vmul.f32 0.5, %v1688_v8 }
 0x7d0   : > { %4812 = vtanh.f32 %v1847_v37  ;;  %v1851_v42 = vmul.f32 0.5, %v1847_v37 }
 0x7d4   : > { %v1690_v36 = vpop.f32.mrf.mxu2 }
 0x7d5   : > { %v4811_v47 = vpop.eup %4810  ;;  %v1691_v12 = vadd.f32 %v5611_v13, %v1690_v36  ;;  %v1693_v13 = vmul.f32 0.5, %v1682_v60 }
 0x7d6   : > { %v4813_v14 = vpop.eup %4812  ;;  %1725 = vrot.lane.b32.xlu1 %v4811_v47, %s7174_s15 }
 0x7d7   : > { %4814 = vtanh.f32 %v1691_v12  ;;  %1882 = vrot.lane.b32.xlu2 %v4813_v14, %s7174_s15  ;;  %v1696_v22 = vmul.f32 0.5, %v1691_v12 }
 0x7d8   : > { %4816 = vtanh.f32 %v1848_v51 }
 0x7d9   : > { %4818 = vtanh.f32 %v1693_v13 }
 0x7da   : > { %4820 = vtanh.f32 %v1849_v55 }
 0x7db   : > { %4822 = vtanh.f32 %v1694_v29 }
 0x7dc   : > { %4824 = vtanh.f32 %v1851_v42 }
 0x7dd   : > { %v4815_v15 = vpop.eup %4814  ;;  %4826 = vtanh.f32 %v1850_v0 }
 0x7de   : > { %1727 = vrot.lane.b32.xlu0 %v4815_v15, %s7174_s15  ;;  %v4817_v52 = vpop.eup %4816  ;;  %4828 = vtanh.f32 %v1695_v11 }
 0x7df   : > { %v1856_v53 = vmul.f32 0.5, %v4817_v52  ;;  %v4819_v2 = vpop.eup %4818  ;;  %4830 = vtanh.f32 %v1696_v22 }
 0x7e0   : > { %v4821_v56 = vpop.eup %4820  ;;  %v1701_v57 = vmul.f32 0.5, %v4819_v2 }
 0x7e1   : > { %v5957_v54 = vadd.f32 0.5, %v1856_v53  ;;  %v1857_v26 = vmul.f32 0.5, %v4821_v56  ;;  %v4823_v50 = vpop.eup %4822 }
 0x7e2   : > { %v5961_v44 = vadd.f32 0.5, %v1701_v57  ;;  %v1702_v41 = vmul.f32 0.5, %v4823_v50  ;;  %v4825_v16 = vpop.eup %4824 }
 0x7e3   : > { %v5963_v28 = vadd.f32 0.5, %v1857_v26  ;;  %v1859_v4 = vmul.f32 0.5, %v4825_v16  ;;  %v4827_v34 = vpop.eup %4826  ;;  %v1868_v13 = vmul.f32 %v5957_v54, %v5816_v17 }
 0x7e4   : > { %v5969_v61 = vadd.f32 0.5, %v1702_v41  ;;  %v1858_v49 = vmul.f32 0.5, %v4827_v34  ;;  %v4829_v37 = vpop.eup %4828  ;;  %v1713_v29 = vmul.f32 %v5961_v44, %v5810_v10 }
 0x7e5   : > { %v5973_v25 = vadd.f32 0.5, %v1859_v4  ;;  %v1703_v14 = vmul.f32 0.5, %v4829_v37  ;;  %v4831_v51 = vpop.eup %4830  ;;  %v1869_v17 = vmul.f32 %v5963_v28, %v5821_v39 }
 0x7e6   : > { %v5977_v36 = vadd.f32 0.5, %v1858_v49  ;;  %v1704_v53 = vmul.f32 0.5, %v4831_v51  ;;  %v1714_v10 = vmul.f32 %v5969_v61, %v5827_v24 }
 0x7e7   : > { %v5981_v15 = vadd.f32 0.5, %v1703_v14  ;;  %v1871_v39 = vmul.f32 %v5973_v25, %v5851_v38 }
 0x7e8   : > { %v5985_v12 = vadd.f32 0.5, %v1704_v53 }
 0x7e9   : > { %v1715_v34 = vmul.f32 %v5981_v15, %v5846_v30 }
 0x7ff   : > { %v1877_v21 = vpop.permute.xlu2 %1876 }
 0x800   : > { %v1888_v27 = vmul.f32 %v1877_v21, %v5957_v54 }
 0x802   : > { %1896 = vrot.lane.b32.xlu1 %v1888_v27, %s5211_s16 }
 0x81f   : > { %v1722_v31 = vpop.permute.xlu0 %1721 }
 0x820   : > { %v1733_v48 = vmul.f32 %v1722_v31, %v5961_v44  ;;  %v1879_v19 = vpop.permute.xlu1 %1878 }
 0x821   : > { %v1889_v60 = vmul.f32 %v1879_v19, %v5963_v28 }
 0x822   : > { %1741 = vrot.lane.b32.xlu2 %v1733_v48, %s5211_s16 }
 0x823   : > { %1898 = vrot.lane.b32.xlu0 %v1889_v60, %s5211_s16  ;;  %v1870_v60 = vmul.f32 %v5977_v36, %v5833_v32  ;;  %v1716_v32 = vmul.f32 %v5985_v12, %v5839_v43 }
 0x828   : > { %v1724_v33 = vpop.permute.xlu2 %1723 }
 0x829   : > { %v1734_v18 = vmul.f32 %v1724_v33, %v5969_v61 }
 0x82b   : > { %1743 = vrot.lane.b32.xlu1 %v1734_v18, %s5211_s16 }
 0x831   : > { %v1883_v45 = vpop.permute.xlu2 %1882 }
 0x832   : > { %v1891_v5 = vmul.f32 %v1883_v45, %v5973_v25 }
 0x834   : > { %1902 = vrot.lane.b32.xlu1 %v1891_v5, %s5211_s16 }
 0x841   : > { %v1881_v47 = vpop.permute.xlu0 %1880 }
 0x842   : > { %v1890_v59 = vmul.f32 %v1881_v47, %v5977_v36 }
 0x844   : > { %1900 = vrot.lane.b32.xlu2 %v1890_v59, %s5211_s16 }
 0x848   : > { %v1726_v52 = vpop.permute.xlu1 %1725 }
 0x849   : > { %v1735_v8 = vmul.f32 %v1726_v52, %v5981_v15 }
 0x84b   : > { %1745 = vrot.lane.b32.xlu0 %v1735_v8, %s5211_s16 }
 0x850   : > { %v1728_v21 = vpop.permute.xlu0 %1727 }
 0x851   : > { %v1736_v27 = vmul.f32 %v1728_v21, %v5985_v12 }
 0x853   : > { %1747 = vrot.lane.b32.xlu2 %v1736_v27, %s5211_s16 }
 0x874   : > { %v1897_v55 = vpop.permute.xlu1 %1896 }
 0x875   : > { %v5991_v2 = vadd.f32 %v1897_v55, %v1868_v13  ;;  %v590_v13 = vld [vmem:[%s5437_s20 + $0x80] sm:$0xff] }
 0x876   : > { %4426 = vmatmul.msk.f32.gmra.mxu0 %vm614_vm0, %v590_v13 }
 0x877   : > { %4832 = vtanh.f32 %v5991_v2 }
 0x87c   : > { %v1742_v56 = vpop.permute.xlu2 %1741 }
 0x87d   : > { %v4833_v57 = vpop.eup %4832  ;;  %v5996_v26 = vadd.f32 %v1742_v56, %v1713_v29  ;;  %v6100_v56 = vld [vmem:[%s7164_s4 + $0x20] sm:$0xff] }
 0x87e   : > { %1920 = vrot.lane.b32.xlu0 %v4833_v57, %s7174_s15 }
 0x87f   : > { %4834 = vtanh.f32 %v5996_v26 }
 0x885   : > { %v4835_v31 = vpop.eup %4834 }
 0x886   : > { %1765 = vrot.lane.b32.xlu1 %v4835_v31, %s7174_s15 }
 0x895   : > { %v1899_v42 = vpop.permute.xlu0 %1898 }
 0x896   : > { %v6003_v48 = vadd.f32 %v1899_v42, %v1869_v17  ;;  %v6107_v17 = vld [vmem:[%s7164_s4 + $0x18] sm:$0xff] }
 0x897   : > { %v593_v42 = vld [vmem:[%s5437_s20 + $0x98] sm:$0xff] }
 0x898   : > { %4836 = vtanh.f32 %v6003_v48 }
 0x89d   : > { %v1744_v50 = vpop.permute.xlu1 %1743 }
 0x89e   : > { %v4837_v19 = vpop.eup %4836  ;;  %v6010_v41 = vadd.f32 %v1744_v50, %v1714_v10  ;;  %v1901_v33 = vpop.permute.xlu2 %1900  ;;  %v6116_v10 = vld [vmem:[%s7164_s4 + $0x10] sm:$0xff]  ;;  %v6128_v50 = vld [vmem:[%s7164_s4] sm:$0xff] }
 0x89f   : > { %1922 = vrot.lane.b32.xlu2 %v4837_v19, %s7174_s15  ;;  %v6013_v16 = vadd.f32 %v1901_v33, %v1870_v60  ;;  %v6122_v19 = vld [vmem:[%s7164_s4 + $0x8] sm:$0xff] }
 0x8a0   : > { %4838 = vtanh.f32 %v6010_v41 }
 0x8a1   : > { %4840 = vtanh.f32 %v6013_v16 }
 0x8a6   : > { %v4839_v24 = vpop.eup %4838  ;;  %v1903_v18 = vpop.permute.xlu1 %1902 }
 0x8a7   : > { %v4841_v4 = vpop.eup %4840  ;;  %v6019_v0 = vadd.f32 %v1903_v18, %v1871_v39  ;;  %1767 = vrot.lane.b32.xlu0 %v4839_v24, %s7174_s15 }
 0x8a8   : > { %1924 = vrot.lane.b32.xlu1 %v4841_v4, %s7174_s15 }
 0x8a9   : > { %4842 = vtanh.f32 %v6019_v0 }
 0x8ad   : > { %v1748_v45 = vpop.permute.xlu2 %1747 }
 0x8ae   : > { %v6026_v5 = vadd.f32 %v1748_v45, %v1716_v32 }
 0x8af   : > { %v4843_v11 = vpop.eup %4842 }
 0x8b0   : > { %4844 = vtanh.f32 %v6026_v5  ;;  %1926 = vrot.lane.b32.xlu0 %v4843_v11, %s7174_s15 }
 0x8b6   : > { %v4845_v38 = vpop.eup %4844 }
 0x8b7   : > { %1771 = vrot.lane.b32.xlu1 %v4845_v38, %s7174_s15 }
 0x8bd   : > { %v1746_v49 = vpop.permute.xlu0 %1745 }
 0x8be   : > { %v6033_v22 = vadd.f32 %v1746_v49, %v1715_v34 }
 0x8c0   : > { %4846 = vtanh.f32 %v6033_v22 }
 0x8c6   : > { %v4847_v43 = vpop.eup %4846 }
 0x8c7   : > { %1769 = vrot.lane.b32.xlu2 %v4847_v43, %s7174_s15 }
 0x8f0   : > { %v1921_v37 = vpop.permute.xlu0 %1920 }
 0x8f1   : > { %v1932_v47 = vmul.f32 %v1921_v37, %v5957_v54 }
 0x8f3   : > { %1940 = vrot.lane.b32.xlu2 %v1932_v47, %s5211_s16  ;;  %v776_v32 = vpop.f32.mrf.mxu0 }
 0x8f4   : > { %v777_v45 = vadd.f32 %v5939_v62, %v776_v32 }
 0x8f8   : > { %v1766_v59 = vpop.permute.xlu1 %1765 }
 0x8f9   : > { %v6040_v14 = vmul.f32 %v1766_v59, %v5961_v44  ;;  %v1923_v51 = vpop.permute.xlu2 %1922 }
 0x8fa   : > { %v1933_v30 = vmul.f32 %v1923_v51, %v5963_v28  ;;  %v6143_v51 = vld [vmem:[%s7165_s5] ss:$0 sm:$0xff] }
 0x8fb   : > { %1952 = vrot.lane.b32.xlu0 %v6040_v14, %s7174_s15 }
 0x8fc   : > { %1942 = vrot.lane.b32.xlu1 %v1933_v30, %s5211_s16 }
 0x919   : > { %v1768_v52 = vpop.permute.xlu0 %1767 }
 0x91a   : > { %v6047_v8 = vmul.f32 %v1768_v52, %v5969_v61  ;;  %v1925_v54 = vpop.permute.xlu1 %1924 }
 0x91b   : > { %v1934_v53 = vmul.f32 %v1925_v54, %v5977_v36 }
 0x91c   : > { %1954 = vrot.lane.b32.xlu2 %v6047_v8, %s7174_s15 }
 0x91d   : > { %1944 = vrot.lane.b32.xlu0 %v1934_v53, %s5211_s16 }
 0x921   : > { %v1770_v44 = vpop.permute.xlu2 %1769 }
 0x922   : > { %v6054_v28 = vmul.f32 %v1770_v44, %v5981_v15  ;;  %v1927_v21 = vpop.permute.xlu0 %1926 }
 0x923   : > { %v1935_v27 = vmul.f32 %v1927_v21, %v5973_v25  ;;  %v591_v25 = vld [vmem:[%s5437_s20 + $0x88] sm:$0xff] }
 0x924   : > { %1956 = vrot.lane.b32.xlu1 %v6054_v28, %s7174_s15  ;;  %4427 = vmatmul.msk.f32.gmra.mxu0 %vm614_vm0, %v591_v25 }
 0x925   : > { %1946 = vrot.lane.b32.xlu2 %v1935_v27, %s5211_s16 }
 0x929   : > { %v1772_v61 = vpop.permute.xlu1 %1771 }
 0x92a   : > { %v6061_v36 = vmul.f32 %v1772_v61, %v5985_v12 }
 0x92c   : > { %1958 = vrot.lane.b32.xlu0 %v6061_v36, %s7174_s15 }
 0x94d   : > { %v1941_v15 = vpop.permute.xlu2 %1940 }
 0x94e   : > { %4470 = vmatmul.msk.f32.vlgmr.msrb.gmra.mxu2 %vm614_vm0, %v1941_v15 }
 0x94f   : > { %3091 = vmatpush.msrb.mxu2 %v5893_v63  ;;  %v6080_v63 = vld [vmem:[%s7164_s4 + $0x38] sm:$0xff] }
 0x951   : > { %3092 = vmatpush.msrb.mxu2 %v5901_v3  ;;  %v592_v3 = vld [vmem:[%s5437_s20 + $0x90] sm:$0xff] }
 0x952   : > { %4428 = vmatmul.msk.f32.gmra.mxu0 %vm614_vm0, %v592_v3 }
 0x953   : > { %3093 = vmatpush.msrb.mxu2 %v5910_v20  ;;  %v6088_v20 = vld [vmem:[%s7164_s4 + $0x30] sm:$0xff] }
 0x955   : > { %3094 = vmatpush.msrb.mxu2 %v5919_v6  ;;  %v6094_v6 = vld [vmem:[%s7164_s4 + $0x28] sm:$0xff] }
 0x95a   : > { %4429 = vmatmul.msk.f32.gmra.mxu0 %vm614_vm0, %v593_v42 }
 0x96d   : > { %v1953_v12 = vpop.permute.xlu0 %1952 }
 0x96e   : > { %v1964_v55 = vsel %vm614_vm0, %v1941_v15, %v1953_v12  ;;  %v1943_v29 = vpop.permute.xlu1 %1942 }
 0x96f   : > { %4471 = vmatmul.msk.f32.gmra.mxu2 %vm614_vm0, %v1943_v29  ;;  %4466 = vmatmul.msk.f32.vlgmr.msra.gmra.mxu3 %vm1020_vm1, %v1964_v55 }
 0x970   : > { %2936 = vmatpush.msra.mxu3 %v6080_v63 }
 0x972   : > { %2937 = vmatpush.msra.mxu3 %v6088_v20 }
 0x974   : > { %2938 = vmatpush.msra.mxu3 %v6094_v6 }
 0x976   : > { %2939 = vmatpush.msra.mxu3 %v6100_v56  ;;  %v1955_v57 = vpop.permute.xlu2 %1954 }
 0x977   : > { %v1965_v31 = vsel %vm614_vm0, %v1943_v29, %v1955_v57 }
 0x978   : > { %2940 = vmatpush.msra.mxu3 %v6107_v17 }
 0x979   : > { %4467 = vmatmul.msk.f32.gmra.mxu3 %vm1020_vm1, %v1965_v31 }
 0x97a   : > { %2941 = vmatpush.msra.mxu3 %v6116_v10 }
 0x97c   : > { %2942 = vmatpush.msra.mxu3 %v6122_v19 }
 0x97e   : > { %2943 = vmatpush.msra.mxu3 %v6128_v50 }
 0x97f   : > { %v1947_v39 = vpop.permute.xlu2 %1946 }
 0x98f   : > { %v1945_v60 = vpop.permute.xlu0 %1944 }
 0x990   : > { %4472 = vmatmul.msk.f32.gmra.mxu2 %vm614_vm0, %v1945_v60 }
 0x996   : > { %v1957_v33 = vpop.permute.xlu1 %1956 }
 0x997   : > { %v1966_v24 = vsel %vm614_vm0, %v1945_v60, %v1957_v33 }
 0x998   : > { %4468 = vmatmul.msk.f32.gmra.mxu3 %vm1020_vm1, %v1966_v24  ;;  %4473 = vmatmul.msk.f32.gmra.mxu2 %vm614_vm0, %v1947_v39 }
 0x99e   : > { %v1959_v18 = vpop.permute.xlu0 %1958 }
 0x99f   : > { %v1967_v4 = vsel %vm614_vm0, %v1947_v39, %v1959_v18 }
 0x9a0   : > { %4469 = vmatmul.msk.f32.gmra.mxu3 %vm1020_vm1, %v1967_v4 }
 0x9a1   : > { %v779_v49 = vpop.f32.mrf.mxu0 }
 0x9a2   : > { %v780_v43 = vadd.f32 %v5939_v62, %v779_v49 }
 0x9cf   : > { %v782_v27 = vpop.f32.mrf.mxu0 }
 0x9d0   : > { %v783_v61 = vadd.f32 %v5939_v62, %v782_v27 }
 0x9d1   : > { %v2148_v11 = vpop.f32.mrf.mxu2 }
 0x9d2   : > { %v2160_v38 = vadd.f32 %v2148_v11, %v777_v45 }
 0x9d4   : > { %4848 = vtanh.f32 %v2160_v38  ;;  %v2164_v18 = vmul.f32 0.5, %v2160_v38 }
 0x9d7   : > { %v785_v25 = vpop.f32.mrf.mxu0 }
 0x9d8   : > { %v786_v12 = vadd.f32 %v5939_v62, %v785_v25 }
 0x9da   : > { %v4849_v34 = vpop.eup %4848 }
 0x9db   : > { %2192 = vrot.lane.b32.xlu1 %v4849_v34, %s7174_s15 }
 0x9f2   : > { %v2151_v37 = vpop.f32.mrf.mxu2  ;;  %v1997_v47 = vpop.f32.mrf.mxu3 }
 0x9f3   : > { %v2161_v59 = vadd.f32 %v2151_v37, %v780_v43  ;;  %v1998_v30 = vadd.f32 %v6143_v51, %v1997_v47 }
 0x9f5   : > { %4850 = vtanh.f32 %v2161_v59  ;;  %v2009_v32 = vmul.f32 0.5, %v1998_v30  ;;  %v2165_v38 = vmul.f32 0.5, %v2161_v59 }
 0x9f6   : > { %4852 = vtanh.f32 %v1998_v30 }
 0x9fb   : > { %v4851_v52 = vpop.eup %4850 }
 0x9fc   : > { %v4853_v54 = vpop.eup %4852  ;;  %2194 = vrot.lane.b32.xlu0 %v4851_v52, %s7174_s15  ;;  %v2000_v53 = vpop.f32.mrf.mxu3 }
 0x9fd   : > { %v2001_v44 = vadd.f32 %v6143_v51, %v2000_v53  ;;  %2037 = vrot.lane.b32.xlu2 %v4853_v54, %s7174_s15 }
 0x9ff   : > { %4854 = vtanh.f32 %v2001_v44  ;;  %v2010_v30 = vmul.f32 0.5, %v2001_v44 }
 0xa05   : > { %v4855_v21 = vpop.eup %4854 }
 0xa06   : > { %2039 = vrot.lane.b32.xlu1 %v4855_v21, %s7174_s15 }
 0xa13   : > { %v2154_v13 = vpop.f32.mrf.mxu2 }
 0xa14   : > { %v2162_v15 = vadd.f32 %v2154_v13, %v783_v61 }
 0xa16   : > { %4856 = vtanh.f32 %v2162_v15  ;;  %v2166_v21 = vmul.f32 0.5, %v2162_v15 }
 0xa1b   : > { %v2003_v55 = vpop.f32.mrf.mxu3  ;;  %v2157_v29 = vpop.f32.mrf.mxu2 }
 0xa1c   : > { %v4857_v3 = vpop.eup %4856  ;;  %v2004_v57 = vadd.f32 %v6143_v51, %v2003_v55  ;;  %v2163_v31 = vadd.f32 %v2157_v29, %v786_v12 }
 0xa1d   : > { %2196 = vrot.lane.b32.xlu2 %v4857_v3, %s7174_s15 }
 0xa1e   : > { %4858 = vtanh.f32 %v2004_v57 }
 0xa1f   : > { %4860 = vtanh.f32 %v2163_v31 }
 0xa23   : > { %v2006_v42 = vpop.f32.mrf.mxu3 }
 0xa24   : > { %v4859_v60 = vpop.eup %4858  ;;  %v2007_v33 = vadd.f32 %v6143_v51, %v2006_v42 }
 0xa25   : > { %v4861_v39 = vpop.eup %4860  ;;  %2041 = vrot.lane.b32.xlu0 %v4859_v60, %s7174_s15 }
 0xa26   : > { %4862 = vtanh.f32 %v2007_v33  ;;  %2198 = vrot.lane.b32.xlu1 %v4861_v39, %s7174_s15  ;;  %v2012_v42 = vmul.f32 0.5, %v2007_v33 }
 0xa27   : > { %4864 = vtanh.f32 %v2164_v18 }
 0xa28   : > { %4866 = vtanh.f32 %v2009_v32  ;;  %v2011_v32 = vmul.f32 0.5, %v2004_v57 }
 0xa29   : > { %4868 = vtanh.f32 %v2165_v38 }
 0xa2a   : > { %4870 = vtanh.f32 %v2010_v30 }
 0xa2b   : > { %4872 = vtanh.f32 %v2166_v21 }
 0xa2c   : > { %v4863_v24 = vpop.eup %4862  ;;  %4874 = vtanh.f32 %v2012_v42 }
 0xa2d   : > { %2043 = vrot.lane.b32.xlu2 %v4863_v24, %s7174_s15  ;;  %v4865_v4 = vpop.eup %4864  ;;  %4876 = vtanh.f32 %v2011_v32 }
 0xa2e   : > { %v2172_v45 = vmul.f32 0.5, %v4865_v4  ;;  %v4867_v43 = vpop.eup %4866 }
 0xa2f   : > { %v2017_v37 = vmul.f32 0.5, %v4867_v43  ;;  %v4869_v53 = vpop.eup %4868 }
 0xa30   : > { %v6158_v11 = vadd.f32 0.5, %v2172_v45  ;;  %v2173_v27 = vmul.f32 0.5, %v4869_v53  ;;  %v4871_v25 = vpop.eup %4870  ;;  %v2167_v45 = vmul.f32 0.5, %v2163_v31 }
 0xa31   : > { %v6162_v47 = vadd.f32 0.5, %v2017_v37  ;;  %v4873_v55 = vpop.eup %4872  ;;  %v2018_v29 = vmul.f32 0.5, %v4871_v25 }
 0xa32   : > { %v6166_v61 = vadd.f32 0.5, %v2173_v27  ;;  %v2174_v3 = vmul.f32 0.5, %v4873_v55  ;;  %v4875_v18 = vpop.eup %4874  ;;  %4878 = vtanh.f32 %v2167_v45  ;;  %v2184_v27 = vmul.f32 %v6158_v11, %v5991_v2 }
 0xa33   : > { %v6170_v59 = vadd.f32 0.5, %v2018_v29  ;;  %v2020_v4 = vmul.f32 0.5, %v4875_v18  ;;  %v4877_v43 = vpop.eup %4876 }
 0xa34   : > { %v6172_v44 = vadd.f32 0.5, %v2174_v3  ;;  %v2029_v3 = vmul.f32 %v6162_v47, %v5996_v26 }
 0xa35   : > { %v6178_v33 = vadd.f32 0.5, %v2020_v4  ;;  %v2030_v26 = vmul.f32 %v6170_v59, %v6010_v41 }
 0xa38   : > { %v4879_v37 = vpop.eup %4878 }
 0xa4d   : > { %v2193_v34 = vpop.permute.xlu1 %2192 }
 0xa4e   : > { %v2204_v49 = vmul.f32 %v2193_v34, %v6158_v11 }
 0xa50   : > { %2212 = vrot.lane.b32.xlu0 %v2204_v49, %s5211_s16 }
 0xa57   : > { %v2038_v52 = vpop.permute.xlu2 %2037 }
 0xa58   : > { %v2049_v54 = vmul.f32 %v2038_v52, %v6162_v47  ;;  %v2019_v52 = vmul.f32 0.5, %v4877_v43 }
 0xa5a   : > { %2057 = vrot.lane.b32.xlu1 %v2049_v54, %s5211_s16  ;;  %v2175_v54 = vmul.f32 0.5, %v4879_v37  ;;  %v6182_v38 = vadd.f32 0.5, %v2019_v52 }
 0xa5c   : > { %v6184_v53 = vadd.f32 0.5, %v2175_v54  ;;  %v2031_v45 = vmul.f32 %v6182_v38, %v6033_v22 }
 0xa6e   : > { %v2195_v13 = vpop.permute.xlu0 %2194 }
 0xa6f   : > { %v2205_v12 = vmul.f32 %v2195_v13, %v6166_v61 }
 0xa71   : > { %2214 = vrot.lane.b32.xlu2 %v2205_v12, %s5211_s16  ;;  %v2185_v12 = vmul.f32 %v6166_v61, %v6003_v48  ;;  %v2186_v48 = vmul.f32 %v6172_v44, %v6013_v16  ;;  %v2032_v16 = vmul.f32 %v6178_v33, %v6026_v5 }
 0xa77   : > { %v2197_v60 = vpop.permute.xlu2 %2196 }
 0xa78   : > { %v2040_v15 = vpop.permute.xlu1 %2039  ;;  %v2206_v24 = vmul.f32 %v2197_v60, %v6172_v44 }
 0xa79   : > { %v2050_v39 = vmul.f32 %v2040_v15, %v6170_v59 }
 0xa7a   : > { %2216 = vrot.lane.b32.xlu1 %v2206_v24, %s5211_s16 }
 0xa7b   : > { %2059 = vrot.lane.b32.xlu0 %v2050_v39, %s5211_s16 }
 0xa87   : > { %v2044_v34 = vpop.permute.xlu2 %2043 }
 0xa88   : > { %v2052_v49 = vmul.f32 %v2044_v34, %v6178_v33 }
 0xa8a   : > { %2063 = vrot.lane.b32.xlu1 %v2052_v49, %s5211_s16 }
 0xa97   : > { %v2042_v30 = vpop.permute.xlu0 %2041 }
 0xa98   : > { %v2051_v57 = vmul.f32 %v2042_v30, %v6182_v38  ;;  %v2199_v31 = vpop.permute.xlu1 %2198  ;;  %v2187_v30 = vmul.f32 %v6184_v53, %v6019_v0 }
 0xa99   : > { %v2207_v21 = vmul.f32 %v2199_v31, %v6184_v53 }
 0xa9a   : > { %2061 = vrot.lane.b32.xlu2 %v2051_v57, %s5211_s16 }
 0xa9b   : > { %2218 = vrot.lane.b32.xlu0 %v2207_v21, %s5211_s16 }
 0xac2   : > { %v2213_v13 = vpop.permute.xlu0 %2212 }
 0xac3   : > { %v6192_v25 = vadd.f32 %v2213_v13, %v2184_v27 }
 0xac5   : > { %4880 = vtanh.f32 %v6192_v25 }
 0xacb   : > { %v4881_v55 = vpop.eup %4880  ;;  %v2215_v29 = vpop.permute.xlu2 %2214 }
 0xacc   : > { %v6199_v42 = vadd.f32 %v2215_v29, %v2185_v12  ;;  %v2058_v15 = vpop.permute.xlu1 %2057  ;;  %2236 = vrot.lane.b32.xlu2 %v4881_v55, %s7174_s15 }
 0xacd   : > { %v6202_v60 = vadd.f32 %v2058_v15, %v2029_v3 }
 0xace   : > { %4882 = vtanh.f32 %v6199_v42 }
 0xacf   : > { %4884 = vtanh.f32 %v6202_v60 }
 0xad4   : > { %v4883_v2 = vpop.eup %4882 }
 0xad5   : > { %v4885_v39 = vpop.eup %4884  ;;  %2238 = vrot.lane.b32.xlu1 %v4883_v2, %s7174_s15 }
 0xad6   : > { %2081 = vrot.lane.b32.xlu0 %v4885_v39, %s7174_s15 }
 0xaec   : > { %v2217_v18 = vpop.permute.xlu1 %2216 }
 0xaed   : > { %v2060_v24 = vpop.permute.xlu0 %2059  ;;  %v6214_v32 = vadd.f32 %v2217_v18, %v2186_v48  ;;  %v595_v48 = vld [vmem:[%s5437_s20 + $0xa8] sm:$0xff]  ;;  %v596_v18 = vld [vmem:[%s5437_s20 + $0xb0] sm:$0xff] }
 0xaee   : > { %v6212_v4 = vadd.f32 %v2060_v24, %v2030_v26 }
 0xaf0   : > { %4886 = vtanh.f32 %v6212_v4 }
 0xaf1   : > { %4888 = vtanh.f32 %v6214_v32 }
 0xaf4   : > { %v2062_v34 = vpop.permute.xlu2 %2061 }
 0xaf5   : > { %v6220_v43 = vadd.f32 %v2062_v34, %v2031_v45 }
 0xaf6   : > { %v4887_v49 = vpop.eup %4886 }
 0xaf7   : > { %v4889_v41 = vpop.eup %4888  ;;  %2083 = vrot.lane.b32.xlu2 %v4887_v49, %s7174_s15  ;;  %4890 = vtanh.f32 %v6220_v43 }
 0xaf8   : > { %2240 = vrot.lane.b32.xlu0 %v4889_v41, %s7174_s15 }
 0xafc   : > { %v2064_v37 = vpop.permute.xlu1 %2063 }
 0xafd   : > { %v4891_v52 = vpop.eup %4890  ;;  %v6227_v54 = vadd.f32 %v2064_v37, %v2032_v16 }
 0xafe   : > { %2085 = vrot.lane.b32.xlu1 %v4891_v52, %s7174_s15 }
 0xaff   : > { %4892 = vtanh.f32 %v6227_v54 }
 0xb05   : > { %v4893_v22 = vpop.eup %4892 }
 0xb06   : > { %2087 = vrot.lane.b32.xlu0 %v4893_v22, %s7174_s15 }
 0xb0d   : > { %v2219_v57 = vpop.permute.xlu0 %2218 }
 0xb0e   : > { %v6234_v31 = vadd.f32 %v2219_v57, %v2187_v30 }
 0xb10   : > { %4894 = vtanh.f32 %v6234_v31 }
 0xb16   : > { %v4895_v5 = vpop.eup %4894 }
 0xb17   : > { %2242 = vrot.lane.b32.xlu2 %v4895_v5, %s7174_s15 }
 0xb26   : > { %v2237_v21 = vpop.permute.xlu2 %2236 }
 0xb27   : > { %v2248_v27 = vmul.f32 %v2237_v21, %v6158_v11 }
 0xb29   : > { %2256 = vrot.lane.b32.xlu1 %v2248_v27, %s5211_s16 }
 0xb47   : > { %v2239_v13 = vpop.permute.xlu1 %2238 }
 0xb48   : > { %v2249_v12 = vmul.f32 %v2239_v13, %v6166_v61  ;;  %v2082_v55 = vpop.permute.xlu0 %2081 }
 0xb49   : > { %v6242_v29 = vmul.f32 %v2082_v55, %v6162_v47 }
 0xb4a   : > { %2258 = vrot.lane.b32.xlu0 %v2249_v12, %s5211_s16 }
 0xb4b   : > { %2268 = vrot.lane.b32.xlu2 %v6242_v29, %s7174_s15 }
 0xb51   : > { %v2084_v0 = vpop.permute.xlu2 %2083 }
 0xb52   : > { %v6248_v3 = vmul.f32 %v2084_v0, %v6170_v59 }
 0xb54   : > { %2270 = vrot.lane.b32.xlu1 %v6248_v3, %s7174_s15 }
 0xb6a   : > { %v2241_v11 = vpop.permute.xlu0 %2240 }
 0xb6b   : > { %v2250_v61 = vmul.f32 %v2241_v11, %v6172_v44  ;;  %v594_v44 = vld [vmem:[%s5437_s20 + $0xa0] sm:$0xff] }
 0xb6c   : > { %4430 = vmatmul.msk.f32.gmra.mxu0 %vm614_vm0, %v594_v44 }
 0xb6d   : > { %2260 = vrot.lane.b32.xlu2 %v2250_v61, %s5211_s16 }
 0xb70   : > { %v2086_v47 = vpop.permute.xlu1 %2085 }
 0xb71   : > { %v6255_v15 = vmul.f32 %v2086_v47, %v6182_v38  ;;  %v2243_v2 = vpop.permute.xlu2 %2242 }
 0xb72   : > { %v2251_v39 = vmul.f32 %v2243_v2, %v6184_v53 }
 0xb73   : > { %2272 = vrot.lane.b32.xlu0 %v6255_v15, %s7174_s15 }
 0xb74   : > { %2262 = vrot.lane.b32.xlu1 %v2251_v39, %s5211_s16  ;;  %4431 = vmatmul.msk.f32.gmra.mxu0 %vm614_vm0, %v595_v48 }
 0xb78   : > { %v2088_v59 = vpop.permute.xlu0 %2087 }
 0xb79   : > { %v6262_v26 = vmul.f32 %v2088_v59, %v6178_v33 }
 0xb7b   : > { %2274 = vrot.lane.b32.xlu2 %v6262_v26, %s7174_s15 }
 0xb7c   : > { %4432 = vmatmul.msk.f32.gmra.mxu0 %vm614_vm0, %v596_v18 }
 0xb9b   : > { %v2257_v38 = vpop.permute.xlu1 %2256 }
 0xb9c   : > { %4478 = vmatmul.msk.f32.vlgmr.msrb.gmra.mxu3 %vm614_vm0, %v2257_v38 }
 0xba5   : > { %v2269_v53 = vpop.permute.xlu2 %2268 }
 0xba6   : > { %v2280_v24 = vsel %vm614_vm0, %v2257_v38, %v2269_v53 }
 0xba7   : > { %4474 = vmatmul.msk.f32.vlgmr.msra.gmra.mxu1 %vm1020_vm1, %v2280_v24 }
 0xba8   : > { %3252 = vmatpush.msra.mxu1 %v6080_v63 }
 0xbaa   : > { %3253 = vmatpush.msra.mxu1 %v6088_v20  ;;  %v597_v20 = vld [vmem:[%s5437_s20 + $0xb8] sm:$0xff] }
 0xbab   : > { %4433 = vmatmul.msk.f32.gmra.mxu0 %vm614_vm0, %v597_v20 }
 0xbac   : > { %3254 = vmatpush.msra.mxu1 %v6094_v6 }
 0xbae   : > { %3255 = vmatpush.msra.mxu1 %v6100_v56 }
 0xbb0   : > { %3256 = vmatpush.msra.mxu1 %v6107_v17 }
 0xbb2   : > { %3257 = vmatpush.msra.mxu1 %v6116_v10 }
 0xbb4   : > { %3258 = vmatpush.msra.mxu1 %v6122_v19 }
 0xbb6   : > { %3259 = vmatpush.msra.mxu1 %v6128_v50 }
 0xbbc   : > { %v2259_v33 = vpop.permute.xlu0 %2258 }
 0xbbd   : > { %4479 = vmatmul.msk.f32.gmra.mxu3 %vm614_vm0, %v2259_v33 }
 0xbc6   : > { %v2271_v63 = vpop.permute.xlu1 %2270 }
 0xbc7   : > { %v2261_v45 = vpop.permute.xlu2 %2260  ;;  %v2281_v34 = vsel %vm614_vm0, %v2259_v33, %v2271_v63 }
 0xbc8   : > { %4480 = vmatmul.msk.f32.gmra.mxu3 %vm614_vm0, %v2261_v45  ;;  %4475 = vmatmul.msk.f32.gmra.mxu1 %vm1020_vm1, %v2281_v34 }
 0xbd5   : > { %v2275_v10 = vpop.permute.xlu2 %2274 }
 0xbe5   : > { %v2273_v6 = vpop.permute.xlu0 %2272 }
 0xbe6   : > { %v2263_v56 = vpop.permute.xlu1 %2262  ;;  %v2282_v17 = vsel %vm614_vm0, %v2261_v45, %v2273_v6 }
 0xbe7   : > { %4481 = vmatmul.msk.f32.gmra.mxu3 %vm614_vm0, %v2263_v56  ;;  %4476 = vmatmul.msk.f32.gmra.mxu1 %vm1020_vm1, %v2282_v17  ;;  %v2283_v19 = vsel %vm614_vm0, %v2263_v56, %v2275_v10 }
 0xbe9   : > { %v788_v50 = vpop.f32.mrf.mxu0 }
 0xbea   : > { %v789_v49 = vadd.f32 %v5939_v62, %v788_v50 }
 0xbef   : > { %4477 = vmatmul.msk.f32.gmra.mxu1 %vm1020_vm1, %v2283_v19 }
 0xbf1   : > { %v791_v57 = vpop.f32.mrf.mxu0 }
 0xbf2   : > { %v792_v5 = vadd.f32 %v5939_v62, %v791_v57 }
 0xbf9   : > { %v794_v12 = vpop.f32.mrf.mxu0 }
 0xbfa   : > { %v795_v0 = vadd.f32 %v5939_v62, %v794_v12 }
 0xc1f   : > { %v2464_v41 = vpop.f32.mrf.mxu3 }
 0xc20   : > { %v2476_v16 = vadd.f32 %v2464_v41, %v789_v49 }
 0xc22   : > { %4896 = vtanh.f32 %v2476_v16  ;;  %v2480_v20 = vmul.f32 0.5, %v2476_v16 }
 0xc24   : > { %v2313_v37 = vpop.f32.mrf.mxu1 }
 0xc25   : > { %v2314_v52 = vadd.f32 %v6143_v51, %v2313_v37 }
 0xc27   : > { %4898 = vtanh.f32 %v2314_v52  ;;  %v2325_v6 = vmul.f32 0.5, %v2314_v52 }
 0xc28   : > { %v4897_v22 = vpop.eup %4896  ;;  %v797_v44 = vpop.f32.mrf.mxu0 }
 0xc29   : > { %2508 = vrot.lane.b32.xlu1 %v4897_v22, %s7174_s15  ;;  %v798_v48 = vadd.f32 %v5939_v62, %v797_v44 }
 0xc2d   : > { %v4899_v30 = vpop.eup %4898 }
 0xc2e   : > { %2353 = vrot.lane.b32.xlu0 %v4899_v30, %s7174_s15 }
 0xc40   : > { %v2467_v21 = vpop.f32.mrf.mxu3 }
 0xc41   : > { %v2477_v27 = vadd.f32 %v2467_v21, %v792_v5 }
 0xc43   : > { %4900 = vtanh.f32 %v2477_v27  ;;  %v2481_v12 = vmul.f32 0.5, %v2477_v27 }
 0xc45   : > { %v2316_v13 = vpop.f32.mrf.mxu1 }
 0xc46   : > { %v2317_v55 = vadd.f32 %v6143_v51, %v2316_v13 }
 0xc48   : > { %4902 = vtanh.f32 %v2317_v55  ;;  %v2326_v17 = vmul.f32 0.5, %v2317_v55 }
 0xc49   : > { %v4901_v11 = vpop.eup %4900 }
 0xc4a   : > { %2510 = vrot.lane.b32.xlu0 %v4901_v11, %s7174_s15 }
 0xc4b   : > { %v2470_v61 = vpop.f32.mrf.mxu3 }
 0xc4c   : > { %v2478_v47 = vadd.f32 %v2470_v61, %v795_v0 }
 0xc4e   : > { %v4903_v2 = vpop.eup %4902  ;;  %4904 = vtanh.f32 %v2478_v47  ;;  %v2482_v37 = vmul.f32 0.5, %v2478_v47 }
 0xc4f   : > { %2355 = vrot.lane.b32.xlu2 %v4903_v2, %s7174_s15 }
 0xc54   : > { %v4905_v39 = vpop.eup %4904 }
 0xc57   : > { %2512 = vrot.lane.b32.xlu2 %v4905_v39, %s7174_s15 }
 0xc64   : > { %v2319_v59 = vpop.f32.mrf.mxu1 }
 0xc65   : > { %v2320_v38 = vadd.f32 %v6143_v51, %v2319_v59 }
 0xc67   : > { %4906 = vtanh.f32 %v2320_v38 }
 0xc6a   : > { %v2473_v53 = vpop.f32.mrf.mxu3 }
 0xc6b   : > { %v2479_v24 = vadd.f32 %v2473_v53, %v798_v48  ;;  %v2327_v48 = vmul.f32 0.5, %v2320_v38 }
 0xc6c   : > { %v2322_v18 = vpop.f32.mrf.mxu1 }
 0xc6d   : > { %v4907_v33 = vpop.eup %4906  ;;  %v2323_v63 = vadd.f32 %v6143_v51, %v2322_v18  ;;  %4908 = vtanh.f32 %v2479_v24  ;;  %v2483_v53 = vmul.f32 0.5, %v2479_v24 }
 0xc6e   : > { %2357 = vrot.lane.b32.xlu1 %v4907_v33, %s7174_s15 }
 0xc6f   : > { %4910 = vtanh.f32 %v2323_v63  ;;  %v2328_v18 = vmul.f32 0.5, %v2323_v63 }
 0xc70   : > { %4912 = vtanh.f32 %v2480_v20 }
 0xc71   : > { %4914 = vtanh.f32 %v2325_v6 }
 0xc72   : > { %4916 = vtanh.f32 %v2326_v17 }
 0xc73   : > { %v4909_v45 = vpop.eup %4908  ;;  %4918 = vtanh.f32 %v2482_v37 }
 0xc74   : > { %4920 = vtanh.f32 %v2481_v12 }
 0xc75   : > { %v4911_v34 = vpop.eup %4910  ;;  %4922 = vtanh.f32 %v2327_v48 }
 0xc76   : > { %2514 = vrot.lane.b32.xlu1 %v4909_v45, %s7174_s15  ;;  %2359 = vrot.lane.b32.xlu0 %v4911_v34, %s7174_s15  ;;  %v4913_v62 = vpop.eup %4912  ;;  %4924 = vtanh.f32 %v2483_v53 }
 0xc77   : > { %v2488_v56 = vmul.f32 0.5, %v4913_v62  ;;  %v4915_v10 = vpop.eup %4914  ;;  %4926 = vtanh.f32 %v2328_v18 }
 0xc78   : > { %v2333_v49 = vmul.f32 0.5, %v4915_v10  ;;  %v4917_v30 = vpop.eup %4916 }
 0xc79   : > { %v6310_v19 = vadd.f32 0.5, %v2488_v56  ;;  %v2334_v57 = vmul.f32 0.5, %v4917_v30  ;;  %v4919_v21 = vpop.eup %4918 }
 0xc7a   : > { %v6314_v22 = vadd.f32 0.5, %v2333_v49  ;;  %v2490_v0 = vmul.f32 0.5, %v4919_v21  ;;  %v4921_v2 = vpop.eup %4920 }
 0xc7b   : > { %v6318_v5 = vadd.f32 0.5, %v2334_v57  ;;  %v2489_v39 = vmul.f32 0.5, %v4921_v2  ;;  %v4923_v33 = vpop.eup %4922  ;;  %v2500_v57 = vmul.f32 %v6310_v19, %v6192_v25 }
 0xc7c   : > { %v6322_v11 = vadd.f32 0.5, %v2490_v0  ;;  %v2335_v45 = vmul.f32 0.5, %v4923_v33  ;;  %v4925_v20 = vpop.eup %4924  ;;  %v2345_v37 = vmul.f32 %v6314_v22, %v6202_v60 }
 0xc7d   : > { %v6326_v59 = vadd.f32 0.5, %v2489_v39  ;;  %v4927_v62 = vpop.eup %4926  ;;  %v2491_v17 = vmul.f32 0.5, %v4925_v20 }
 0xc7e   : > { %v6330_v34 = vadd.f32 0.5, %v2335_v45  ;;  %v2336_v10 = vmul.f32 0.5, %v4927_v62 }
 0xc7f   : > { %v2501_v12 = vmul.f32 %v6326_v59, %v6199_v42  ;;  %v2502_v42 = vmul.f32 %v6322_v11, %v6214_v32 }
 0xc80   : > { %v6336_v24 = vadd.f32 0.5, %v2336_v10  ;;  %v2347_v33 = vmul.f32 %v6330_v34, %v6220_v43 }
 0xc82   : > { %v2348_v48 = vmul.f32 %v6336_v24, %v6227_v54 }
 0xc9b   : > { %v2509_v50 = vpop.permute.xlu1 %2508 }
 0xc9c   : > { %v2520_v41 = vmul.f32 %v2509_v50, %v6310_v19  ;;  %v6334_v50 = vadd.f32 0.5, %v2491_v17 }
 0xc9e   : > { %2528 = vrot.lane.b32.xlu0 %v2520_v41, %s5211_s16 }
 0xca0   : > { %v2354_v16 = vpop.permute.xlu0 %2353 }
 0xca1   : > { %v2365_v52 = vmul.f32 %v2354_v16, %v6314_v22 }
 0xca3   : > { %2373 = vrot.lane.b32.xlu2 %v2365_v52, %s5211_s16 }
 0xca9   : > { %v2356_v13 = vpop.permute.xlu2 %2355 }
 0xcaa   : > { %v2366_v55 = vmul.f32 %v2356_v13, %v6318_v5 }
 0xcac   : > { %2375 = vrot.lane.b32.xlu1 %v2366_v55, %s5211_s16 }
 0xcb1   : > { %v2513_v61 = vpop.permute.xlu2 %2512 }
 0xcb2   : > { %v2522_v47 = vmul.f32 %v2513_v61, %v6322_v11  ;;  %v2346_v61 = vmul.f32 %v6318_v5, %v6212_v4 }
 0xcb4   : > { %2532 = vrot.lane.b32.xlu1 %v2522_v47, %s5211_s16 }
 0xcbc   : > { %v2511_v44 = vpop.permute.xlu0 %2510 }
 0xcbd   : > { %v2521_v27 = vmul.f32 %v2511_v44, %v6326_v59 }
 0xcbf   : > { %2530 = vrot.lane.b32.xlu2 %v2521_v27, %s5211_s16 }
 0xce0   : > { %v2358_v6 = vpop.permute.xlu1 %2357 }
 0xce1   : > { %v2367_v56 = vmul.f32 %v2358_v6, %v6330_v34  ;;  %v2503_v6 = vmul.f32 %v6334_v50, %v6234_v31 }
 0xce3   : > { %2377 = vrot.lane.b32.xlu0 %v2367_v56, %s5211_s16 }
 0xce8   : > { %v2515_v38 = vpop.permute.xlu1 %2514  ;;  %v2360_v49 = vpop.permute.xlu0 %2359 }
 0xce9   : > { %v2523_v63 = vmul.f32 %v2515_v38, %v6334_v50  ;;  %v2368_v41 = vmul.f32 %v2360_v49, %v6336_v24 }
 0xceb   : > { %2534 = vrot.lane.b32.xlu0 %v2523_v63, %s5211_s16  ;;  %2379 = vrot.lane.b32.xlu2 %v2368_v41, %s5211_s16 }
 0xcfd   : > { %v2374_v16 = vpop.permute.xlu2 %2373 }
 0xcfe   : > { %v6344_v30 = vadd.f32 %v2374_v16, %v2345_v37  ;;  %v598_v16 = vld [vmem:[%s5437_s20 + $0xc0] sm:$0xff] }
 0xcff   : > { %4434 = vmatmul.msk.f32.gmra.mxu0 %vm614_vm0, %v598_v16 }
 0xd00   : > { %4928 = vtanh.f32 %v6344_v30 }
 0xd06   : > { %v4929_v52 = vpop.eup %4928 }
 0xd07   : > { %2397 = vrot.lane.b32.xlu1 %v4929_v52, %s7174_s15 }
 0xd10   : > { %v2529_v21 = vpop.permute.xlu0 %2528 }
 0xd11   : > { %v6350_v13 = vadd.f32 %v2529_v21, %v2500_v57 }
 0xd13   : > { %4930 = vtanh.f32 %v6350_v13 }
 0xd19   : > { %v4931_v60 = vpop.eup %4930  ;;  %v2531_v55 = vpop.permute.xlu2 %2530 }
 0xd1a   : > { %v6355_v0 = vadd.f32 %v2531_v55, %v2501_v12  ;;  %2552 = vrot.lane.b32.xlu2 %v4931_v60, %s7174_s15  ;;  %v599_v12 = vld [vmem:[%s5437_s20 + $0xc8] sm:$0xff] }
 0xd1b   : > { %4435 = vmatmul.msk.f32.gmra.mxu0 %vm614_vm0, %v599_v12 }
 0xd1c   : > { %4932 = vtanh.f32 %v6355_v0 }
 0xd1e   : > { %v2376_v25 = vpop.permute.xlu1 %2375 }
 0xd1f   : > { %v6361_v47 = vadd.f32 %v2376_v25, %v2346_v61 }
 0xd21   : > { %4934 = vtanh.f32 %v6361_v47 }
 0xd22   : > { %v4933_v2 = vpop.eup %4932 }
 0xd23   : > { %2554 = vrot.lane.b32.xlu1 %v4933_v2, %s7174_s15 }
 0xd26   : > { %v2533_v39 = vpop.permute.xlu1 %2532 }
 0xd27   : > { %v4935_v44 = vpop.eup %4934  ;;  %v6367_v27 = vadd.f32 %v2533_v39, %v2502_v42 }
 0xd28   : > { %2399 = vrot.lane.b32.xlu0 %v4935_v44, %s7174_s15 }
 0xd29   : > { %4936 = vtanh.f32 %v6367_v27 }
 0xd2f   : > { %v4937_v4 = vpop.eup %4936 }
 0xd30   : > { %2556 = vrot.lane.b32.xlu0 %v4937_v4, %s7174_s15 }
 0xd45   : > { %v2380_v53 = vpop.permute.xlu2 %2379 }
 0xd46   : > { %v6374_v18 = vadd.f32 %v2380_v53, %v2348_v48 }
 0xd48   : > { %4938 = vtanh.f32 %v6374_v18 }
 0xd4e   : > { %v4939_v32 = vpop.eup %4938 }
 0xd4f   : > { %2403 = vrot.lane.b32.xlu1 %v4939_v32, %s7174_s15 }
 0xd55   : > { %v2378_v45 = vpop.permute.xlu0 %2377 }
 0xd56   : > { %v6380_v20 = vadd.f32 %v2378_v45, %v2347_v33  ;;  %v6441_v33 = vld [vmem:[%s7163_s3] ss:$0 sm:$0xff] }
 0xd58   : > { %4940 = vtanh.f32 %v6380_v20 }
 0xd5d   : > { %v2535_v54 = vpop.permute.xlu0 %2534 }
 0xd5e   : > { %v4941_v62 = vpop.eup %4940  ;;  %v6385_v56 = vadd.f32 %v2535_v54, %v2503_v6 }
 0xd5f   : > { %2401 = vrot.lane.b32.xlu2 %v4941_v62, %s7174_s15 }
 0xd60   : > { %4942 = vtanh.f32 %v6385_v56 }
 0xd66   : > { %v4943_v17 = vpop.eup %4942 }
 0xd67   : > { %2558 = vrot.lane.b32.xlu2 %v4943_v17, %s7174_s15 }
 0xd74   : > { %v2553_v43 = vpop.permute.xlu2 %2552 }
 0xd75   : > { %v2564_v10 = vmul.f32 %v2553_v43, %v6310_v19 }
 0xd77   : > { %2572 = vrot.lane.b32.xlu0 %v2564_v10, %s5211_s16 }
 0xd79   : > { %v2398_v38 = vpop.permute.xlu1 %2397 }
 0xd7a   : > { %v6393_v31 = vmul.f32 %v2398_v38, %v6314_v22 }
 0xd7c   : > { %2584 = vrot.lane.b32.xlu1 %v6393_v31, %s7174_s15  ;;  %v800_v32 = vpop.f32.mrf.mxu0 }
 0xd7d   : > { %v801_v45 = vadd.f32 %v6441_v33, %v800_v32 }
 0xd95   : > { %v2555_v63 = vpop.permute.xlu1 %2554 }
 0xd96   : > { %v2565_v49 = vmul.f32 %v2555_v63, %v6326_v59 }
 0xd98   : > { %2574 = vrot.lane.b32.xlu2 %v2565_v49, %s5211_s16  ;;  %v803_v17 = vpop.f32.mrf.mxu0 }
 0xd99   : > { %v804_v38 = vadd.f32 %v6441_v33, %v803_v17 }
 0xd9a   : > { %v2400_v41 = vpop.permute.xlu0 %2399 }
 0xd9b   : > { %v6400_v37 = vmul.f32 %v2400_v41, %v6318_v5 }
 0xd9d   : > { %2586 = vrot.lane.b32.xlu0 %v6400_v37, %s7174_s15 }
 0xda2   : > { %v2557_v19 = vpop.permute.xlu0 %2556 }
 0xda3   : > { %v2566_v22 = vmul.f32 %v2557_v19, %v6322_v11 }
 0xda5   : > { %2576 = vrot.lane.b32.xlu1 %v2566_v22, %s5211_s16 }
 0xdb9   : > { %v2402_v52 = vpop.permute.xlu2 %2401 }
 0xdba   : > { %v6409_v59 = vmul.f32 %v2402_v52, %v6330_v34 }
 0xdbc   : > { %2588 = vrot.lane.b32.xlu2 %v6409_v59, %s7174_s15 }
 0xdc1   : > { %v2559_v5 = vpop.permute.xlu2 %2558  ;;  %v2404_v57 = vpop.permute.xlu1 %2403 }
 0xdc2   : > { %v2567_v21 = vmul.f32 %v2559_v5, %v6334_v50  ;;  %v6415_v11 = vmul.f32 %v2404_v57, %v6336_v24  ;;  %v600_v50 = vld [vmem:[%s5437_s20 + $0xd0] sm:$0xff]  ;;  %v601_v24 = vld [vmem:[%s5437_s20 + $0xd8] sm:$0xff] }
 0xdc3   : > { %4436 = vmatmul.msk.f32.gmra.mxu0 %vm614_vm0, %v600_v50 }
 0xdc4   : > { %2578 = vrot.lane.b32.xlu0 %v2567_v21, %s5211_s16  ;;  %2590 = vrot.lane.b32.xlu1 %v6415_v11, %s7174_s15 }
 0xdcb   : > { %4437 = vmatmul.msk.f32.gmra.mxu0 %vm614_vm0, %v601_v24 }
 0xde9   : > { %v2573_v34 = vpop.permute.xlu0 %2572 }
 0xdea   : > { %4486 = vmatmul.msk.f32.vlgmr.msrb.gmra.mxu1 %vm614_vm0, %v2573_v34 }
 0xdee   : > { %v2585_v60 = vpop.permute.xlu1 %2584 }
 0xdef   : > { %v2596_v55 = vsel %vm614_vm0, %v2573_v34, %v2585_v60 }
 0xdf0   : > { %4482 = vmatmul.msk.f32.vlgmr.msra.gmra.mxu2 %vm1020_vm1, %v2596_v55 }
 0xdf2   : > { %v2575_v61 = vpop.permute.xlu2 %2574 }
 0xdf3   : > { %4487 = vmatmul.msk.f32.gmra.mxu1 %vm614_vm0, %v2575_v61 }
 0xe0f   : > { %v2587_v25 = vpop.permute.xlu0 %2586 }
 0xe10   : > { %v2597_v2 = vsel %vm614_vm0, %v2575_v61, %v2587_v25 }
 0xe11   : > { %4483 = vmatmul.msk.f32.gmra.mxu2 %vm1020_vm1, %v2597_v2 }
 0xe16   : > { %v2589_v39 = vpop.permute.xlu2 %2588 }
 0xe17   : > { %v2577_v42 = vpop.permute.xlu1 %2576 }
 0xe18   : > { %4488 = vmatmul.msk.f32.gmra.mxu1 %vm614_vm0, %v2577_v42  ;;  %v2598_v44 = vsel %vm614_vm0, %v2577_v42, %v2589_v39 }
 0xe19   : > { %4484 = vmatmul.msk.f32.gmra.mxu2 %vm1020_vm1, %v2598_v44 }
 0xe36   : > { %v2579_v4 = vpop.permute.xlu0 %2578  ;;  %v2591_v48 = vpop.permute.xlu1 %2590 }
 0xe37   : > { %4489 = vmatmul.msk.f32.gmra.mxu1 %vm614_vm0, %v2579_v4  ;;  %v2599_v53 = vsel %vm614_vm0, %v2579_v4, %v2591_v48 }
 0xe38   : > { %4485 = vmatmul.msk.f32.gmra.mxu2 %vm1020_vm1, %v2599_v53 }
 0xe40   : > { %v806_v22 = vpop.f32.mrf.mxu0 }
 0xe41   : > { %v807_v5 = vadd.f32 %v6441_v33, %v806_v22 }
 0xe48   : > { %v809_v61 = vpop.f32.mrf.mxu0 }
 0xe49   : > { %v810_v24 = vadd.f32 %v6441_v33, %v809_v61 }
 0xe67   : > { %v2780_v6 = vpop.f32.mrf.mxu1 }
 0xe68   : > { %v2792_v54 = vadd.f32 %v2780_v6, %v801_v45 }
 0xe6a   : > { %4944 = vtanh.f32 %v2792_v54  ;;  %v2796_v45 = vmul.f32 0.5, %v2792_v54 }
 0xe70   : > { %v4945_v62 = vpop.eup %4944  ;;  %v2783_v63 = vpop.f32.mrf.mxu1 }
 0xe71   : > { %2824 = vrot.lane.b32.xlu0 %v4945_v62, %s7174_s15  ;;  %v2793_v49 = vadd.f32 %v2783_v63, %v804_v38 }
 0xe73   : > { %v2629_v43 = vpop.f32.mrf.mxu2  ;;  %v2797_v53 = vmul.f32 0.5, %v2793_v49 }
 0xe74   : > { %v2630_v10 = vadd.f32 %v6143_v51, %v2629_v43 }
 0xe76   : > { %4946 = vtanh.f32 %v2630_v10  ;;  %v2641_v4 = vmul.f32 0.5, %v2630_v10 }
 0xe77   : > { %4948 = vtanh.f32 %v2793_v49 }
 0xe7c   : > { %v4947_v41 = vpop.eup %4946 }
 0xe7d   : > { %2669 = vrot.lane.b32.xlu2 %v4947_v41, %s7174_s15  ;;  %v4949_v19 = vpop.eup %4948 }
 0xe85   : > { %2826 = vrot.lane.b32.xlu2 %v4949_v19, %s7174_s15 }
 0xe94   : > { %v2632_v16 = vpop.f32.mrf.mxu2 }
 0xe95   : > { %v2633_v52 = vadd.f32 %v6143_v51, %v2632_v16  ;;  %v2786_v57 = vpop.f32.mrf.mxu1 }
 0xe96   : > { %v2794_v21 = vadd.f32 %v2786_v57, %v807_v5 }
 0xe97   : > { %4950 = vtanh.f32 %v2633_v52  ;;  %v2642_v5 = vmul.f32 0.5, %v2633_v52 }
 0xe98   : > { %4952 = vtanh.f32 %v2794_v21  ;;  %v2798_v57 = vmul.f32 0.5, %v2794_v21 }
 0xe9c   : > { %v2635_v12 = vpop.f32.mrf.mxu2 }
 0xe9d   : > { %v4951_v34 = vpop.eup %4950  ;;  %v2636_v60 = vadd.f32 %v6143_v51, %v2635_v12 }
 0xe9e   : > { %2671 = vrot.lane.b32.xlu1 %v4951_v34, %s7174_s15  ;;  %v4953_v55 = vpop.eup %4952 }
 0xe9f   : > { %4954 = vtanh.f32 %v2636_v60  ;;  %v2643_v12 = vmul.f32 0.5, %v2636_v60 }
 0xea5   : > { %v4955_v50 = vpop.eup %4954 }
 0xea6   : > { %2828 = vrot.lane.b32.xlu1 %v4953_v55, %s7174_s15  ;;  %2673 = vrot.lane.b32.xlu0 %v4955_v50, %s7174_s15 }
 0xeb4   : > { %v2789_v25 = vpop.f32.mrf.mxu1 }
 0xeb5   : > { %v2795_v2 = vadd.f32 %v2789_v25, %v810_v24 }
 0xeb7   : > { %4956 = vtanh.f32 %v2795_v2 }
 0xebb   : > { %v2638_v42 = vpop.f32.mrf.mxu2 }
 0xebc   : > { %v2639_v44 = vadd.f32 %v6143_v51, %v2638_v42 }
 0xebd   : > { %v4957_v39 = vpop.eup %4956 }
 0xebe   : > { %2830 = vrot.lane.b32.xlu0 %v4957_v39, %s7174_s15  ;;  %4958 = vtanh.f32 %v2639_v44  ;;  %v2644_v61 = vmul.f32 0.5, %v2639_v44 }
 0xebf   : > { %4960 = vtanh.f32 %v2641_v4 }
 0xec0   : > { %4962 = vtanh.f32 %v2797_v53 }
 0xec1   : > { %4964 = vtanh.f32 %v2796_v45 }
 0xec2   : > { %4966 = vtanh.f32 %v2642_v5 }
 0xec3   : > { %4968 = vtanh.f32 %v2798_v57 }
 0xec4   : > { %v4959_v48 = vpop.eup %4958  ;;  %4970 = vtanh.f32 %v2643_v12 }
 0xec5   : > { %2675 = vrot.lane.b32.xlu2 %v4959_v48, %s7174_s15  ;;  %v4961_v32 = vpop.eup %4960  ;;  %4972 = vtanh.f32 %v2644_v61 }
 0xec6   : > { %v2649_v6 = vmul.f32 0.5, %v4961_v32  ;;  %v4963_v17 = vpop.eup %4962 }
 0xec7   : > { %v2805_v38 = vmul.f32 0.5, %v4963_v17  ;;  %v4965_v10 = vpop.eup %4964  ;;  %v2799_v17 = vmul.f32 0.5, %v2795_v2 }
 0xec8   : > { %v6459_v62 = vadd.f32 0.5, %v2649_v6  ;;  %v2804_v41 = vmul.f32 0.5, %v4965_v10  ;;  %v4967_v34 = vpop.eup %4966 }
 0xec9   : > { %v6463_v63 = vadd.f32 0.5, %v2805_v38  ;;  %v2650_v55 = vmul.f32 0.5, %v4967_v34  ;;  %v4969_v50 = vpop.eup %4968  ;;  %4974 = vtanh.f32 %v2799_v17 }
 0xeca   : > { %v6467_v54 = vadd.f32 0.5, %v2804_v41  ;;  %v4971_v25 = vpop.eup %4970  ;;  %v2806_v52 = vmul.f32 0.5, %v4969_v50  ;;  %v2661_v12 = vmul.f32 %v6459_v62, %v6344_v30 }
 0xecb   : > { %v6471_v24 = vadd.f32 0.5, %v2650_v55  ;;  %v2651_v4 = vmul.f32 0.5, %v4971_v25  ;;  %v4973_v32 = vpop.eup %4972  ;;  %v2817_v50 = vmul.f32 %v6463_v63, %v6355_v0 }
 0xecc   : > { %v6475_v48 = vadd.f32 0.5, %v2806_v52  ;;  %v2652_v6 = vmul.f32 0.5, %v4973_v32  ;;  %v2816_v2 = vmul.f32 %v6467_v54, %v6350_v13 }
 0xecd   : > { %v6477_v21 = vadd.f32 0.5, %v2651_v4  ;;  %v2662_v52 = vmul.f32 %v6471_v24, %v6361_v47 }
 0xece   : > { %v2818_v32 = vmul.f32 %v6475_v48, %v6367_v27 }
 0xecf   : > { %v4975_v10 = vpop.eup %4974  ;;  %v2663_v30 = vmul.f32 %v6477_v21, %v6380_v20 }
 0xed0   : > { %v2807_v41 = vmul.f32 0.5, %v4975_v10 }
 0xed7   : > { %v2670_v43 = vpop.permute.xlu2 %2669 }
 0xed8   : > { %v2681_v51 = vmul.f32 %v2670_v43, %v6459_v62  ;;  %v6483_v43 = vadd.f32 0.5, %v2652_v6 }
 0xeda   : > { %2689 = vrot.lane.b32.xlu1 %v2681_v51, %s5211_s16  ;;  %v2664_v47 = vmul.f32 %v6483_v43, %v6374_v18 }
 0xedf   : > { %v2827_v19 = vpop.permute.xlu2 %2826 }
 0xee0   : > { %v2837_v49 = vmul.f32 %v2827_v19, %v6463_v63  ;;  %v6487_v19 = vadd.f32 0.5, %v2807_v41 }
 0xee2   : > { %2846 = vrot.lane.b32.xlu1 %v2837_v49, %s5211_s16 }
 0xee3   : > { %v2825_v22 = vpop.permute.xlu0 %2824 }
 0xee4   : > { %v2836_v16 = vmul.f32 %v2825_v22, %v6467_v54 }
 0xee6   : > { %2844 = vrot.lane.b32.xlu2 %v2836_v16, %s5211_s16 }
 0xf10   : > { %v2672_v42 = vpop.permute.xlu1 %2671 }
 0xf11   : > { %v2682_v39 = vmul.f32 %v2672_v42, %v6471_v24 }
 0xf13   : > { %2691 = vrot.lane.b32.xlu0 %v2682_v39, %s5211_s16 }
 0xf18   : > { %v2829_v60 = vpop.permute.xlu1 %2828  ;;  %v2674_v53 = vpop.permute.xlu0 %2673 }
 0xf19   : > { %v2838_v44 = vmul.f32 %v2829_v60, %v6475_v48  ;;  %v2683_v45 = vmul.f32 %v2674_v53, %v6477_v21 }
 0xf1b   : > { %2848 = vrot.lane.b32.xlu0 %v2838_v44, %s5211_s16  ;;  %2693 = vrot.lane.b32.xlu2 %v2683_v45, %s5211_s16  ;;  %v2819_v44 = vmul.f32 %v6487_v19, %v6385_v56 }
 0xf1f   : > { %v2676_v51 = vpop.permute.xlu2 %2675 }
 0xf20   : > { %v2684_v38 = vmul.f32 %v2676_v51, %v6483_v43 }
 0xf22   : > { %2695 = vrot.lane.b32.xlu1 %v2684_v38, %s5211_s16 }
 0xf30   : > { %v2831_v49 = vpop.permute.xlu0 %2830 }
 0xf31   : > { %v2839_v22 = vmul.f32 %v2831_v49, %v6487_v19 }
 0xf33   : > { %2850 = vrot.lane.b32.xlu2 %v2839_v22, %s5211_s16 }
 0xf40   : > { %v2845_v16 = vpop.permute.xlu2 %2844 }
 0xf41   : > { %v6493_v5 = vadd.f32 %v2845_v16, %v2816_v2 }
 0xf43   : > { %4976 = vtanh.f32 %v6493_v5 }
 0xf49   : > { %v4977_v57 = vpop.eup %4976 }
 0xf4a   : > { %2868 = vrot.lane.b32.xlu1 %v4977_v57, %s7174_s15 }
 0xf4c   : > { %v2690_v34 = vpop.permute.xlu1 %2689 }
 0xf4d   : > { %v6499_v55 = vadd.f32 %v2690_v34, %v2661_v12 }
 0xf4f   : > { %4978 = vtanh.f32 %v6499_v55 }
 0xf54   : > { %v2847_v13 = vpop.permute.xlu1 %2846 }
 0xf55   : > { %v4979_v61 = vpop.eup %4978  ;;  %v6504_v25 = vadd.f32 %v2847_v13, %v2817_v50 }
 0xf56   : > { %2713 = vrot.lane.b32.xlu0 %v4979_v61, %s7174_s15 }
 0xf57   : > { %4980 = vtanh.f32 %v6504_v25 }
 0xf5d   : > { %v4981_v42 = vpop.eup %4980 }
 0xf5e   : > { %2870 = vrot.lane.b32.xlu0 %v4981_v42, %s7174_s15 }
 0xf75   : > { %v2694_v39 = vpop.permute.xlu2 %2693 }
 0xf76   : > { %v6511_v4 = vadd.f32 %v2694_v39, %v2663_v30  ;;  %v603_v30 = vld [vmem:[%s5437_s20 + $0xe8] sm:$0xff] }
 0xf78   : > { %4982 = vtanh.f32 %v6511_v4 }
 0xf7e   : > { %v4983_v0 = vpop.eup %4982 }
 0xf7f   : > { %2717 = vrot.lane.b32.xlu1 %v4983_v0, %s7174_s15 }
 0xf85   : > { %v2692_v60 = vpop.permute.xlu0 %2691 }
 0xf86   : > { %v6517_v53 = vadd.f32 %v2692_v60, %v2662_v52  ;;  %v604_v60 = vld [vmem:[%s5437_s20 + $0xf0] sm:$0xff] }
 0xf88   : > { %4984 = vtanh.f32 %v6517_v53 }
 0xf8d   : > { %v2849_v20 = vpop.permute.xlu0 %2848  ;;  %v2851_v17 = vpop.permute.xlu2 %2850 }
 0xf8e   : > { %v4985_v45 = vpop.eup %4984  ;;  %v6524_v6 = vadd.f32 %v2849_v20, %v2818_v32  ;;  %v6526_v51 = vadd.f32 %v2851_v17, %v2819_v44  ;;  %v605_v32 = vld [vmem:[%s5437_s20 + $0xf8] sm:$0xff] }
 0xf8f   : > { %2715 = vrot.lane.b32.xlu2 %v4985_v45, %s7174_s15 }
 0xf90   : > { %4986 = vtanh.f32 %v6524_v6 }
 0xf91   : > { %4988 = vtanh.f32 %v6526_v51 }
 0xf94   : > { %v2696_v38 = vpop.permute.xlu1 %2695 }
 0xf95   : > { %v6533_v41 = vadd.f32 %v2696_v38, %v2664_v47 }
 0xf96   : > { %v4987_v27 = vpop.eup %4986 }
 0xf97   : > { %v4989_v10 = vpop.eup %4988  ;;  %2872 = vrot.lane.b32.xlu2 %v4987_v27, %s7174_s15  ;;  %4990 = vtanh.f32 %v6533_v41 }
 0xf98   : > { %2874 = vrot.lane.b32.xlu1 %v4989_v10, %s7174_s15 }
 0xf9d   : > { %v4991_v56 = vpop.eup %4990 }
 0xf9e   : > { %2719 = vrot.lane.b32.xlu0 %v4991_v56, %s7174_s15 }
 0xfbc   : > { %v2869_v49 = vpop.permute.xlu1 %2868 }
 0xfbd   : > { %v2880_v22 = vmul.f32 %v2869_v49, %v6467_v54 }
 0xfbf   : > { %2888 = vrot.lane.b32.xlu2 %v2880_v22, %s5211_s16 }
 0xfc8   : > { %v2714_v18 = vpop.permute.xlu0 %2713 }
 0xfc9   : > { %v6542_v2 = vmul.f32 %v2714_v18, %v6459_v62 }
 0xfcb   : > { %2900 = vrot.lane.b32.xlu0 %v6542_v2, %s7174_s15 }
 0xfd0   : > { %v2871_v16 = vpop.permute.xlu0 %2870 }
 0xfd1   : > { %v2881_v57 = vmul.f32 %v2871_v16, %v6463_v63  ;;  %v602_v63 = vld [vmem:[%s5437_s20 + $0xe0] sm:$0xff] }
 0xfd2   : > { %4438 = vmatmul.msk.f32.gmra.mxu0 %vm614_vm0, %v602_v63  ;;  %v6592_v16 = vld [vmem:[%s7165_s5] ss:$0 sm:$0xff] }
 0xfd3   : > { %2890 = vrot.lane.b32.xlu1 %v2881_v57, %s5211_s16 }
 0xfda   : > { %4439 = vmatmul.msk.f32.gmra.mxu0 %vm614_vm0, %v603_v30 }
 0xfe2   : > { %4440 = vmatmul.msk.f32.gmra.mxu0 %vm614_vm0, %v604_v60 }
 0xfe9   : > { %v2716_v12 = vpop.permute.xlu2 %2715 }
 0xfea   : > { %v6549_v34 = vmul.f32 %v2716_v12, %v6471_v24  ;;  %4441 = vmatmul.msk.f32.gmra.mxu0 %vm614_vm0, %v605_v32 }
 0xfec   : > { %2902 = vrot.lane.b32.xlu2 %v6549_v34, %s7174_s15 }
 0xff1   : > { %v2718_v54 = vpop.permute.xlu1 %2717  ;;  %v2873_v50 = vpop.permute.xlu2 %2872 }
 0xff2   : > { %v6554_v62 = vmul.f32 %v2718_v54, %v6477_v21  ;;  %v2882_v13 = vmul.f32 %v2873_v50, %v6475_v48 }
 0xff4   : > { %2904 = vrot.lane.b32.xlu1 %v6554_v62, %s7174_s15  ;;  %2892 = vrot.lane.b32.xlu0 %v2882_v13, %s5211_s16 }
0x100a   : > { %v2875_v24 = vpop.permute.xlu1 %2874 }
0x100b   : > { %v2883_v61 = vmul.f32 %v2875_v24, %v6487_v19 }
0x100d   : > { %2894 = vrot.lane.b32.xlu2 %v2883_v61, %s5211_s16 }
0x1010   : > { %v2720_v42 = vpop.permute.xlu0 %2719 }
0x1011   : > { %v6565_v21 = vmul.f32 %v2720_v42, %v6483_v43 }
0x1013   : > { %2906 = vrot.lane.b32.xlu0 %v6565_v21, %s7174_s15 }
0x1019   : > { %v2889_v48 = vpop.permute.xlu2 %2888 }
0x101a   : > { %4494 = vmatmul.msk.f32.vlgmr.msrb.gmra.mxu2 %vm614_vm0, %v2889_v48 }
0x103d   : > { %v2901_v39 = vpop.permute.xlu0 %2900 }
0x103e   : > { %v2912_v19 = vsel %vm614_vm0, %v2889_v48, %v2901_v39 }
0x103f   : > { %4490 = vmatmul.msk.f32.vlgmr.msra.gmra.mxu3 %vm1020_vm1, %v2912_v19 }
0x1045   : > { %v2891_v0 = vpop.permute.xlu1 %2890 }
0x1046   : > { %4495 = vmatmul.msk.f32.gmra.mxu2 %vm614_vm0, %v2891_v0  ;;  %v2903_v43 = vpop.permute.xlu2 %2902 }
0x1047   : > { %v2913_v52 = vsel %vm614_vm0, %v2891_v0, %v2903_v43 }
0x1048   : > { %4491 = vmatmul.msk.f32.gmra.mxu3 %vm1020_vm1, %v2913_v52 }
0x104f   : > { %v812_v38 = vpop.f32.mrf.mxu0 }
0x1050   : > { %v813_v10 = vadd.f32 %v6441_v33, %v812_v38 }
0x1057   : > { %v815_v12 = vpop.f32.mrf.mxu0 }
0x1058   : > { %v816_v54 = vadd.f32 %v6441_v33, %v815_v12 }
0x105f   : > { %v818_v30 = vpop.f32.mrf.mxu0 }
0x1060   : > { %v819_v39 = vadd.f32 %v6441_v33, %v818_v30 }
0x1066   : > { %v2905_v20 = vpop.permute.xlu1 %2904  ;;  %v2893_v44 = vpop.permute.xlu0 %2892 }
0x1067   : > { %4496 = vmatmul.msk.f32.gmra.mxu2 %vm614_vm0, %v2893_v44  ;;  %v2914_v45 = vsel %vm614_vm0, %v2893_v44, %v2905_v20  ;;  %v2895_v17 = vpop.permute.xlu2 %2894  ;;  %v821_v60 = vpop.f32.mrf.mxu0 }
0x1068   : > { %4492 = vmatmul.msk.f32.gmra.mxu3 %vm1020_vm1, %v2914_v45  ;;  %v822_v32 = vadd.f32 %v6441_v33, %v821_v60 }
0x106f   : > { %4497 = vmatmul.msk.f32.gmra.mxu2 %vm614_vm0, %v2895_v17 }
0x1085   : > { %v2907_v47 = vpop.permute.xlu0 %2906 }
0x1086   : > { %v2915_v27 = vsel %vm614_vm0, %v2895_v17, %v2907_v47 }
0x1087   : > { %4493 = vmatmul.msk.f32.gmra.mxu3 %vm1020_vm1, %v2915_v27 }
0x109d   : > { %v3096_v56 = vpop.f32.mrf.mxu2 }
0x109e   : > { %v3108_v49 = vadd.f32 %v3096_v56, %v813_v10 }
0x10a0   : > { %4992 = vtanh.f32 %v3108_v49  ;;  %v3112_v27 = vmul.f32 0.5, %v3108_v49 }
0x10a6   : > { %v4993_v22 = vpop.eup %4992 }
0x10a7   : > { %3140 = vrot.lane.b32.xlu2 %v4993_v22, %s7174_s15 }
0x10c2   : > { %v2945_v18 = vpop.f32.mrf.mxu3 }
0x10c3   : > { %v2946_v57 = vadd.f32 %v6592_v16, %v2945_v18 }
0x10c5   : > { %4994 = vtanh.f32 %v2946_v57 }
0x10c9   : > { %v3099_v50 = vpop.f32.mrf.mxu2 }
0x10ca   : > { %v3109_v13 = vadd.f32 %v3099_v50, %v816_v54  ;;  %v2957_v50 = vmul.f32 0.5, %v2946_v57 }
0x10cb   : > { %v4995_v63 = vpop.eup %4994  ;;  %v2948_v24 = vpop.f32.mrf.mxu3 }
0x10cc   : > { %4996 = vtanh.f32 %v3109_v13  ;;  %v2949_v61 = vadd.f32 %v6592_v16, %v2948_v24  ;;  %2985 = vrot.lane.b32.xlu1 %v4995_v63, %s7174_s15  ;;  %v3113_v49 = vmul.f32 0.5, %v3109_v13 }
0x10ce   : > { %4998 = vtanh.f32 %v2949_v61  ;;  %v2958_v24 = vmul.f32 0.5, %v2949_v61 }
0x10d2   : > { %v4997_v42 = vpop.eup %4996 }
0x10d4   : > { %3142 = vrot.lane.b32.xlu1 %v4997_v42, %s7174_s15  ;;  %v4999_v48 = vpop.eup %4998 }
0x10d5   : > { %2987 = vrot.lane.b32.xlu0 %v4999_v48, %s7174_s15 }
0x10ea   : > { %v3102_v19 = vpop.f32.mrf.mxu2 }
0x10eb   : > { %v6601_v0 = vadd.f32 %v3102_v19, %v819_v39  ;;  %v2951_v43 = vpop.f32.mrf.mxu3 }
0x10ec   : > { %v2952_v52 = vadd.f32 %v6592_v16, %v2951_v43 }
0x10ed   : > { %5000 = vtanh.f32 %v6601_v0 }
0x10ee   : > { %5002 = vtanh.f32 %v2952_v52  ;;  %v2959_v48 = vmul.f32 0.5, %v2952_v52 }
0x10f2   : > { %v3105_v20 = vpop.f32.mrf.mxu2 }
0x10f3   : > { %v5001_v44 = vpop.eup %5000  ;;  %v3111_v45 = vadd.f32 %v3105_v20, %v822_v32 }
0x10f4   : > { %v5003_v17 = vpop.eup %5002  ;;  %3144 = vrot.lane.b32.xlu0 %v5001_v44, %s7174_s15 }
0x10f5   : > { %5004 = vtanh.f32 %v3111_v45  ;;  %2989 = vrot.lane.b32.xlu2 %v5003_v17, %s7174_s15  ;;  %v3115_v20 = vmul.f32 0.5, %v3111_v45 }
0x10f6   : > { %5006 = vtanh.f32 %v3112_v27 }
0x10fb   : > { %v5005_v47 = vpop.eup %5004 }
0x10fc   : > { %v5007_v56 = vpop.eup %5006 }
0x10fd   : > { %3146 = vrot.lane.b32.xlu2 %v5005_v47, %s7174_s15  ;;  %v3120_v22 = vmul.f32 0.5, %v5007_v56 }
0x10ff   : > { %v6611_v12 = vadd.f32 0.5, %v3120_v22 }
0x1101   : > { %v3141_v18 = vpop.permute.xlu2 %3140 }
0x1102   : > { %v3152_v54 = vmul.f32 %v3141_v18, %v6611_v12 }
0x110a   : > { %v2954_v38 = vpop.f32.mrf.mxu3 }
0x110b   : > { %v2955_v10 = vadd.f32 %v6592_v16, %v2954_v38 }
0x110d   : > { %5008 = vtanh.f32 %v2955_v10 }
0x110e   : > { %5010 = vtanh.f32 %v2957_v50 }
0x110f   : > { %5012 = vtanh.f32 %v3113_v49 }
0x1110   : > { %5014 = vtanh.f32 %v2958_v24 }
0x1111   : > { %5016 = vtanh.f32 %v2959_v48 }
0x1112   : > { %5018 = vtanh.f32 %v3115_v20 }
0x1113   : > { %v5009_v33 = vpop.eup %5008 }
0x1114   : > { %2991 = vrot.lane.b32.xlu1 %v5009_v33, %s7174_s15  ;;  %v5011_v63 = vpop.eup %5010 }
0x1115   : > { %v2965_v42 = vmul.f32 0.5, %v5011_v63  ;;  %v5013_v39 = vpop.eup %5012 }
0x1116   : > { %v5015_v60 = vpop.eup %5014  ;;  %v3121_v32 = vmul.f32 0.5, %v5013_v39 }
0x1117   : > { %v6615_v30 = vadd.f32 0.5, %v2965_v42  ;;  %v2966_v57 = vmul.f32 0.5, %v5015_v60  ;;  %v5017_v44 = vpop.eup %5016 }
0x1118   : > { %v6619_v13 = vadd.f32 0.5, %v3121_v32  ;;  %v2967_v38 = vmul.f32 0.5, %v5017_v44  ;;  %v5019_v45 = vpop.eup %5018 }
0x1119   : > { %v6622_v52 = vadd.f32 0.5, %v2966_v57  ;;  %v3123_v18 = vmul.f32 0.5, %v5019_v45 }
0x111a   : > { %v6627_v56 = vadd.f32 0.5, %v2967_v38 }
0x111b   : > { %v6632_v50 = vadd.f32 0.5, %v3123_v18  ;;  %v3133_v18 = vmul.f32 %v6619_v13, %v6504_v25 }
0x111c   : > { %3160 = vrot.lane.b32.xlu1 %v3152_v54, %s5211_s16  ;;  %v3114_v54 = vmul.f32 0.5, %v6601_v0 }
0x111d   : > { %v3135_v25 = vmul.f32 %v6632_v50, %v6526_v51 }
0x111e   : > { %5020 = vtanh.f32 %v3114_v54 }
0x1124   : > { %v5021_v24 = vpop.eup %5020 }
0x1125   : > { %v3122_v42 = vmul.f32 0.5, %v5021_v24 }
0x1127   : > { %v6636_v48 = vadd.f32 0.5, %v3122_v42 }
0x113e   : > { %v2986_v19 = vpop.permute.xlu1 %2985 }
0x113f   : > { %v2997_v43 = vmul.f32 %v2986_v19, %v6615_v30 }
0x1141   : > { %3005 = vrot.lane.b32.xlu0 %v2997_v43, %s5211_s16  ;;  %v2960_v43 = vmul.f32 0.5, %v2955_v10  ;;  %v2978_v10 = vmul.f32 %v6622_v52, %v6517_v53 }
0x1143   : > { %5022 = vtanh.f32 %v2960_v43 }
0x1146   : > { %v3143_v61 = vpop.permute.xlu1 %3142 }
0x1147   : > { %v3153_v17 = vmul.f32 %v3143_v61, %v6619_v13  ;;  %v2988_v47 = vpop.permute.xlu0 %2987  ;;  %v3132_v61 = vmul.f32 %v6611_v12, %v6493_v5  ;;  %v2977_v5 = vmul.f32 %v6615_v30, %v6499_v55  ;;  %v2979_v55 = vmul.f32 %v6627_v56, %v6511_v4 }
0x1148   : > { %v2998_v27 = vmul.f32 %v2988_v47, %v6622_v52 }
0x1149   : > { %3162 = vrot.lane.b32.xlu0 %v3153_v17, %s5211_s16  ;;  %v5023_v0 = vpop.eup %5022 }
0x114a   : > { %3007 = vrot.lane.b32.xlu2 %v2998_v27, %s5211_s16  ;;  %v2968_v60 = vmul.f32 0.5, %v5023_v0 }
0x114c   : > { %v6640_v32 = vadd.f32 0.5, %v2968_v60 }
0x114f   : > { %v2990_v33 = vpop.permute.xlu2 %2989 }
0x1150   : > { %v2999_v22 = vmul.f32 %v2990_v33, %v6627_v56 }
0x1152   : > { %3009 = vrot.lane.b32.xlu1 %v2999_v22, %s5211_s16 }
0x1157   : > { %v3147_v49 = vpop.permute.xlu2 %3146 }
0x1158   : > { %v3155_v63 = vmul.f32 %v3147_v49, %v6632_v50 }
0x115a   : > { %3166 = vrot.lane.b32.xlu1 %v3155_v63, %s5211_s16  ;;  %v3134_v63 = vmul.f32 %v6636_v48, %v6524_v6 }
0x1166   : > { %v3145_v39 = vpop.permute.xlu0 %3144 }
0x1167   : > { %v3154_v19 = vmul.f32 %v3145_v39, %v6636_v48 }
0x1169   : > { %3164 = vrot.lane.b32.xlu2 %v3154_v19, %s5211_s16 }
0x1186   : > { %v2992_v57 = vpop.permute.xlu1 %2991 }
0x1187   : > { %v3000_v20 = vmul.f32 %v2992_v57, %v6640_v32 }
0x1189   : > { %3011 = vrot.lane.b32.xlu0 %v3000_v20, %s5211_s16  ;;  %v2980_v20 = vmul.f32 %v6640_v32, %v6533_v41 }
0x118e   : > { %v3161_v44 = vpop.permute.xlu1 %3160 }
0x118f   : > { %v3172_v17 = vadd.f32 %v3161_v44, %v3132_v61 }
0x1191   : > { %5024 = vtanh.f32 %v3172_v17 }
0x1197   : > { %v5025_v47 = vpop.eup %5024 }
0x1198   : > { %3184 = vrot.lane.b32.xlu0 %v5025_v47, %s7174_s15 }
0x11a4   : > { %v3008_v27 = vpop.permute.xlu2 %3007 }
0x11a5   : > { %v6649_v38 = vadd.f32 %v3008_v27, %v2978_v10 }
0x11a7   : > { %5026 = vtanh.f32 %v6649_v38 }
0x11ad   : > { %v5027_v45 = vpop.eup %5026 }
0x11ae   : > { %3031 = vrot.lane.b32.xlu1 %v5027_v45, %s7174_s15 }
0x11b3   : > { %v3006_v33 = vpop.permute.xlu0 %3005 }
0x11b4   : > { %v6655_v22 = vadd.f32 %v3006_v33, %v2977_v5 }
0x11b6   : > { %5028 = vtanh.f32 %v6655_v22 }
0x11bb   : > { %v3163_v53 = vpop.permute.xlu0 %3162 }
0x11bc   : > { %v5029_v54 = vpop.eup %5028  ;;  %v3173_v49 = vadd.f32 %v3163_v53, %v3133_v18 }
0x11bd   : > { %3029 = vrot.lane.b32.xlu2 %v5029_v54, %s7174_s15 }
0x11be   : > { %5030 = vtanh.f32 %v3173_v49 }
0x11c3   : > { %v3165_v24 = vpop.permute.xlu2 %3164 }
0x11c4   : > { %v5031_v42 = vpop.eup %5030  ;;  %v3174_v39 = vadd.f32 %v3165_v24, %v3134_v63  ;;  %v3010_v19 = vpop.permute.xlu1 %3009 }
0x11c5   : > { %v6665_v43 = vadd.f32 %v3010_v19, %v2979_v55  ;;  %3186 = vrot.lane.b32.xlu2 %v5031_v42, %s7174_s15 }
0x11c6   : > { %5032 = vtanh.f32 %v3174_v39 }
0x11c7   : > { %5034 = vtanh.f32 %v6665_v43 }
0x11cc   : > { %v5033_v0 = vpop.eup %5032  ;;  %v3167_v60 = vpop.permute.xlu1 %3166 }
0x11cd   : > { %v5035_v6 = vpop.eup %5034  ;;  %v3175_v57 = vadd.f32 %v3167_v60, %v3135_v25  ;;  %3188 = vrot.lane.b32.xlu1 %v5033_v0, %s7174_s15 }
0x11ce   : > { %3033 = vrot.lane.b32.xlu0 %v5035_v6, %s7174_s15 }
0x11cf   : > { %5036 = vtanh.f32 %v3175_v57 }
0x11d5   : > { %v5037_v4 = vpop.eup %5036 }
0x11d6   : > { %3190 = vrot.lane.b32.xlu0 %v5037_v4, %s7174_s15 }
0x11fb   : > { %v3012_v61 = vpop.permute.xlu0 %3011 }
0x11fc   : > { %v6676_v44 = vadd.f32 %v3012_v61, %v2980_v20 }
0x11fe   : > { %5038 = vtanh.f32 %v6676_v44 }
0x1204   : > { %v5039_v51 = vpop.eup %5038 }
0x1205   : > { %3035 = vrot.lane.b32.xlu2 %v5039_v51, %s7174_s15 }
0x120a   : > { %v3185_v17 = vpop.permute.xlu0 %3184 }
0x120b   : > { %v3196_v47 = vmul.f32 %v3185_v17, %v6611_v12 }
0x120d   : > { %3204 = vrot.lane.b32.xlu1 %v3196_v47, %s5211_s16 }
0x1217   : > { %v3030_v10 = vpop.permute.xlu2 %3029 }
0x1218   : > { %v6683_v27 = vmul.f32 %v3030_v10, %v6615_v30 }
0x121a   : > { %3216 = vrot.lane.b32.xlu2 %v6683_v27, %s7174_s15 }
0x121f   : > { %v3187_v41 = vpop.permute.xlu2 %3186 }
0x1220   : > { %v3197_v45 = vmul.f32 %v3187_v41, %v6619_v13  ;;  %v3032_v5 = vpop.permute.xlu1 %3031 }
0x1221   : > { %v6689_v33 = vmul.f32 %v3032_v5, %v6622_v52 }
0x1222   : > { %3206 = vrot.lane.b32.xlu0 %v3197_v45, %s5211_s16 }
0x1223   : > { %3218 = vrot.lane.b32.xlu1 %v6689_v33, %s7174_s15 }
0x123f   : > { %v3189_v12 = vpop.permute.xlu1 %3188 }
0x1240   : > { %v3198_v18 = vmul.f32 %v3189_v12, %v6636_v48  ;;  %v3034_v30 = vpop.permute.xlu0 %3033 }
0x1241   : > { %v6696_v53 = vmul.f32 %v3034_v30, %v6627_v56 }
0x1242   : > { %3208 = vrot.lane.b32.xlu2 %v3198_v18, %s5211_s16 }
0x1243   : > { %3220 = vrot.lane.b32.xlu0 %v6696_v53, %s7174_s15 }
0x1248   : > { %v3191_v13 = vpop.permute.xlu0 %3190 }
0x1249   : > { %v3199_v52 = vmul.f32 %v3191_v13, %v6632_v50 }
0x124b   : > { %3210 = vrot.lane.b32.xlu1 %v3199_v52, %s5211_s16  ;;  %1789 = vrot.lane.b32.xlu0 %v6054_v28, %s5211_s16 }
0x1253   : > { %1791 = vrot.lane.b32.xlu1 %v6061_v36, %s5211_s16  ;;  %2101 = vrot.lane.b32.xlu0 %v6242_v29, %s5211_s16 }
0x125b   : > { %1154 = vrot.lane.b32.xlu1 %v5706_v46, %s5211_s16  ;;  %2103 = vrot.lane.b32.xlu0 %v6248_v3, %s5211_s16 }
0x125f   : > { %v3036_v56 = vpop.permute.xlu2 %3035 }
0x1260   : > { %v6714_v50 = vmul.f32 %v3036_v56, %v6640_v32 }
0x1262   : > { %3222 = vrot.lane.b32.xlu2 %v6714_v50, %s7174_s15  ;;  %s7184_s15 = smov 64  }
0x1263   : > { %1156 = vrot.lane.b32.xlu1 %v5713_v58, %s5211_s16  ;;  %2105 = vrot.lane.b32.xlu0 %v6255_v15, %s5211_s16 }
0x126b   : > { %1158 = vrot.lane.b32.xlu1 %v5719_v7, %s5211_s16  ;;  %2107 = vrot.lane.b32.xlu0 %v6262_v26, %s5211_s16 }
0x1273   : > { %1160 = vrot.lane.b32.xlu1 %v5727_v1, %s5211_s16  ;;  %1469 = vrot.lane.b32.xlu0 %v5858_v23, %s5211_s16 }
0x1274   : > { %v3217_v46 = vpop.permute.xlu2 %3216 }
0x127b   : > { %1471 = vrot.lane.b32.xlu0 %v5868_v40, %s5211_s16  ;;  %v3417_v40 = vld [vmem:[%s7166_s6 + $0x18] sm:$0xff] }
0x127c   : > { %4627 = vmatpush.msrb.mxu3 %v3417_v40  ;;  %3530 = vmatpush.msrb.mxu1 %v3417_v40 }
0x127f   : > { %v3205_v58 = vpop.permute.xlu1 %3204 }
0x1280   : > { %v3228_v28 = vsel %vm614_vm0, %v3205_v58, %v3217_v46 }
0x1281   : > { %4498 = vmatmul.msk.f32.vlgmr.msra.gmra.mxu1 %vm1020_vm1, %v3228_v28 }
0x1283   : > { %1473 = vrot.lane.b32.xlu0 %v5874_v35, %s5211_s16  ;;  %v3416_v35 = vld [vmem:[%s7166_s6 + $0x10] sm:$0xff] }
0x1284   : > { %4628 = vmatpush.msrb.mxu3 %v3416_v35  ;;  %3531 = vmatpush.msrb.mxu1 %v3416_v35 }
0x128b   : > { %1475 = vrot.lane.b32.xlu0 %v5880_v9, %s5211_s16  ;;  %v3415_v9 = vld [vmem:[%s7166_s6 + $0x8] sm:$0xff] }
0x128c   : > { %4629 = vmatpush.msrb.mxu3 %v3415_v9  ;;  %3532 = vmatpush.msrb.mxu1 %v3415_v9 }
0x1293   : > { %1785 = vrot.lane.b32.xlu0 %v6040_v14, %s5211_s16  ;;  %v3414_v14 = vld [vmem:[%s7166_s6] sm:$0xff] }
0x1294   : > { %v3207_v7 = vpop.permute.xlu0 %3206  ;;  %4630 = vmatpush.msrb.mxu3 %v3414_v14  ;;  %3533 = vmatpush.msrb.mxu1 %v3414_v14 }
0x1295   : > { %v3219_v1 = vpop.permute.xlu1 %3218 }
0x1296   : > { %v3229_v23 = vsel %vm614_vm0, %v3207_v7, %v3219_v1 }
0x1297   : > { %4499 = vmatmul.msk.f32.gmra.mxu1 %vm1020_vm1, %v3229_v23 }
0x129b   : > { %2737 = vrot.lane.b32.xlu0 %v6554_v62, %s5211_s16 }
0x129c   : > { %v3209_v36 = vpop.permute.xlu2 %3208 }
0x12b5   : > { %v3221_v29 = vpop.permute.xlu0 %3220 }
0x12b6   : > { %v3230_v3 = vsel %vm614_vm0, %v3209_v36, %v3221_v29 }
0x12b7   : > { %4500 = vmatmul.msk.f32.gmra.mxu1 %vm1020_vm1, %v3230_v3 }
0x12bc   : > { %v3223_v62 = vpop.permute.xlu2 %3222 }
0x12bd   : > { %v3211_v15 = vpop.permute.xlu1 %3210  ;;  %v1790_v26 = vpop.permute.xlu0 %1789 }
0x12be   : > { %1800 = vst.msk [vmem:[#allocation3 + $0x50] sm:$0xff] %vm614_vm0, %v1790_v26  ;;  %v3231_v48 = vsel %vm614_vm0, %v3211_v15, %v3223_v62 }
0x12bf   : > { %4501 = vmatmul.msk.f32.gmra.mxu1 %vm1020_vm1, %v3231_v48 }
0x12c5   : > { %v1792_v32 = vpop.permute.xlu1 %1791  ;;  %v2102_v54 = vpop.permute.xlu0 %2101  ;;  %v3392_v49 = vld [vmem:[#allocation3 + $0x50] sm:$0xff] }
0x12c6   : > { %1801 = vst.msk [vmem:[#allocation3 + $0x58] sm:$0xff] %vm614_vm0, %v1792_v32  ;;  %4512 = vmatmul.msk.f32.vlgmr.msrb.gmra.mxu3 %vm614_vm0, %v3392_v49  ;;  %v4566_v49 = vld [vmem:[%s7168_s8 + $0x10] sm:$0xff] }
0x12c7   : > { %2114 = vst.msk [vmem:[#allocation3 + $0x60] sm:$0xff] %vm614_vm0, %v2102_v54 }
0x12cd   : > { %v1155_v63 = vpop.permute.xlu1 %1154  ;;  %v2104_v24 = vpop.permute.xlu0 %2103  ;;  %v3393_v55 = vld [vmem:[#allocation3 + $0x58] sm:$0xff] }
0x12ce   : > { %1166 = vst.msk [vmem:[#allocation3] sm:$0xff] %vm614_vm0, %v1155_v63  ;;  %4513 = vmatmul.msk.f32.gmra.mxu3 %vm614_vm0, %v3393_v55  ;;  %v3394_v25 = vld [vmem:[#allocation3 + $0x60] sm:$0xff] }
0x12cf   : > { %2115 = vst.msk [vmem:[#allocation3 + $0x68] sm:$0xff] %vm614_vm0, %v2104_v24  ;;  %v6834_v55 = vld [vmem:[%s7167_s7] ss:$0 sm:$0xff] }
0x12d5   : > { %v1157_v42 = vpop.permute.xlu1 %1156  ;;  %v2106_v39 = vpop.permute.xlu0 %2105  ;;  %v3382_v19 = vld [vmem:[#allocation3] sm:$0xff] }
0x12d6   : > { %1167 = vst.msk [vmem:[#allocation3 + $0x8] sm:$0xff] %vm614_vm0, %v1157_v42  ;;  %4502 = vmatmul.msk.f32.vlgmr.msrb.gmra.mxu1 %vm614_vm0, %v3382_v19  ;;  %4514 = vmatmul.msk.f32.gmra.mxu3 %vm614_vm0, %v3394_v25  ;;  %v3395_v57 = vld [vmem:[#allocation3 + $0x68] sm:$0xff] }
0x12d7   : > { %2116 = vst.msk [vmem:[#allocation3 + $0x70] sm:$0xff] %vm614_vm0, %v2106_v39 }
0x12dd   : > { %v1159_v0 = vpop.permute.xlu1 %1158  ;;  %v2108_v60 = vpop.permute.xlu0 %2107  ;;  %v3383_v6 = vld [vmem:[#allocation3 + $0x8] sm:$0xff] }
0x12de   : > { %1168 = vst.msk [vmem:[#allocation3 + $0x10] sm:$0xff] %vm614_vm0, %v1159_v0  ;;  %4503 = vmatmul.msk.f32.gmra.mxu1 %vm614_vm0, %v3383_v6  ;;  %4515 = vmatmul.msk.f32.gmra.mxu3 %vm614_vm0, %v3395_v57  ;;  %v3396_v51 = vld [vmem:[#allocation3 + $0x70] sm:$0xff] }
0x12df   : > { %2117 = vst.msk [vmem:[#allocation3 + $0x78] sm:$0xff] %vm614_vm0, %v2108_v60 }
0x12e5   : > { %v1161_v4 = vpop.permute.xlu1 %1160  ;;  %v1470_v20 = vpop.permute.xlu0 %1469  ;;  %v3384_v61 = vld [vmem:[#allocation3 + $0x10] sm:$0xff] }
0x12e6   : > { %1169 = vst.msk [vmem:[#allocation3 + $0x18] sm:$0xff] %vm614_vm0, %v1161_v4  ;;  %4504 = vmatmul.msk.f32.gmra.mxu1 %vm614_vm0, %v3384_v61  ;;  %4516 = vmatmul.msk.f32.gmra.mxu3 %vm614_vm0, %v3396_v51  ;;  %v3397_v10 = vld [vmem:[#allocation3 + $0x78] sm:$0xff] }
0x12e7   : > { %1482 = vst.msk [vmem:[#allocation3 + $0x20] sm:$0xff] %vm614_vm0, %v1470_v20 }
0x12ed   : > { %v1472_v17 = vpop.permute.xlu0 %1471  ;;  %v3385_v47 = vld [vmem:[#allocation3 + $0x18] sm:$0xff] }
0x12ee   : > { %1483 = vst.msk [vmem:[#allocation3 + $0x28] sm:$0xff] %vm614_vm0, %v1472_v17  ;;  %4505 = vmatmul.msk.f32.gmra.mxu1 %vm614_vm0, %v3385_v47  ;;  %4517 = vmatmul.msk.f32.gmra.mxu3 %vm614_vm0, %v3397_v10  ;;  %v3386_v45 = vld [vmem:[#allocation3 + $0x20] sm:$0xff]  ;;  %v4579_v17 = vld [vmem:[%s7168_s8 + $0x28] sm:$0x3] }
0x12f5   : > { %v1474_v41 = vpop.permute.xlu0 %1473  ;;  %v3387_v12 = vld [vmem:[#allocation3 + $0x28] sm:$0xff] }
0x12f6   : > { %1484 = vst.msk [vmem:[#allocation3 + $0x30] sm:$0xff] %vm614_vm0, %v1474_v41  ;;  %4506 = vmatmul.msk.f32.gmra.mxu1 %vm614_vm0, %v3386_v45  ;;  %v4578_v41 = vld [vmem:[%s7168_s8 + $0x20] sm:$0xff] }
0x12fd   : > { %v1476_v5 = vpop.permute.xlu0 %1475  ;;  %v3388_v52 = vld [vmem:[#allocation3 + $0x30] sm:$0xff] }
0x12fe   : > { %1485 = vst.msk [vmem:[#allocation3 + $0x38] sm:$0xff] %vm614_vm0, %v1476_v5  ;;  %4507 = vmatmul.msk.f32.gmra.mxu1 %vm614_vm0, %v3387_v12  ;;  %v3261_v18 = vpop.f32.mrf.mxu1 }
0x12ff   : > { %v3262_v30 = vadd.f32 %v6592_v16, %v3261_v18 }
0x1301   : > { %5040 = vtanh.f32 %v3262_v30  ;;  %v3273_v3 = vmul.f32 0.5, %v3262_v30 }
0x1305   : > { %v1786_v13 = vpop.permute.xlu0 %1785  ;;  %v3389_v58 = vld [vmem:[#allocation3 + $0x38] sm:$0xff] }
0x1306   : > { %1798 = vst.msk [vmem:[#allocation3 + $0x40] sm:$0xff] %vm614_vm0, %v1786_v13  ;;  %4508 = vmatmul.msk.f32.gmra.mxu1 %vm614_vm0, %v3388_v52 }
0x1307   : > { %v5041_v56 = vpop.eup %5040 }
0x1308   : > { %3301 = vrot.lane.b32.xlu2 %v5041_v56, %s7184_s15 }
0x130d   : > { %v2738_v46 = vpop.permute.xlu0 %2737  ;;  %v3390_v7 = vld [vmem:[#allocation3 + $0x40] sm:$0xff] }
0x130e   : > { %2748 = vst.msk [vmem:[#allocation3 + $0xb0] sm:$0xff] %vm614_vm0, %v2738_v46  ;;  %4509 = vmatmul.msk.f32.gmra.mxu1 %vm614_vm0, %v3389_v58 }
0x1314   : > { %v3264_v28 = vpop.f32.mrf.mxu1 }
0x1315   : > { %v3265_v1 = vadd.f32 %v6592_v16, %v3264_v28 }
0x1316   : > { %4510 = vmatmul.msk.f32.gmra.mxu1 %vm614_vm0, %v3390_v7 }
0x1317   : > { %5042 = vtanh.f32 %v3265_v1 }
0x131d   : > { %v5043_v23 = vpop.eup %5042 }
0x131e   : > { %3303 = vrot.lane.b32.xlu2 %v5043_v23, %s7184_s15 }
0x1334   : > { %v3267_v40 = vpop.f32.mrf.mxu1 }
0x1335   : > { %v3268_v35 = vadd.f32 %v6592_v16, %v3267_v40 }
0x1337   : > { %5044 = vtanh.f32 %v3268_v35  ;;  %v3275_v45 = vmul.f32 0.5, %v3268_v35 }
0x133c   : > { %v3270_v14 = vpop.f32.mrf.mxu1 }
0x133d   : > { %v5045_v9 = vpop.eup %5044  ;;  %v6797_v36 = vadd.f32 %v6592_v16, %v3270_v14 }
0x133e   : > { %3305 = vrot.lane.b32.xlu2 %v5045_v9, %s7184_s15 }
0x133f   : > { %5046 = vtanh.f32 %v6797_v36  ;;  %v3276_v28 = vmul.f32 0.5, %v6797_v36 }
0x1340   : > { %5048 = vtanh.f32 %v3273_v3 }
0x1345   : > { %v5047_v29 = vpop.eup %5046 }
0x1346   : > { %3307 = vrot.lane.b32.xlu2 %v5047_v29, %s7184_s15  ;;  %v5049_v16 = vpop.eup %5048 }
0x1347   : > { %v3281_v62 = vmul.f32 0.5, %v5049_v16 }
0x1349   : > { %v6814_v32 = vadd.f32 0.5, %v3281_v62 }
0x134e   : > { %2417 = vrot.lane.b32.xlu2 %v6393_v31, %s5211_s16  ;;  %v4567_v31 = vld [vmem:[%s7168_s8 + $0x18] sm:$0x3] }
0x134f   : > { %4568 = vmatpush.msk.msra.mxu2 %vm3873_vm2, %v4567_v31 }
0x1351   : > { %3892 = vmatpush.msra.mxu2 %v4566_v49 }
0x1353   : > { %v6804_v15 = vpop.f32.mrf.mxu1  ;;  %4580 = vmatpush.msk.msrb.mxu2 %vm3873_vm2, %v4579_v17  ;;  %v3856_v17 = vld [vmem:[%s7168_s8 + $0x8] sm:$0x3] }
0x1354   : > { %4573 = vmatpush.msk.msra.mxu1 %vm3873_vm2, %v3856_v17 }
0x1355   : > { %3983 = vmatpush.msrb.mxu2 %v4578_v41  ;;  %v3536_v41 = vadd.f32 %v6834_v55, %v6804_v15 }
0x1356   : > { %2419 = vrot.lane.b32.xlu2 %v6400_v37, %s5211_s16 }
0x1357   : > { %vm3631_vm9 = vcmp.gt.f32.partialorder %v3536_v41, 0.0 }
0x135b   : > { %v6808_v26 = vpop.f32.mrf.mxu1 }
0x135e   : > { %2421 = vrot.lane.b32.xlu2 %v6409_v59, %s5211_s16  ;;  %v3274_v59 = vmul.f32 0.5, %v3265_v1 }
0x1360   : > { %5050 = vtanh.f32 %v3274_v59 }
0x1362   : > { %v3302_v54 = vpop.permute.xlu2 %3301 }
0x1363   : > { %v6812_v48 = vpop.f32.mrf.mxu1  ;;  %v3313_v37 = vmul.f32 %v3302_v54, %v6814_v32 }
0x1364   : > { %v3542_v15 = vadd.f32 %v6834_v55, %v6812_v48  ;;  %v4586_v48 = vld [vmem:[%s7168_s8 + $0x38] sm:$0x3] }
0x1365   : > { %3321 = vrot.lane.b32.xlu1 %v3313_v37, %s5211_s16 }
0x1366   : > { %2423 = vrot.lane.b32.xlu2 %v6415_v11, %s5211_s16  ;;  %v5051_v24 = vpop.eup %5050  ;;  %vm3633_vm11 = vcmp.gt.f32.partialorder %v3542_v15, 0.0 }
0x1367   : > { %v3282_v19 = vmul.f32 0.5, %v5051_v24 }
0x1369   : > { %v6839_v11 = vadd.f32 0.5, %v3282_v19 }
0x136b   : > { %v6827_v63 = vpop.f32.mrf.mxu1 }
0x136e   : > { %2733 = vrot.lane.b32.xlu2 %v6542_v2, %s5211_s16 }
0x1373   : > { %v3547_v42 = vpop.f32.mrf.mxu1 }
0x1374   : > { %v3548_v39 = vadd.f32 %v6834_v55, %v3547_v42 }
0x1376   : > { %v3671_v25 = vmul.f32 1.442695, %v3548_v39  ;;  %1787 = vrot.lane.b32.xlu2 %v6047_v8, %s5211_s16  ;;  %vm3635_vm3 = vcmp.gt.f32.partialorder %v3548_v39, 0.0 }
0x1378   : > { %5052 = vpow2.f32 %v3671_v25  ;;  %v3304_v0 = vpop.permute.xlu2 %3303 }
0x1379   : > { %v3314_v2 = vmul.f32 %v3304_v0, %v6839_v11 }
0x137b   : > { %v3550_v60 = vpop.f32.mrf.mxu1  ;;  %3323 = vrot.lane.b32.xlu1 %v3314_v2, %s5211_s16 }
0x137c   : > { %v3551_v6 = vadd.f32 %v6834_v55, %v3550_v60 }
0x137e   : > { %v5053_v57 = vpop.eup %5052  ;;  %v3673_v4 = vmul.f32 1.442695, %v3551_v6  ;;  %2739 = vrot.lane.b32.xlu2 %v6565_v21, %s5211_s16  ;;  %vm3636_vm5 = vcmp.gt.f32.partialorder %v3551_v6, 0.0 }
0x137f   : > { %v4538_v20 = vadd.f32 -1.0, %v5053_v57 }
0x1380   : > { %5054 = vpow2.f32 %v3673_v4 }
0x1381   : > { %v3763_v61 = vmul.f32 1.6732632, %v4538_v20 }
0x1383   : > { %v3795_v8 = vsel %vm3635_vm3, %v3548_v39, %v3763_v61  ;;  %v3553_v51 = vpop.f32.mrf.mxu1 }
0x1384   : > { %v3827_v47 = vmul.f32 1.050701, %v3795_v8  ;;  %v3554_v10 = vadd.f32 %v6834_v55, %v3553_v51 }
0x1386   : > { %v5055_v21 = vpop.eup %5054  ;;  %v3675_v5 = vmul.f32 1.442695, %v3554_v10  ;;  %4569 = vmatmul.msk.f32.vlgmr.msra.gmra.mxu2 %vm3860_vm4, %v3827_v47  ;;  %vm3637_vm6 = vcmp.gt.f32.partialorder %v3554_v10, 0.0 }
0x1387   : > { %v4539_v12 = vadd.f32 -1.0, %v5055_v21  ;;  %v6888_v21 = vpop.f32.mrf.mxu3 }
0x1388   : > { %5056 = vpow2.f32 %v3675_v5 }
0x1389   : > { %v3764_v18 = vmul.f32 1.6732632, %v4539_v12  ;;  %5058 = vtanh.f32 %v3275_v45  ;;  %v3663_v45 = vmul.f32 1.442695, %v3536_v41 }
0x138b   : > { %v3796_v30 = vsel %vm3636_vm5, %v3551_v6, %v3764_v18  ;;  %v3556_v13 = vpop.f32.mrf.mxu1  ;;  %v3539_v18 = vadd.f32 %v6834_v55, %v6808_v26 }
0x138c   : > { %v3828_v52 = vmul.f32 1.050701, %v3796_v30  ;;  %v3557_v56 = vadd.f32 %v6834_v55, %v3556_v13 }
0x138d   : > { %v3665_v30 = vmul.f32 1.442695, %v3539_v18  ;;  %vm3632_vm10 = vcmp.gt.f32.partialorder %v3539_v18, 0.0 }
0x138e   : > { %v5057_v46 = vpop.eup %5056  ;;  %v3677_v58 = vmul.f32 1.442695, %v3557_v56  ;;  %4570 = vmatmul.msk.f32.gmra.mxu2 %vm3860_vm4, %v3828_v52  ;;  %vm3638_vm7 = vcmp.gt.f32.partialorder %v3557_v56, 0.0 }
0x138f   : > { %v4540_v7 = vadd.f32 -1.0, %v5057_v46  ;;  %v5059_v1 = vpop.eup %5058  ;;  %v6894_v13 = vpop.f32.mrf.mxu3 }
0x1390   : > { %5060 = vpow2.f32 %v3677_v58  ;;  %v3283_v40 = vmul.f32 0.5, %v5059_v1 }
0x1391   : > { %v3765_v23 = vmul.f32 1.6732632, %v4540_v7  ;;  %5062 = vtanh.f32 %v3276_v28  ;;  %v3667_v28 = vmul.f32 1.442695, %v3542_v15  ;;  %v3293_v7 = vmul.f32 %v6814_v32, %v6655_v22 }
0x1392   : > { %v6860_v31 = vadd.f32 0.5, %v3283_v40  ;;  %v3545_v22 = vadd.f32 %v6834_v55, %v6827_v63 }
0x1393   : > { %v3797_v35 = vsel %vm3637_vm6, %v3554_v10, %v3765_v23  ;;  %v3559_v9 = vpop.f32.mrf.mxu1 }
0x1394   : > { %v3829_v14 = vmul.f32 1.050701, %v3797_v35  ;;  %v3560_v29 = vadd.f32 %v6834_v55, %v3559_v9  ;;  %vm3634_vm12 = vcmp.gt.f32.partialorder %v3545_v22, 0.0 }
0x1396   : > { %v5061_v3 = vpop.eup %5060  ;;  %v3679_v16 = vmul.f32 1.442695, %v3560_v29  ;;  %4571 = vmatmul.msk.f32.gmra.mxu2 %vm3860_vm4, %v3829_v14  ;;  %vm3639_vm8 = vcmp.gt.f32.partialorder %v3560_v29, 0.0 }
0x1397   : > { %v4541_v62 = vadd.f32 -1.0, %v5061_v3  ;;  %v5063_v54 = vpop.eup %5062  ;;  %v3571_v14 = vpop.f32.mrf.mxu3 }
0x1398   : > { %5064 = vpow2.f32 %v3679_v16  ;;  %v3306_v36 = vpop.permute.xlu2 %3305  ;;  %v3284_v24 = vmul.f32 0.5, %v5063_v54 }
0x1399   : > { %v3766_v37 = vmul.f32 1.6732632, %v4541_v62  ;;  %v3315_v49 = vmul.f32 %v3306_v36, %v6860_v31  ;;  %5066 = vpow2.f32 %v3663_v45  ;;  %v3669_v62 = vmul.f32 1.442695, %v3545_v22  ;;  %v4585_v36 = vld [vmem:[%s7168_s8 + $0x30] sm:$0xff] }
0x139a   : > { %v6865_v25 = vadd.f32 0.5, %v3284_v24  ;;  %5068 = vpow2.f32 %v3665_v30 }
0x139b   : > { %v3798_v59 = vsel %vm3638_vm7, %v3557_v56, %v3766_v37  ;;  %3325 = vrot.lane.b32.xlu1 %v3315_v49, %s5211_s16  ;;  %5070 = vpow2.f32 %v3667_v28 }
0x139c   : > { %v3830_v42 = vmul.f32 1.050701, %v3798_v59  ;;  %v3572_v59 = vadd.f32 %v6834_v55, %v3571_v14 }
0x139e   : > { %v5065_v39 = vpop.eup %5064  ;;  %4572 = vmatmul.msk.f32.gmra.mxu2 %vm3860_vm4, %v3830_v42  ;;  %vm3643_vm13 = vcmp.gt.f32.partialorder %v3572_v59, 0.0 }
0x139f   : > { %v4542_v19 = vadd.f32 -1.0, %v5065_v39  ;;  %v5067_v46 = vpop.eup %5066  ;;  %v3574_v24 = vpop.f32.mrf.mxu3  ;;  %v3687_v39 = vmul.f32 1.442695, %v3572_v59 }
0x13a0   : > { %v3308_v2 = vpop.permute.xlu2 %3307  ;;  %v4534_v58 = vadd.f32 -1.0, %v5067_v46  ;;  %v5069_v35 = vpop.eup %5068 }
0x13a1   : > { %v3767_v0 = vmul.f32 1.6732632, %v4542_v19  ;;  %v3316_v60 = vmul.f32 %v3308_v2, %v6865_v25  ;;  %v4535_v3 = vadd.f32 -1.0, %v5069_v35  ;;  %v5071_v54 = vpop.eup %5070 }
0x13a2   : > { %v3759_v26 = vmul.f32 1.6732632, %v4534_v58  ;;  %v4536_v42 = vadd.f32 -1.0, %v5071_v54 }
0x13a3   : > { %v3799_v6 = vsel %vm3639_vm8, %v3560_v29, %v3767_v0  ;;  %3327 = vrot.lane.b32.xlu1 %v3316_v60, %s5211_s16  ;;  %v3760_v37 = vmul.f32 1.6732632, %v4535_v3  ;;  %v3575_v60 = vadd.f32 %v6834_v55, %v3574_v24 }
0x13a4   : > { %v3831_v57 = vmul.f32 1.050701, %v3799_v6  ;;  %v3791_v29 = vsel %vm3631_vm9, %v3536_v41, %v3759_v26  ;;  %v3761_v0 = vmul.f32 1.6732632, %v4536_v42 }
0x13a5   : > { %v3823_v16 = vmul.f32 1.050701, %v3791_v29  ;;  %v3792_v63 = vsel %vm3632_vm10, %v3539_v18, %v3760_v37  ;;  %vm3644_vm14 = vcmp.gt.f32.partialorder %v3575_v60, 0.0 }
0x13a6   : > { %4581 = vmatmul.msk.f32.vlgmr.msrb.gmra.mxu2 %vm3860_vm4, %v3831_v57  ;;  %v3824_v19 = vmul.f32 1.050701, %v3792_v63  ;;  %v3793_v6 = vsel %vm3633_vm11, %v3542_v15, %v3761_v0 }
0x13a7   : > { %v3825_v17 = vmul.f32 1.050701, %v3793_v6 }
0x13a8   : > { %v2418_v4 = vpop.permute.xlu2 %2417 }
0x13a9   : > { %2430 = vst.msk [vmem:[#allocation3 + $0x80] sm:$0xff] %vm614_vm0, %v2418_v4  ;;  %v3294_v4 = vmul.f32 %v6839_v11, %v6649_v38 }
0x13ab   : > { %2735 = vrot.lane.b32.xlu1 %v6549_v34, %s5211_s16  ;;  %v3855_v34 = vld [vmem:[%s7168_s8] sm:$0xff] }
0x13ac   : > { %3936 = vmatpush.msra.mxu1 %v3855_v34 }
0x13ae   : > { %4587 = vmatpush.msk.msrb.mxu1 %vm3873_vm2, %v4586_v48 }
0x13b0   : > { %v2420_v20 = vpop.permute.xlu2 %2419  ;;  %v3398_v61 = vld [vmem:[#allocation3 + $0x80] sm:$0xff]  ;;  %4034 = vmatpush.msrb.mxu1 %v4585_v36 }
0x13b1   : > { %2431 = vst.msk [vmem:[#allocation3 + $0x88] sm:$0xff] %vm614_vm0, %v2420_v20  ;;  %4518 = vmatmul.msk.f32.gmra.mxu3 %vm614_vm0, %v3398_v61  ;;  %v3577_v61 = vpop.f32.mrf.mxu3 }
0x13b8   : > { %v2422_v8 = vpop.permute.xlu2 %2421  ;;  %v3399_v51 = vld [vmem:[#allocation3 + $0x88] sm:$0xff] }
0x13b9   : > { %2432 = vst.msk [vmem:[#allocation3 + $0x90] sm:$0xff] %vm614_vm0, %v2422_v8  ;;  %4519 = vmatmul.msk.f32.gmra.mxu3 %vm614_vm0, %v3399_v51  ;;  %v3689_v51 = vmul.f32 1.442695, %v3575_v60  ;;  %v3580_v18 = vpop.f32.mrf.mxu3 }
0x13c0   : > { %v2424_v47 = vpop.permute.xlu2 %2423  ;;  %v3400_v10 = vld [vmem:[#allocation3 + $0x90] sm:$0xff] }
0x13c1   : > { %2433 = vst.msk [vmem:[#allocation3 + $0x98] sm:$0xff] %vm614_vm0, %v2424_v47  ;;  %4520 = vmatmul.msk.f32.gmra.mxu3 %vm614_vm0, %v3400_v10 }
0x13c8   : > { %v2734_v5 = vpop.permute.xlu2 %2733  ;;  %v3401_v12 = vld [vmem:[#allocation3 + $0x98] sm:$0xff] }
0x13c9   : > { %2746 = vst.msk [vmem:[#allocation3 + $0xa0] sm:$0xff] %vm614_vm0, %v2734_v5  ;;  %4521 = vmatmul.msk.f32.gmra.mxu3 %vm614_vm0, %v3401_v12 }
0x13d0   : > { %v1788_v52 = vpop.permute.xlu2 %1787  ;;  %v3402_v56 = vld [vmem:[#allocation3 + $0xa0] sm:$0xff] }
0x13d1   : > { %1799 = vst.msk [vmem:[#allocation3 + $0x48] sm:$0xff] %vm614_vm0, %v1788_v52  ;;  %4522 = vmatmul.msk.f32.gmra.mxu3 %vm614_vm0, %v3402_v56  ;;  %v3581_v52 = vadd.f32 %v6834_v55, %v3580_v18 }
0x13d3   : > { %v3693_v58 = vmul.f32 1.442695, %v3581_v52  ;;  %vm3646_vm1 = vcmp.gt.f32.partialorder %v3581_v52, 0.0 }
0x13d7   : > { %v3322_v1 = vpop.permute.xlu1 %3321 }
0x13d8   : > { %v2740_v23 = vpop.permute.xlu2 %2739  ;;  %v3391_v40 = vld [vmem:[#allocation3 + $0x48] sm:$0xff]  ;;  %v3333_v9 = vadd.f32 %v3322_v1, %v3293_v7 }
0x13d9   : > { %2749 = vst.msk [vmem:[#allocation3 + $0xb8] sm:$0xff] %vm614_vm0, %v2740_v23  ;;  %4511 = vmatmul.msk.f32.gmra.mxu1 %vm614_vm0, %v3391_v40 }
0x13da   : > { %5072 = vtanh.f32 %v3333_v9 }
0x13db   : > { %5074 = vpow2.f32 %v3669_v62 }
0x13dc   : > { %5076 = vpow2.f32 %v3687_v39  ;;  %v4600_v39 = vld [vmem:[%s7168_s8 + $0x58] sm:$0x3] }
0x13dd   : > { %4601 = vmatpush.msk.msrb.mxu0 %vm3873_vm2, %v4600_v39 }
0x13e0   : > { %v5073_v49 = vpop.eup %5072  ;;  %v3405_v24 = vld [vmem:[#allocation3 + $0xb8] sm:$0xff] }
0x13e1   : > { %4574 = vmatmul.msk.f32.vlgmr.msra.gmra.mxu1 %vm3860_vm4, %v3823_v16  ;;  %3345 = vrot.lane.b32.xlu1 %v5073_v49, %s7184_s15  ;;  %v5075_v2 = vpop.eup %5074 }
0x13e2   : > { %v4537_v57 = vadd.f32 -1.0, %v5075_v2  ;;  %v5077_v47 = vpop.eup %5076  ;;  %v3566_v2 = vadd.f32 %v6834_v55, %v6888_v21 }
0x13e3   : > { %v4546_v10 = vadd.f32 -1.0, %v5077_v47 }
0x13e4   : > { %v3762_v34 = vmul.f32 1.6732632, %v4537_v57  ;;  %vm3641_vm6 = vcmp.gt.f32.partialorder %v3566_v2, 0.0 }
0x13e5   : > { %v3771_v38 = vmul.f32 1.6732632, %v4546_v10  ;;  %v4592_v10 = vld [vmem:[%s7168_s8 + $0x40] sm:$0xff] }
0x13e6   : > { %v3794_v41 = vsel %vm3634_vm12, %v3545_v22, %v3762_v34  ;;  %v3569_v34 = vadd.f32 %v6834_v55, %v6894_v13 }
0x13e7   : > { %v3826_v12 = vmul.f32 1.050701, %v3794_v41  ;;  %v3803_v56 = vsel %vm3643_vm13, %v3572_v59, %v3771_v38 }
0x13e8   : > { %v3835_v15 = vmul.f32 1.050701, %v3803_v56  ;;  %vm3642_vm7 = vcmp.gt.f32.partialorder %v3569_v34, 0.0 }
0x13e9   : > { %4575 = vmatmul.msk.f32.gmra.mxu1 %vm3860_vm4, %v3824_v19  ;;  %3049 = vrot.lane.b32.xlu1 %v6683_v27, %s5211_s16  ;;  %v3578_v27 = vadd.f32 %v6834_v55, %v3577_v61 }
0x13eb   : > { %v3691_v5 = vmul.f32 1.442695, %v3578_v27  ;;  %vm3645_vm15 = vcmp.gt.f32.partialorder %v3578_v27, 0.0 }
0x13ed   : > { %v3324_v20 = vpop.permute.xlu1 %3323 }
0x13ee   : > { %v3334_v8 = vadd.f32 %v3324_v20, %v3294_v4  ;;  %v3683_v20 = vmul.f32 1.442695, %v3566_v2 }
0x13f0   : > { %5078 = vtanh.f32 %v3334_v8 }
0x13f1   : > { %4576 = vmatmul.msk.f32.gmra.mxu1 %vm3860_vm4, %v3825_v17  ;;  %5080 = vpow2.f32 %v3689_v51 }
0x13f2   : > { %5082 = vpow2.f32 %v3691_v5 }
0x13f3   : > { %5084 = vpow2.f32 %v3693_v58 }
0x13f6   : > { %v5079_v45 = vpop.eup %5078 }
0x13f7   : > { %3347 = vrot.lane.b32.xlu0 %v5079_v45, %s7184_s15  ;;  %v5081_v30 = vpop.eup %5080 }
0x13f8   : > { %v4547_v46 = vadd.f32 -1.0, %v5081_v30  ;;  %v5083_v7 = vpop.eup %5082 }
0x13f9   : > { %4577 = vmatmul.msk.f32.gmra.mxu1 %vm3860_vm4, %v3826_v12  ;;  %v4548_v1 = vadd.f32 -1.0, %v5083_v7  ;;  %v5085_v35 = vpop.eup %5084 }
0x13fa   : > { %v3772_v28 = vmul.f32 1.6732632, %v4547_v46  ;;  %v4549_v48 = vadd.f32 -1.0, %v5085_v35 }
0x13fb   : > { %v3773_v40 = vmul.f32 1.6732632, %v4548_v1 }
0x13fc   : > { %v3804_v26 = vsel %vm3644_vm14, %v3575_v60, %v3772_v28  ;;  %v3774_v3 = vmul.f32 1.6732632, %v4549_v48 }
0x13fd   : > { %v3836_v23 = vmul.f32 1.050701, %v3804_v26  ;;  %v3805_v9 = vsel %vm3645_vm15, %v3578_v27, %v3773_v40  ;;  %v3685_v27 = vmul.f32 1.442695, %v3569_v34 }
0x13fe   : > { %v3837_v29 = vmul.f32 1.050701, %v3805_v9  ;;  %v3806_v16 = vsel %vm3646_vm1, %v3581_v52, %v3774_v3 }
0x13ff   : > { %3051 = vrot.lane.b32.xlu0 %v6689_v33, %s5211_s16  ;;  %v3295_v33 = vmul.f32 %v6860_v31, %v6665_v43  ;;  %v3838_v43 = vmul.f32 1.050701, %v3806_v16 }
0x1401   : > { %4588 = vmatmul.msk.f32.vlgmr.msrb.gmra.mxu1 %vm3860_vm4, %v3835_v15 }
0x1407   : > { %3055 = vrot.lane.b32.xlu0 %v6714_v50, %s5211_s16  ;;  %v3296_v50 = vmul.f32 %v6865_v25, %v6676_v44  ;;  %v3404_v44 = vld [vmem:[#allocation3 + $0xb0] sm:$0xff] }
0x1409   : > { %4589 = vmatmul.msk.f32.gmra.mxu1 %vm3860_vm4, %v3836_v23 }
0x140d   : > { %v3326_v14 = vpop.permute.xlu1 %3325 }
0x140e   : > { %v3335_v22 = vadd.f32 %v3326_v14, %v3295_v33 }
0x1410   : > { %5086 = vtanh.f32 %v3335_v22 }
0x1411   : > { %4590 = vmatmul.msk.f32.gmra.mxu1 %vm3860_vm4, %v3837_v29 }
0x1415   : > { %v3328_v36 = vpop.permute.xlu1 %3327 }
0x1416   : > { %v5087_v62 = vpop.eup %5086  ;;  %v3336_v54 = vadd.f32 %v3328_v36, %v3296_v50 }
0x1417   : > { %3349 = vrot.lane.b32.xlu2 %v5087_v62, %s7184_s15 }
0x1418   : > { %5088 = vtanh.f32 %v3336_v54 }
0x1419   : > { %4591 = vmatmul.msk.f32.gmra.mxu1 %vm3860_vm4, %v3838_v43 }
0x141d   : > { %v2736_v37 = vpop.permute.xlu1 %2735 }
0x141e   : > { %v5089_v49 = vpop.eup %5088  ;;  %2747 = vst.msk [vmem:[#allocation3 + $0xa8] sm:$0xff] %vm614_vm0, %v2736_v37 }
0x141f   : > { %3053 = vrot.lane.b32.xlu2 %v6696_v53, %s5211_s16  ;;  %3351 = vrot.lane.b32.xlu1 %v5089_v49, %s7184_s15  ;;  %v4599_v53 = vld [vmem:[%s7168_s8 + $0x50] sm:$0xff] }
0x1420   : > { %4136 = vmatpush.msrb.mxu0 %v4599_v53 }
0x1425   : > { %v3403_v59 = vld [vmem:[#allocation3 + $0xa8] sm:$0xff] }
0x1426   : > { %4523 = vmatmul.msk.f32.gmra.mxu3 %vm614_vm0, %v3403_v59 }
0x142e   : > { %4524 = vmatmul.msk.f32.gmra.mxu3 %vm614_vm0, %v3404_v44 }
0x1434   : > { %v3583_v63 = vpop.f32.mrf.mxu3 }
0x1435   : > { %v3584_v38 = vadd.f32 %v6834_v55, %v3583_v63 }
0x1436   : > { %4525 = vmatmul.msk.f32.gmra.mxu3 %vm614_vm0, %v3405_v24 }
0x1437   : > { %v3695_v58 = vmul.f32 1.442695, %v3584_v38  ;;  %vm3647_vm8 = vcmp.gt.f32.partialorder %v3584_v38, 0.0 }
0x143c   : > { %v3586_v42 = vpop.f32.mrf.mxu3 }
0x143d   : > { %v3587_v40 = vadd.f32 %v6834_v55, %v3586_v42 }
0x143f   : > { %v3697_v48 = vmul.f32 1.442695, %v3587_v40  ;;  %vm3648_vm9 = vcmp.gt.f32.partialorder %v3587_v40, 0.0 }
0x1444   : > { %v6950_v19 = vpop.f32.mrf.mxu3 }
0x144c   : > { %v6956_v0 = vpop.f32.mrf.mxu3 }
0x144d   : > { %v3593_v44 = vadd.f32 %v6834_v55, %v6956_v0 }
0x144f   : > { %v3701_v39 = vmul.f32 1.442695, %v3593_v44  ;;  %vm3650_vm11 = vcmp.gt.f32.partialorder %v3593_v44, 0.0 }
0x1453   : > { %v3346_v60 = vpop.permute.xlu1 %3345 }
0x1454   : > { %v3595_v6 = vpop.f32.mrf.mxu3  ;;  %v3357_v57 = vmul.f32 %v3346_v60, %v6814_v32  ;;  %v4593_v32 = vld [vmem:[%s7168_s8 + $0x48] sm:$0x3] }
0x1455   : > { %v3596_v4 = vadd.f32 %v6834_v55, %v3595_v6  ;;  %4594 = vmatpush.msk.msra.mxu2 %vm3873_vm2, %v4593_v32 }
0x1456   : > { %v3562_v61 = vpop.f32.mrf.mxu1  ;;  %3365 = vrot.lane.b32.xlu1 %v3357_v57, %s5211_s16 }
0x1457   : > { %v3703_v8 = vmul.f32 1.442695, %v3596_v4  ;;  %v3563_v51 = vadd.f32 %v6834_v55, %v3562_v61  ;;  %4085 = vmatpush.msra.mxu2 %v4592_v10  ;;  %vm3651_vm3 = vcmp.gt.f32.partialorder %v3596_v4, 0.0 }
0x1459   : > { %5090 = vpow2.f32 %v3703_v8  ;;  %v3681_v17 = vmul.f32 1.442695, %v3563_v51  ;;  %vm3640_vm5 = vcmp.gt.f32.partialorder %v3563_v51, 0.0 }
0x145a   : > { %5092 = vpow2.f32 %v3683_v20 }
0x145b   : > { %5094 = vpow2.f32 %v3681_v17  ;;  %v3050_v21 = vpop.permute.xlu1 %3049 }
0x145c   : > { %3062 = vst.msk [vmem:[#allocation3 + $0xc0] sm:$0xff] %vm614_vm0, %v3050_v21  ;;  %5096 = vpow2.f32 %v3685_v27 }
0x145d   : > { %5098 = vpow2.f32 %v3695_v58 }
0x145e   : > { %5100 = vpow2.f32 %v3697_v48 }
0x145f   : > { %v5091_v47 = vpop.eup %5090 }
0x1460   : > { %v5093_v41 = vpop.eup %5092  ;;  %v4554_v45 = vadd.f32 -1.0, %v5091_v47 }
0x1461   : > { %v5095_v13 = vpop.eup %5094  ;;  %v4544_v18 = vadd.f32 -1.0, %v5093_v41 }
0x1462   : > { %v3779_v5 = vmul.f32 1.6732632, %v4554_v45  ;;  %v4543_v12 = vadd.f32 -1.0, %v5095_v13  ;;  %v5097_v26 = vpop.eup %5096 }
0x1463   : > { %v3406_v56 = vld [vmem:[#allocation3 + $0xc0] sm:$0xff]  ;;  %v3769_v7 = vmul.f32 1.6732632, %v4544_v18  ;;  %v4545_v33 = vadd.f32 -1.0, %v5097_v26  ;;  %v5099_v29 = vpop.eup %5098 }
0x1464   : > { %v3811_v30 = vsel %vm3651_vm3, %v3596_v4, %v3779_v5  ;;  %v3768_v52 = vmul.f32 1.6732632, %v4543_v12  ;;  %4526 = vmatmul.msk.f32.gmra.mxu3 %vm614_vm0, %v3406_v56  ;;  %v4550_v62 = vadd.f32 -1.0, %v5099_v29  ;;  %v5101_v49 = vpop.eup %5100 }
0x1465   : > { %v3843_v46 = vmul.f32 1.050701, %v3811_v30  ;;  %v3801_v35 = vsel %vm3641_vm6, %v3566_v2, %v3769_v7  ;;  %v3770_v14 = vmul.f32 1.6732632, %v4545_v33  ;;  %v4551_v24 = vadd.f32 -1.0, %v5101_v49 }
0x1466   : > { %v3800_v15 = vsel %vm3640_vm5, %v3563_v51, %v3768_v52  ;;  %v3833_v9 = vmul.f32 1.050701, %v3801_v35  ;;  %v3775_v43 = vmul.f32 1.6732632, %v4550_v62 }
0x1467   : > { %v3832_v28 = vmul.f32 1.050701, %v3800_v15  ;;  %4602 = vmatmul.msk.f32.vlgmr.msrb.gmra.mxu0 %vm3860_vm4, %v3843_v46  ;;  %v3802_v50 = vsel %vm3642_vm7, %v3569_v34, %v3770_v14  ;;  %v7004_v15 = vpop.f32.mrf.mxu2 }
0x1468   : > { %v3834_v36 = vmul.f32 1.050701, %v3802_v50  ;;  %v3807_v63 = vsel %vm3647_vm8, %v3584_v38, %v3775_v43  ;;  %v4606_v50 = vld [vmem:[%s7168_s8 + $0x60] sm:$0xff] }
0x1469   : > { %v3348_v1 = vpop.permute.xlu0 %3347  ;;  %4582 = vmatmul.msk.f32.gmra.mxu2 %vm3860_vm4, %v3832_v28  ;;  %v3839_v42 = vmul.f32 1.050701, %v3807_v63 }
0x146a   : > { %v3358_v23 = vmul.f32 %v3348_v1, %v6839_v11  ;;  %v3590_v11 = vadd.f32 %v6834_v55, %v6950_v19  ;;  %v3776_v19 = vmul.f32 1.6732632, %v4551_v24 }
0x146c   : > { %3367 = vrot.lane.b32.xlu2 %v3358_v23, %s5211_s16  ;;  %v3699_v54 = vmul.f32 1.442695, %v3590_v11  ;;  %v3808_v60 = vsel %vm3648_vm9, %v3587_v40, %v3776_v19  ;;  %vm3649_vm10 = vcmp.gt.f32.partialorder %v3590_v11, 0.0 }
0x146d   : > { %v3840_v57 = vmul.f32 1.050701, %v3808_v60 }
0x146e   : > { %5102 = vpow2.f32 %v3699_v54 }
0x146f   : > { %5104 = vpow2.f32 %v3701_v39  ;;  %v7008_v35 = vpop.f32.mrf.mxu2 }
0x1471   : > { %v3350_v22 = vpop.permute.xlu2 %3349  ;;  %v3052_v3 = vpop.permute.xlu0 %3051  ;;  %4583 = vmatmul.msk.f32.gmra.mxu2 %vm3860_vm4, %v3833_v9 }
0x1472   : > { %v3359_v16 = vmul.f32 %v3350_v22, %v6860_v31  ;;  %3063 = vst.msk [vmem:[#allocation3 + $0xc8] sm:$0xff] %vm614_vm0, %v3052_v3 }
0x1474   : > { %3369 = vrot.lane.b32.xlu0 %v3359_v16, %s5211_s16  ;;  %v5103_v2 = vpop.eup %5102  ;;  %v4607_v16 = vld [vmem:[%s7168_s8 + $0x68] sm:$0x3] }
0x1475   : > { %v4552_v6 = vadd.f32 -1.0, %v5103_v2  ;;  %v5105_v20 = vpop.eup %5104  ;;  %4608 = vmatpush.msk.msra.mxu1 %vm3873_vm2, %v4607_v16 }
0x1476   : > { %v4553_v8 = vadd.f32 -1.0, %v5105_v20 }
0x1477   : > { %v3777_v4 = vmul.f32 1.6732632, %v4552_v6  ;;  %v3900_v29 = vpop.f32.mrf.mxu2  ;;  %4187 = vmatpush.msra.mxu1 %v4606_v50 }
0x1478   : > { %v3778_v17 = vmul.f32 1.6732632, %v4553_v8 }
0x1479   : > { %v3054_v37 = vpop.permute.xlu2 %3053  ;;  %v3056_v59 = vpop.permute.xlu0 %3055  ;;  %4584 = vmatmul.msk.f32.gmra.mxu2 %vm3860_vm4, %v3834_v36  ;;  %v3407_v31 = vld [vmem:[#allocation3 + $0xc8] sm:$0xff]  ;;  %v3809_v61 = vsel %vm3649_vm10, %v3590_v11, %v3777_v4 }
0x147a   : > { %3064 = vst.msk [vmem:[#allocation3 + $0xd0] sm:$0xff] %vm614_vm0, %v3054_v37  ;;  %4527 = vmatmul.msk.f32.gmra.mxu3 %vm614_vm0, %v3407_v31  ;;  %v3841_v51 = vmul.f32 1.050701, %v3809_v61  ;;  %v3810_v32 = vsel %vm3650_vm11, %v3593_v44, %v3778_v17  ;;  %v7021_v36 = vpop.f32.mrf.mxu1 }
0x147b   : > { %3065 = vst.msk [vmem:[#allocation3 + $0xd8] sm:$0xff] %vm614_vm0, %v3056_v59  ;;  %v3842_v47 = vmul.f32 1.050701, %v3810_v32 }
0x147f   : > { %v3903_v62 = vpop.f32.mrf.mxu2 }
0x1481   : > { %v3408_v53 = vld [vmem:[#allocation3 + $0xd0] sm:$0xff]  ;;  %4595 = vmatmul.msk.f32.vlgmr.msra.gmra.mxu2 %vm3860_vm4, %v3839_v42 }
0x1482   : > { %4528 = vmatmul.msk.f32.gmra.mxu3 %vm614_vm0, %v3408_v53  ;;  %v3409_v0 = vld [vmem:[#allocation3 + $0xd8] sm:$0xff]  ;;  %v7026_v43 = vpop.f32.mrf.mxu1 }
0x1487   : > { %v7024_v54 = vpop.f32.mrf.mxu2 }
0x1489   : > { %4596 = vmatmul.msk.f32.gmra.mxu2 %vm3860_vm4, %v3840_v57 }
0x148a   : > { %4529 = vmatmul.msk.f32.gmra.mxu3 %vm614_vm0, %v3409_v0  ;;  %v3944_v24 = vpop.f32.mrf.mxu1 }
0x148b   : > { %v3945_v39 = vadd.f32 %v3944_v24, %v3900_v29 }
0x1491   : > { %v3352_v34 = vpop.permute.xlu1 %3351  ;;  %4597 = vmatmul.msk.f32.gmra.mxu2 %vm3860_vm4, %v3841_v51 }
0x1492   : > { %v3360_v21 = vmul.f32 %v3352_v34, %v6865_v25  ;;  %v3947_v6 = vpop.f32.mrf.mxu1 }
0x1493   : > { %v3948_v20 = vadd.f32 %v3947_v6, %v3903_v62 }
0x1494   : > { %3371 = vrot.lane.b32.xlu1 %v3360_v21, %s5211_s16  ;;  %s4626_s16 = sshll.u32 %s7185_s25, 5 }
0x1495   : > { %s4329_s15 = scalar_lea.hbm %s7172_s12, %s4626_s16 }
0x1496   : > { %s4332_s0 = sshll.u32 %s4329_s15, 4  ;;  %s4333_s0 = int_to_ptr.hbm [resolvable:$true] %s4332_s0 }
0x1497   : > { %s5159_s26 = sshra.s32 %s4333_s0, 4  ;;  %s5160_s26 = int_to_ptr.hbm [resolvable:$true] %s5159_s26 }
0x1498   : > { %s5161_s1 = scalar_lea.hbm %s5160_s26, 32  ;;  %p5166_p2 = scmp.lt.s32.totalorder %s5160_s26, %s7172_s12 }
0x1499   : > { %4598 = vmatmul.msk.f32.gmra.mxu2 %vm3860_vm4, %v3842_v47  ;;  %p5162_p13 = scmp.ne.s32.totalorder %s5160_s26, %s5161_s1  ;;  %p5167_p3 = scmp.lt.s32.totalorder %s5165_s28, %s5161_s1 }
0x149b   : > { %p5163_p0 = pnand %p5162_p13, %p5317_p6  ;;  %p5168_p4 = por %p5167_p3, %p5166_p2 }
0x149d   : > { %p5164_p1 = pneg %p5163_p0 }
0x149f   : > { %p5169_p5 = pnand %p5168_p4, %p5164_p1 }
0x14a9   : > { %v3598_v27 = vpop.f32.mrf.mxu3 }
0x14aa   : > { %v3599_v10 = vadd.f32 %v6834_v55, %v3598_v27 }
0x14ac   : > { %v3705_v41 = vmul.f32 1.442695, %v3599_v10  ;;  %vm3652_vm12 = vcmp.gt.f32.partialorder %v3599_v10, 0.0 }
0x14ae   : > { %5106 = vpow2.f32 %v3705_v41 }
0x14b1   : > { %v3601_v45 = vpop.f32.mrf.mxu3 }
0x14b2   : > { %v3602_v13 = vadd.f32 %v6834_v55, %v3601_v45 }
0x14b4   : > { %v5107_v5 = vpop.eup %5106  ;;  %v3707_v12 = vmul.f32 1.442695, %v3602_v13  ;;  %vm3653_vm13 = vcmp.gt.f32.partialorder %v3602_v13, 0.0 }
0x14b5   : > { %v4555_v38 = vadd.f32 -1.0, %v5107_v5 }
0x14b6   : > { %5108 = vpow2.f32 %v3707_v12 }
0x14b7   : > { %v3780_v25 = vmul.f32 1.6732632, %v4555_v38 }
0x14b9   : > { %v3812_v18 = vsel %vm3652_vm12, %v3599_v10, %v3780_v25  ;;  %v3604_v30 = vpop.f32.mrf.mxu3 }
0x14ba   : > { %v3844_v52 = vmul.f32 1.050701, %v3812_v18  ;;  %v3605_v56 = vadd.f32 %v6834_v55, %v3604_v30 }
0x14bc   : > { %v5109_v46 = vpop.eup %5108  ;;  %v3709_v58 = vmul.f32 1.442695, %v3605_v56  ;;  %4603 = vmatmul.msk.f32.gmra.mxu0 %vm3860_vm4, %v3844_v52  ;;  %vm3654_vm14 = vcmp.gt.f32.partialorder %v3605_v56, 0.0 }
0x14bd   : > { %v4556_v28 = vadd.f32 -1.0, %v5109_v46 }
0x14be   : > { %5110 = vpow2.f32 %v3709_v58 }
0x14bf   : > { %v3781_v7 = vmul.f32 1.6732632, %v4556_v28 }
0x14c1   : > { %v3813_v26 = vsel %vm3653_vm13, %v3602_v13, %v3781_v7 }
0x14c2   : > { %v3845_v1 = vmul.f32 1.050701, %v3813_v26 }
0x14c4   : > { %v5111_v23 = vpop.eup %5110  ;;  %4604 = vmatmul.msk.f32.gmra.mxu0 %vm3860_vm4, %v3845_v1 }
0x14c5   : > { %v4557_v40 = vadd.f32 -1.0, %v5111_v23  ;;  %v4614_v23 = vld [vmem:[%s7168_s8 + $0x78] sm:$0x3] }
0x14c6   : > { %v3368_v33 = vpop.permute.xlu2 %3367  ;;  %4615 = vmatpush.msk.msrb.mxu2 %vm3873_vm2, %v4614_v23 }
0x14c7   : > { %v3782_v9 = vmul.f32 1.6732632, %v4557_v40  ;;  %3379 = vst.msk [vmem:[#allocation3 + $0xe8] sm:$0xff] %vm614_vm0, %v3368_v33  ;;  %v4613_v40 = vld [vmem:[%s7168_s8 + $0x70] sm:$0xff] }
0x14c8   : > { %v3366_v14 = vpop.permute.xlu1 %3365  ;;  %4238 = vmatpush.msrb.mxu2 %v4613_v40  ;;  %v3939_v40 = vadd.f32 %v7021_v36, %v7004_v15 }
0x14c9   : > { %v3814_v48 = vsel %vm3654_vm14, %v3605_v56, %v3782_v9  ;;  %3378 = vst.msk [vmem:[#allocation3 + $0xe0] sm:$0xff] %vm614_vm0, %v3366_v14 }
0x14ca   : > { %v3846_v22 = vmul.f32 1.050701, %v3814_v48 }
0x14cc   : > { %4605 = vmatmul.msk.f32.gmra.mxu0 %vm3860_vm4, %v3846_v22 }
0x14ce   : > { %v3411_v11 = vld [vmem:[#allocation3 + $0xe8] sm:$0xff] }
0x14d0   : > { %v3410_v3 = vld [vmem:[#allocation3 + $0xe0] sm:$0xff] }
0x14d1   : > { %4530 = vmatmul.msk.f32.gmra.mxu3 %vm614_vm0, %v3410_v3 }
0x14d9   : > { %4531 = vmatmul.msk.f32.gmra.mxu3 %vm614_vm0, %v3411_v11 }
0x14e6   : > { %v3370_v37 = vpop.permute.xlu0 %3369 }
0x14e7   : > { %3380 = vst.msk [vmem:[#allocation3 + $0xf0] sm:$0xff] %vm614_vm0, %v3370_v37  ;;  %v3607_v49 = vpop.f32.mrf.mxu3 }
0x14e8   : > { %v3608_v59 = vadd.f32 %v6834_v55, %v3607_v49 }
0x14ea   : > { %v3711_v31 = vmul.f32 1.442695, %v3608_v59  ;;  %vm3655_vm15 = vcmp.gt.f32.partialorder %v3608_v59, 0.0 }
0x14ec   : > { %v7030_v44 = vpop.f32.mrf.mxu2  ;;  %5112 = vpow2.f32 %v3711_v31 }
0x14ee   : > { %v3412_v63 = vld [vmem:[#allocation3 + $0xf0] sm:$0xff] }
0x14ef   : > { %4532 = vmatmul.msk.f32.gmra.mxu3 %vm614_vm0, %v3412_v63 }
0x14f2   : > { %v5113_v42 = vpop.eup %5112 }
0x14f3   : > { %v4558_v19 = vadd.f32 -1.0, %v5113_v42 }
0x14f4   : > { %v3991_v53 = vpop.f32.mrf.mxu2 }
0x14f5   : > { %v7033_v2 = vadd.f32 %v3991_v53, %v3945_v39  ;;  %v3783_v60 = vmul.f32 1.6732632, %v4558_v19 }
0x14f7   : > { %v3815_v57 = vsel %vm3655_vm15, %v3608_v59, %v3783_v60 }
0x14f8   : > { %v3847_v4 = vmul.f32 1.050701, %v3815_v57 }
0x14fa   : > { %4609 = vmatmul.msk.f32.vlgmr.msra.gmra.mxu1 %vm3860_vm4, %v3847_v4  ;;  %v4279_v4 = vld [vmem:[%s7170_s10 + $0x78] sm:$0xff] }
0x14fb   : > { %4284 = vmatpush.msra.mxu0 %v4279_v4 }
0x14fc   : > { %v3994_v0 = vpop.f32.mrf.mxu2 }
0x14fd   : > { %v7036_v61 = vadd.f32 %v3994_v0, %v3948_v20  ;;  %v3610_v8 = vpop.f32.mrf.mxu3  ;;  %v4278_v20 = vld [vmem:[%s7170_s10 + $0x70] sm:$0xff]  ;;  %v4276_v0 = vld [vmem:[%s7170_s10 + $0x60] sm:$0xff] }
0x14fe   : > { %v3611_v51 = vadd.f32 %v6834_v55, %v3610_v8  ;;  %4285 = vmatpush.msra.mxu0 %v4278_v20  ;;  %v4275_v8 = vld [vmem:[%s7170_s10 + $0x58] sm:$0xff] }
0x1500   : > { %v3713_v17 = vmul.f32 1.442695, %v3611_v51  ;;  %vm3656_vm1 = vcmp.gt.f32.partialorder %v3611_v51, 0.0 }
0x1502   : > { %5114 = vpow2.f32 %v3713_v17  ;;  %v4273_v17 = vld [vmem:[%s7170_s10 + $0x48] sm:$0xff] }
0x1505   : > { %v3613_v34 = vpop.f32.mrf.mxu3 }
0x1506   : > { %v3614_v21 = vadd.f32 %v6834_v55, %v3613_v34  ;;  %v3372_v32 = vpop.permute.xlu1 %3371  ;;  %v4272_v34 = vld [vmem:[%s7170_s10 + $0x40] sm:$0xff] }
0x1507   : > { %3381 = vst.msk [vmem:[#allocation3 + $0xf8] sm:$0xff] %vm614_vm0, %v3372_v32  ;;  %v5144_v32 = vld [vmem:[%s7167_s7] ss:$0 sm:$0xff] }
0x1508   : > { %v5115_v47 = vpop.eup %5114  ;;  %v3715_v27 = vmul.f32 1.442695, %v3614_v21  ;;  %vm3657_vm3 = vcmp.gt.f32.partialorder %v3614_v21, 0.0 }
0x1509   : > { %v4559_v10 = vadd.f32 -1.0, %v5115_v47 }
0x150a   : > { %5116 = vpow2.f32 %v3715_v27  ;;  %v4271_v27 = vld [vmem:[%s7170_s10 + $0x38] sm:$0xff] }
0x150b   : > { %v3784_v41 = vmul.f32 1.6732632, %v4559_v10 }
0x150d   : > { %v3816_v45 = vsel %vm3656_vm1, %v3611_v51, %v3784_v41  ;;  %v3616_v13 = vpop.f32.mrf.mxu3  ;;  %v4274_v51 = vld [vmem:[%s7170_s10 + $0x50] sm:$0xff] }
0x150e   : > { %v3848_v5 = vmul.f32 1.050701, %v3816_v45  ;;  %v3617_v12 = vadd.f32 %v6834_v55, %v3616_v13  ;;  %v3413_v38 = vld [vmem:[#allocation3 + $0xf8] sm:$0xff]  ;;  %v4270_v41 = vld [vmem:[%s7170_s10 + $0x30] sm:$0xff]  ;;  %v4269_v45 = vld [vmem:[%s7170_s10 + $0x28] sm:$0xff] }
0x150f   : > { %4533 = vmatmul.msk.f32.gmra.mxu3 %vm614_vm0, %v3413_v38  ;;  %v4268_v13 = vld [vmem:[%s7170_s10 + $0x20] sm:$0xff] }
0x1510   : > { %v5117_v25 = vpop.eup %5116  ;;  %v3717_v18 = vmul.f32 1.442695, %v3617_v12  ;;  %4610 = vmatmul.msk.f32.gmra.mxu1 %vm3860_vm4, %v3848_v5  ;;  %vm3658_vm5 = vcmp.gt.f32.partialorder %v3617_v12, 0.0  ;;  %v4267_v5 = vld [vmem:[%s7170_s10 + $0x18] sm:$0xff] }
0x1511   : > { %v4560_v30 = vadd.f32 -1.0, %v5117_v25 }
0x1512   : > { %5118 = vpow2.f32 %v3717_v18 }
0x1513   : > { %v3785_v52 = vmul.f32 1.6732632, %v4560_v30 }
0x1515   : > { %v3817_v56 = vsel %vm3657_vm3, %v3614_v21, %v3785_v52  ;;  %v4036_v52 = vpop.f32.mrf.mxu1 }
0x1516   : > { %v3849_v46 = vmul.f32 1.050701, %v3817_v56  ;;  %v4087_v56 = vpop.f32.mrf.mxu2 }
0x1518   : > { %v5119_v58 = vpop.eup %5118  ;;  %4611 = vmatmul.msk.f32.gmra.mxu1 %vm3860_vm4, %v3849_v46  ;;  %v4266_v46 = vld [vmem:[%s7170_s10 + $0x10] sm:$0xff] }
0x1519   : > { %v4561_v28 = vadd.f32 -1.0, %v5119_v58 }
0x151b   : > { %v3786_v7 = vmul.f32 1.6732632, %v4561_v28  ;;  %v4265_v28 = vld [vmem:[%s7170_s10 + $0x8] sm:$0xff] }
0x151d   : > { %v3818_v26 = vsel %vm3658_vm5, %v3617_v12, %v3786_v7  ;;  %v4039_v58 = vpop.f32.mrf.mxu1  ;;  %v4264_v7 = vld [vmem:[%s7170_s10] sm:$0xff] }
0x151e   : > { %v3850_v1 = vmul.f32 1.050701, %v3818_v26  ;;  %v4090_v26 = vpop.f32.mrf.mxu2 }
0x1520   : > { %4612 = vmatmul.msk.f32.gmra.mxu1 %vm3860_vm4, %v3850_v1 }
0x1525   : > { %v4042_v1 = vpop.f32.mrf.mxu1 }
0x1526   : > { %v4093_v23 = vpop.f32.mrf.mxu2 }
0x1554   : > { %v3619_v33 = vpop.f32.mrf.mxu3 }
0x1555   : > { %v3620_v9 = vadd.f32 %v6834_v55, %v3619_v33  ;;  %v4045_v33 = vpop.f32.mrf.mxu1 }
0x1557   : > { %v3719_v48 = vmul.f32 1.442695, %v3620_v9  ;;  %vm3659_vm0 = vcmp.gt.f32.partialorder %v3620_v9, 0.0 }
0x1559   : > { %5120 = vpow2.f32 %v3719_v48 }
0x155c   : > { %v3622_v14 = vpop.f32.mrf.mxu3 }
0x155d   : > { %v3623_v22 = vadd.f32 %v6834_v55, %v3622_v14  ;;  %v4096_v14 = vpop.f32.mrf.mxu2 }
0x155f   : > { %v5121_v29 = vpop.eup %5120  ;;  %v3721_v3 = vmul.f32 1.442695, %v3623_v22  ;;  %vm3660_vm2 = vcmp.gt.f32.partialorder %v3623_v22, 0.0 }
0x1560   : > { %v4562_v16 = vadd.f32 -1.0, %v5121_v29  ;;  %v4138_v29 = vpop.f32.mrf.mxu0 }
0x1561   : > { %5122 = vpow2.f32 %v3721_v3  ;;  %v3942_v3 = vadd.f32 %v7026_v43, %v7008_v35 }
0x1562   : > { %v3787_v11 = vmul.f32 1.6732632, %v4562_v16 }
0x1564   : > { %v3819_v50 = vsel %vm3659_vm0, %v3620_v9, %v3787_v11  ;;  %v3997_v9 = vadd.f32 %v7024_v54, %v3939_v40  ;;  %v3998_v11 = vadd.f32 %v7030_v44, %v3942_v3  ;;  %v4050_v44 = vadd.f32 %v4042_v1, %v7033_v2 }
0x1565   : > { %v3851_v62 = vmul.f32 1.050701, %v3819_v50 }
0x1566   : > { %v4048_v48 = vadd.f32 %v4036_v52, %v3997_v9  ;;  %v4049_v36 = vadd.f32 %v4039_v58, %v3998_v11 }
0x1567   : > { %v5123_v37 = vpop.eup %5122  ;;  %4616 = vmatmul.msk.f32.vlgmr.msrb.gmra.mxu2 %vm3860_vm4, %v3851_v62 }
0x1568   : > { %v4563_v49 = vadd.f32 -1.0, %v5123_v37  ;;  %v4678_v37 = vld [vmem:[%s7169_s9] ss:$0 sm:$0xff]  ;;  %v4141_v54 = vpop.f32.mrf.mxu0 }
0x156a   : > { %v3788_v59 = vmul.f32 1.6732632, %v4563_v49 }
0x156c   : > { %v3820_v31 = vsel %vm3660_vm2, %v3623_v22, %v3788_v59  ;;  %v4099_v22 = vadd.f32 %v4087_v56, %v4048_v48  ;;  %v4100_v59 = vadd.f32 %v4090_v26, %v4049_v36 }
0x156d   : > { %v3852_v63 = vmul.f32 1.050701, %v3820_v31 }
0x156e   : > { %v4150_v50 = vadd.f32 %v4138_v29, %v4099_v22 }
0x156f   : > { %4617 = vmatmul.msk.f32.gmra.mxu2 %vm3860_vm4, %v3852_v63 }
0x1572   : > { %v3625_v24 = vpop.f32.mrf.mxu3 }
0x1573   : > { %v3626_v42 = vadd.f32 %v6834_v55, %v3625_v24  ;;  %v4277_v55 = vld [vmem:[%s7170_s10 + $0x68] sm:$0xff]  ;;  %v4151_v24 = vadd.f32 %v4141_v54, %v4100_v59 }
0x1574   : > { %4286 = vmatpush.msra.mxu0 %v4277_v55 }
0x1575   : > { %v3723_v39 = vmul.f32 1.442695, %v3626_v42  ;;  %vm3661_vm6 = vcmp.gt.f32.partialorder %v3626_v42, 0.0 }
0x1576   : > { %4287 = vmatpush.msra.mxu0 %v4276_v0  ;;  %v4051_v0 = vadd.f32 %v4045_v33, %v7036_v61 }
0x1577   : > { %5124 = vpow2.f32 %v3723_v39  ;;  %v4189_v16 = vpop.f32.mrf.mxu1 }
0x1578   : > { %4288 = vmatpush.msra.mxu0 %v4275_v8  ;;  %v4201_v62 = vadd.f32 %v4189_v16, %v4150_v50 }
0x157a   : > { %4289 = vmatpush.msra.mxu0 %v4274_v51  ;;  %v4102_v51 = vadd.f32 %v4096_v14, %v4051_v0 }
0x157c   : > { %4290 = vmatpush.msra.mxu0 %v4273_v17 }
0x157d   : > { %v5125_v19 = vpop.eup %5124 }
0x157e   : > { %v4564_v53 = vadd.f32 -1.0, %v5125_v19  ;;  %4291 = vmatpush.msra.mxu0 %v4272_v34  ;;  %v4144_v19 = vpop.f32.mrf.mxu0 }
0x1580   : > { %v3789_v60 = vmul.f32 1.6732632, %v4564_v53  ;;  %4292 = vmatpush.msra.mxu0 %v4271_v27  ;;  %v4101_v53 = vadd.f32 %v4093_v23, %v4050_v44  ;;  %v4679_v27 = vld [vmem:[%s7171_s11] ss:$0 sm:$0xff] }
0x1582   : > { %v3821_v6 = vsel %vm3661_vm6, %v3626_v42, %v3789_v60  ;;  %4293 = vmatpush.msra.mxu0 %v4270_v41 }
0x1583   : > { %v3853_v57 = vmul.f32 1.050701, %v3821_v6  ;;  %v4152_v6 = vadd.f32 %v4144_v19, %v4101_v53 }
0x1584   : > { %4294 = vmatpush.msra.mxu0 %v4269_v45 }
0x1585   : > { %4618 = vmatmul.msk.f32.gmra.mxu2 %vm3860_vm4, %v3853_v57 }
0x1586   : > { %4295 = vmatpush.msra.mxu0 %v4268_v13  ;;  %v4147_v8 = vpop.f32.mrf.mxu0 }
0x1587   : > { %v4153_v34 = vadd.f32 %v4147_v8, %v4102_v51 }
0x1588   : > { %4296 = vmatpush.msra.mxu0 %v4267_v5 }
0x158a   : > { %4297 = vmatpush.msra.mxu0 %v4266_v46 }
0x158c   : > { %4298 = vmatpush.msra.mxu0 %v4265_v28 }
0x158d   : > { %v4192_v63 = vpop.f32.mrf.mxu1 }
0x158e   : > { %4299 = vmatpush.msra.mxu0 %v4264_v7  ;;  %v4202_v42 = vadd.f32 %v4192_v63, %v4151_v24 }
0x1592   : > { %v3628_v21 = vpop.f32.mrf.mxu3 }
0x1593   : > { %v3629_v47 = vadd.f32 %v5144_v32, %v3628_v21 }
0x1595   : > { %v3725_v10 = vmul.f32 1.442695, %v3629_v47  ;;  %vm3662_vm7 = vcmp.gt.f32.partialorder %v3629_v47, 0.0  ;;  %v4195_v60 = vpop.f32.mrf.mxu1 }
0x1596   : > { %v4203_v57 = vadd.f32 %v4195_v60, %v4152_v6 }
0x1597   : > { %5126 = vpow2.f32 %v3725_v10 }
0x159d   : > { %v5127_v12 = vpop.eup %5126  ;;  %v4198_v17 = vpop.f32.mrf.mxu1 }
0x159e   : > { %v4565_v38 = vadd.f32 -1.0, %v5127_v12  ;;  %v4204_v21 = vadd.f32 %v4198_v17, %v4153_v34 }
0x15a0   : > { %v3790_v25 = vmul.f32 1.6732632, %v4565_v38 }
0x15a2   : > { %v3822_v18 = vsel %vm3662_vm7, %v3629_v47, %v3790_v25 }
0x15a3   : > { %v3854_v30 = vmul.f32 1.050701, %v3822_v18 }
0x15a5   : > { %4619 = vmatmul.msk.f32.gmra.mxu2 %vm3860_vm4, %v3854_v30 }
0x15ea   : > { %v4240_v15 = vpop.f32.mrf.mxu2 }
0x15eb   : > { %v4252_v49 = vadd.f32 %v4240_v15, %v4201_v62 }
0x15ed   : > { %v4260_v31 = vadd.f32 %v4678_v37, %v4252_v49 }
0x15ef   : > { %4300 = vmatmul.f32.vlgmr.msra.gmra.mxu0 %v4260_v31 }
0x15f2   : > { %v4243_v35 = vpop.f32.mrf.mxu2 }
0x15f3   : > { %v4253_v43 = vadd.f32 %v4243_v35, %v4202_v42 }
0x15f5   : > { %v4261_v39 = vadd.f32 %v4678_v37, %v4253_v43 }
0x15f7   : > { %4303 = vmatmul.f32.gmra.mxu0 %v4261_v39 }
0x1608   : > { %v4246_v4 = vpop.f32.mrf.mxu2 }
0x1609   : > { %v4254_v20 = vadd.f32 %v4246_v4, %v4203_v57 }
0x160b   : > { %v4262_v55 = vadd.f32 %v4678_v37, %v4254_v20 }
0x160d   : > { %4306 = vmatmul.f32.gmra.mxu0 %v4262_v55 }
0x1628   : > { %v4249_v32 = vpop.f32.mrf.mxu2 }
0x1629   : > { %v4255_v2 = vadd.f32 %v4249_v32, %v4204_v21 }
0x162b   : > { %v4263_v47 = vadd.f32 %v4678_v37, %v4255_v2 }
0x162d   : > { %4309 = vmatmul.f32.gmra.mxu0 %v4263_v47 }
0x166c   : > { %v4301_v10 = vpop.f32.mrf.mxu0 }
0x166d   : > { %v4302_v41 = vadd.f32 %v4679_v27, %v4301_v10 }
0x166f   : > { %4313 = vst [vmem:[%s571_s29] sm:$0xff] %v4302_v41 }
0x1674   : > { %v4304_v61 = vpop.f32.mrf.mxu0 }
0x1675   : > { %v4305_v45 = vadd.f32 %v4679_v27, %v4304_v61 }
0x1677   : > { %4314 = vst [vmem:[%s571_s29 + $0x8] sm:$0xff] %v4305_v45 }
0x168a   : > { %v4307_v13 = vpop.f32.mrf.mxu0 }
0x168b   : > { %v4308_v5 = vadd.f32 %v4679_v27, %v4307_v13 }
0x168d   : > { %4315 = vst [vmem:[%s571_s29 + $0x10] sm:$0xff] %v4308_v5 }
0x16aa   : > { %v4310_v12 = vpop.f32.mrf.mxu0 }
0x16ab   : > { %v4311_v38 = vadd.f32 %v4679_v27, %v4310_v12 }
0x16ad   : > { %4316 = vst [vmem:[%s571_s29 + $0x18] sm:$0xff] %v4311_v38 }
0x16ae   : > { %5172 = shalt.err (!%p5169_p5)
}
0x16af   : > { %s5212_s19 = smov 128   ;;  %s5213_s29 = smov 8  }
0x16b0   : > { %4631 = dma.vmem_to_hbm [thread:$0]  (%p5317_p6), %s4331_s17, 512, %s4333_s0, %s4318_s18, %s5212_s19, %s5212_s19, %s5213_s29  }
0x16b1 PF: > { %s4347_s15 = sand.u32 1, %s5195_s21   ;;  %p4634_p7 = pnand %p4403_p9, %p5321_p8 }
0x16b2   : > { %s4348_s2 = scalar_lea.sflag [#allocation6], %s4347_s15 }
0x16b3   : > { %p4635_p10 = pneg %p4634_p7 }
0x16b5   : > { %5190 = dma.done.wait (%p4635_p10), %s4348_s2, 512  }
0x16b6   : > { %5192 = vsyncadd (%p4635_p10), %s4348_s2, 4294966784  ;;  %p22_p11 = scmp.ge.s32.totalorder %s5302_s27, 4   ;;  %s7186_s21 = smov %s5199_s22 }
0x16b7   : > { %s7187_s22 = smov %s5203_s23  ;;  %s7188_s23 = smov %s5315_s30 }
0x16b8   : > { %s7189_s24 = smov %s5302_s27  ;;  %24 = sbr.rel (!%p22_p11) target bundleno = 7 (0x7), region = 167 }
0x16bd   :  { %4354 = vsyncpa [#allocation6], 1 }
0x16be   :  { %4356 = vsyncpa [#allocation6 + $0x1], 1 }

</bundles_post_ra>
